<compile_context>
chip_gen: v5e
topology: v5e:2x2
jax: 0.10.0
libtpu: 0.0.40
codegen_flags: <defaults>
</compile_context>

<pallas_src>
import functools

import jax
import jax.numpy as jnp
from jax import lax
from jax.experimental import pallas as pl
from jax.experimental.pallas import tpu as pltpu

_LANE = 128
_COMPUTE_DTYPE = jnp.bfloat16      # MXU-input / HBM-activation dtype (f32 accumulation)


def _round_up(n, m=_LANE):
    return ((n + m - 1) // m) * m


def _pad_last(a, target):
    pad = target - a.shape[-1]
    if pad == 0:
        return a
    return jnp.pad(a, [(0, 0)] * (a.ndim - 1) + [(0, pad)])


@functools.lru_cache(maxsize=1)
def _vmem_limit_bytes():
    """Generation-aware scoped-VMEM budget (<=48 MiB on v7x, up to 96 MiB on v5e/v6e)."""
    try:
        cap = int(getattr(pltpu.get_tpu_info(), "vmem_capacity_bytes", 0))
    except Exception:
        cap = 0
    if cap <= 0:
        return 32 * 1024 * 1024
    return min(96 * 1024 * 1024, (cap * 3) // 4)


# ----------------------------- in-kernel conv helpers -----------------------------

def _edge_masks(nrows, ncols):
    """Validity masks (shape (nrows*ncols, 1), bool) for reading the 4 neighbours of a
    row-major-flattened (nrows, ncols, C) image."""
    q = lax.broadcasted_iota(jnp.int32, (nrows * ncols, 1), 0)
    col = q % ncols
    up = q >= ncols                      # reading (row-1, col) stays in bounds
    down = q < (nrows - 1) * ncols       # reading (row+1, col)
    left = col >= 1                      # reading (row, col-1)
    right = col <= ncols - 2             # reading (row, col+1)
    return up, down, left, right


def _and_mask(m1, m2):
    if m1 is None:
        return m2
    if m2 is None:
        return m1
    return jnp.logical_and(m1, m2)


def _shift_tap(src_flat, offset, mask, cdt):
    """tap[q] = src_flat[q + offset]; positions where `mask` is False are zeroed.
    The zeroed positions are exactly the conv zero-padding, so the roll wrap-around
    never leaks.  XLU rotate -> no relayout / load-store copies."""
    n = src_flat.shape[0]
    tap = src_flat if offset == 0 else pltpu.roll(src_flat, shift=(-offset) % n, axis=0)
    tap = tap.astype(cdt)
    if mask is not None:
        tap = jnp.where(mask, tap, 0)
    return tap


def _conv3x3_s1(src_flat, nrows, ncols, w_ref, cdt):
    """3x3 / stride 1 / SAME conv: 9 shifted-and-masked taps of the flat
    (nrows*ncols, Cin) activation, each a single MXU dot accumulated in f32."""
    cout = w_ref.shape[-1]
    up, down, left, right = _edge_masks(nrows, ncols)
    acc = jnp.zeros((nrows * ncols, cout), jnp.float32)
    for kh in range(3):
        for kw in range(3):
            dh, dw = kh - 1, kw - 1
            mask = _and_mask(up if dh < 0 else (down if dh > 0 else None),
                             left if dw < 0 else (right if dw > 0 else None))
            tap = _shift_tap(src_flat, dh * ncols + dw, mask, cdt)
            acc = acc + jnp.dot(tap, w_ref[kh * 3 + kw],
                                preferred_element_type=jnp.float32)
    return acc


def _conv3x3_s2(a_scr, ho, wo, w_ref, cdt):
    """3x3 / stride 2 / SAME conv via 4 polyphase (even/odd row x col) grids decimated
    ONCE from the VMEM scratch copy of `a`; every tap is then a dense stride-1
    shifted slice of one grid.  Also returns the (even,even) grid, which is exactly
    the input of the 1x1 stride-2 shortcut conv."""
    cin = a_scr.shape[-1]
    cout = w_ref.shape[-1]
    phase = {}
    for pr in (0, 1):
        for pc in (0, 1):
            g = a_scr[pl.ds(pr, ho, 2), pl.ds(pc, wo, 2), :]
            phase[(pr, pc)] = g.reshape(ho * wo, cin)
    up, _, left, _ = _edge_masks(ho, wo)
    acc = jnp.zeros((ho * wo, cout), jnp.float32)
    for kh in range(3):
        for kw in range(3):
            pr = 0 if kh == 1 else 1          # kh==1 reads even input rows, else odd
            pc = 0 if kw == 1 else 1
            offset = (-wo if kh == 0 else 0) + (-1 if kw == 0 else 0)
            mask = _and_mask(up if kh == 0 else None, left if kw == 0 else None)
            tap = _shift_tap(phase[(pr, pc)], offset, mask, cdt)
            acc = acc + jnp.dot(tap, w_ref[kh * 3 + kw],
                                preferred_element_type=jnp.float32)
    return acc, phase[(0, 0)]


# ------------------------------- fused block kernel -------------------------------

def _make_block_kernel(stride, equal, H, W, cdt):
    ho, wo = H // stride, W // stride

    def kernel(*refs):
        refs = list(refs)
        a_scr = refs.pop() if stride == 2 else None
        if equal:
            x_ref, s1_ref, b1_ref, w1_ref, b2_ref, w2_ref, o_ref = refs
            ws_ref = None
        else:
            x_ref, s1_ref, b1_ref, w1_ref, b2_ref, w2_ref, ws_ref, o_ref = refs

        cinp = x_ref.shape[-1]
        coutp = o_ref.shape[-1]

        # -- prologue: folded BN1 + ReLU (VPU, f32) --
        x = x_ref[0].astype(jnp.float32)                       # (H, W, Cin_p)
        a = jnp.maximum(x * s1_ref[0] + b1_ref[0], 0.0)

        # -- conv1 (3x3, stride s); BN2 scale pre-folded into w1 --
        if stride == 1:
            a_flat = a.reshape(H * W, cinp)
            acc1 = _conv3x3_s1(a_flat, H, W, w1_ref, cdt)
            res_src = a_flat
        else:
            a_scr[...] = a                                     # single store, no zero-fill
            acc1, res_src = _conv3x3_s2(a_scr, ho, wo, w1_ref, cdt)

        # -- BN2 bias + ReLU (scale already folded into w1) --
        h_flat = jnp.maximum(acc1 + b2_ref[0], 0.0)            # (ho*wo, Cout_p) f32

        # -- conv2 (3x3, stride 1), fused: h never leaves VMEM --
        acc2 = _conv3x3_s1(h_flat, ho, wo, w2_ref, cdt)

        # -- residual --
        if equal:
            res = x.reshape(ho * wo, coutp)                    # identity shortcut
        else:
            res = jnp.dot(res_src.astype(cdt), ws_ref[...],    # 1x1 stride-s shortcut
                          preferred_element_type=jnp.float32)

        o_ref[...] = (acc2 + res).reshape(1, ho, wo, coutp).astype(o_ref.dtype)

    return kernel


def _block_call(x, bp):
    n, H, W, cinp = x.shape
    stride, equal = bp['stride'], bp['equal']
    coutp = bp['w1'].shape[-1]
    ho, wo = H // stride, W // stride
    kernel = _make_block_kernel(stride, equal, H, W, bp['cdt'])

    in_specs = [
        pl.BlockSpec((1, H, W, cinp), lambda i: (i, 0, 0, 0)),
        pl.BlockSpec((1, cinp), lambda i: (0, 0)),
        pl.BlockSpec((1, cinp), lambda i: (0, 0)),
        pl.BlockSpec((9, cinp, coutp), lambda i: (0, 0, 0)),
        pl.BlockSpec((1, coutp), lambda i: (0, 0)),
        pl.BlockSpec((9, coutp, coutp), lambda i: (0, 0, 0)),
    ]
    args = [x, bp['s1'], bp['b1'], bp['w1'], bp['b2'], bp['w2']]
    if not equal:
        in_specs.append(pl.BlockSpec((cinp, coutp), lambda i: (0, 0)))
        args.append(bp['ws'])

    scratch = [pltpu.VMEM((H, W, cinp), jnp.float32)] if stride == 2 else []

    return pl.pallas_call(
        kernel,
        out_shape=jax.ShapeDtypeStruct((n, ho, wo, coutp), x.dtype),
        grid=(n,),
        in_specs=in_specs,
        out_specs=pl.BlockSpec((1, ho, wo, coutp), lambda i: (i, 0, 0, 0)),
        scratch_shapes=scratch,
        compiler_params=pltpu.CompilerParams(
            dimension_semantics=("parallel",),
            vmem_limit_bytes=_vmem_limit_bytes()),
    )(*args)


# ----------------------------- parameter prep (run once) ---------------------------

def prepare_network_block(params, compute_dtype=_COMPUTE_DTYPE):
    """Fold BN (eval mode), pad channels to 128-multiples, reshape + cast weights.
    Call once; pass the result to network_block_forward repeatedly."""
    prepped = []
    for p in params:
        cin, cout = p['w1'].shape[2], p['w1'].shape[3]
        stride, equal = p['stride'], p['equal']
        assert not (equal and stride != 1), \
            "equal-in-out BasicBlock with stride>1 has a shape-mismatched residual"
        cinp, coutp = _round_up(cin), _round_up(cout)
        w1 = p['w1'] * p['s2'].reshape(1, 1, 1, cout)          # fold BN2 scale into conv1
        w1 = jnp.pad(w1, ((0, 0), (0, 0), (0, cinp - cin), (0, coutp - cout)))
        w2 = jnp.pad(p['w2'], ((0, 0), (0, 0), (0, coutp - cout), (0, coutp - cout)))
        bp = dict(
            s1=_pad_last(p['s1'], cinp).astype(jnp.float32),
            b1=_pad_last(p['b1'], cinp).astype(jnp.float32),
            w1=w1.reshape(9, cinp, coutp).astype(compute_dtype),
            b2=_pad_last(p['b2'], coutp).astype(jnp.float32),
            w2=w2.reshape(9, coutp, coutp).astype(compute_dtype),
            stride=stride, equal=equal, cin=cin, cout=cout, cdt=compute_dtype)
        if not equal:
            bp['ws'] = jnp.pad(p['ws'],
                               ((0, cinp - cin), (0, coutp - cout))).astype(compute_dtype)
        prepped.append(bp)
    return prepped


def network_block_forward(x_nchw, prepped):
    """PyTorch-compatible interface: NCHW in, NCHW out (f32)."""
    cinp0 = prepped[0]['s1'].shape[-1]
    cdt = prepped[0]['cdt']
    x = jnp.transpose(x_nchw, (0, 2, 3, 1))
    x = _pad_last(x, cinp0).astype(cdt)
    for bp in prepped:
        assert x.shape[1] % bp['stride'] == 0 and x.shape[2] % bp['stride'] == 0
        x = _block_call(x, bp)
    x = x[..., :prepped[-1]['cout']].astype(jnp.float32)
    return jnp.transpose(x, (0, 3, 1, 2))


# ------------------------------- parameter creation -------------------------------

def _fold_bn(key, c):
    k1, k2, k3, k4 = jax.random.split(key, 4)
    gamma = jax.random.uniform(k1, (c,), jnp.float32, 0.5, 1.5)
    beta = 0.1 * jax.random.normal(k2, (c,), jnp.float32)
    mean = 0.1 * jax.random.normal(k3, (c,), jnp.float32)
    var = jax.random.uniform(k4, (c,), jnp.float32, 0.5, 1.5)
    scale = gamma * lax.rsqrt(var + 1e-5)
    bias = beta - mean * scale
    return scale.reshape(1, c), bias.reshape(1, c)


def init_basic_block(key, cin, cout, stride):
    ks = jax.random.split(key, 5)
    s1, b1 = _fold_bn(ks[0], cin)
    s2, b2 = _fold_bn(ks[1], cout)
    w1 = jax.random.normal(ks[2], (3, 3, cin, cout), jnp.float32) * (2.0 / (9 * cout)) ** 0.5
    w2 = jax.random.normal(ks[3], (3, 3, cout, cout), jnp.float32) * (2.0 / (9 * cout)) ** 0.5
    p = dict(s1=s1, b1=b1, w1=w1, s2=s2, b2=b2, w2=w2,
             stride=stride, equal=(cin == cout))
    if not p['equal']:
        p['ws'] = jax.random.normal(ks[4], (cin, cout), jnp.float32) * (2.0 / cout) ** 0.5
    return p


def init_network_block(key, nb_layers, in_planes, out_planes, stride):
    params = []
    for i in range(int(nb_layers)):
        key, sub = jax.random.split(key)
        cin = in_planes if i == 0 else out_planes
        s = stride if i == 0 else 1
        params.append(init_basic_block(sub, cin, out_planes, s))
    return params


# -------------------------------- pure-JAX reference -------------------------------

def _conv3x3_ref(x, w, stride):
    return lax.conv_general_dilated(x, w, (stride, stride), ((1, 1), (1, 1)),
                                    dimension_numbers=('NHWC', 'HWIO', 'NHWC'),
                                    precision=lax.Precision.HIGHEST)


def _basic_block_ref(x, p):
    stride, equal = p['stride'], p['equal']
    s1 = p['s1'].reshape(1, 1, 1, -1); b1 = p['b1'].reshape(1, 1, 1, -1)
    s2 = p['s2'].reshape(1, 1, 1, -1); b2 = p['b2'].reshape(1, 1, 1, -1)
    a = jnp.maximum(x * s1 + b1, 0.0)
    h = jnp.maximum(_conv3x3_ref(a, p['w1'], stride) * s2 + b2, 0.0)
    out = _conv3x3_ref(h, p['w2'], 1)
    if equal:
        res = x
    else:
        res = lax.conv_general_dilated(a, p['ws'][None, None], (stride, stride), 'VALID',
                                       dimension_numbers=('NHWC', 'HWIO', 'NHWC'),
                                       precision=lax.Precision.HIGHEST)
    return out + res


def network_block_ref(x_nchw, params):
    x = jnp.transpose(x_nchw, (0, 2, 3, 1)).astype(jnp.float32)
    for p in params:
        x = _basic_block_ref(x, p)
    return jnp.transpose(x, (0, 3, 1, 2))


# --------------------------------------- main --------------------------------------

if __name__ == "__main__":
    key = jax.random.PRNGKey(0)
    kx, kp = jax.random.split(key)

    # NetworkBlock(nb_layers=2, in_planes=4, out_planes=8, block=BasicBlock, stride=2)
    x = jax.random.normal(kx, (2, 4, 16, 16), jnp.float32)          # NCHW like PyTorch
    params = init_network_block(kp, nb_layers=2, in_planes=4, out_planes=8, stride=2)

    prepped = prepare_network_block(params)                          # hoisted, run once
    out = jax.block_until_ready(network_block_forward(x, prepped))
    assert out.shape == (2, 8, 8, 8), out.shape

    ref = network_block_ref(x, params)
    err = float(jnp.max(jnp.abs(out - ref)))
    tol = 4e-2 * max(1.0, float(jnp.max(jnp.abs(ref))))              # bf16 MXU-input path
    assert err < tol, f"max abs err {err} (tol {tol})"

    print("KERNEL_OK")
</pallas_src>

<mosaic_0001>
module attributes {stable_mosaic.version = 11 : i64} {
  func.func @kernel(%arg0: i32, %arg1: memref<1x16x16x128xbf16, #tpu.memory_space<vmem>>, %arg2: memref<1x128xf32, #tpu.memory_space<vmem>>, %arg3: memref<1x128xf32, #tpu.memory_space<vmem>>, %arg4: memref<9x128x128xbf16, #tpu.memory_space<vmem>>, %arg5: memref<1x128xf32, #tpu.memory_space<vmem>>, %arg6: memref<9x128x128xbf16, #tpu.memory_space<vmem>>, %arg7: memref<128x128xbf16, #tpu.memory_space<vmem>>, %arg8: memref<1x8x8x128xbf16, #tpu.memory_space<vmem>>, %arg9: memref<16x16x128xf32, #tpu.memory_space<vmem>>) attributes {dimension_semantics = [#tpu.dimension_semantics<parallel>], iteration_bounds = array<i64: 2>, scalar_prefetch = 0 : i64, scratch_operands = 1 : i64, tpu.core_type = #tpu.core_type<tc>, window_params = [{transform_indices = @transform_0, window_bounds = array<i64: 1, 16, 16, 128>}, {pipeline_mode = #tpu.pipeline_mode<synchronous>, transform_indices = @transform_1, window_bounds = array<i64: 1, 128>}, {pipeline_mode = #tpu.pipeline_mode<synchronous>, transform_indices = @transform_2, window_bounds = array<i64: 1, 128>}, {pipeline_mode = #tpu.pipeline_mode<synchronous>, transform_indices = @transform_3, window_bounds = array<i64: 9, 128, 128>}, {pipeline_mode = #tpu.pipeline_mode<synchronous>, transform_indices = @transform_4, window_bounds = array<i64: 1, 128>}, {pipeline_mode = #tpu.pipeline_mode<synchronous>, transform_indices = @transform_5, window_bounds = array<i64: 9, 128, 128>}, {pipeline_mode = #tpu.pipeline_mode<synchronous>, transform_indices = @transform_6, window_bounds = array<i64: 128, 128>}, {transform_indices = @transform_7, window_bounds = array<i64: 1, 8, 8, 128>}]} {
    %c0 = arith.constant 0 : index
    %c0_0 = arith.constant 0 : index
    %c0_1 = arith.constant 0 : index
    %c0_2 = arith.constant 0 : index
    %0 = vector.load %arg1[%c0, %c0_0, %c0_1, %c0_2] : memref<1x16x16x128xbf16, #tpu.memory_space<vmem>>, vector<1x16x16x128xbf16>
    %1 = vector.shape_cast %0 : vector<1x16x16x128xbf16> to vector<16x16x128xbf16>
    %2 = arith.extf %1 : vector<16x16x128xbf16> to vector<16x16x128xf32>
    %c0_3 = arith.constant 0 : index
    %c0_4 = arith.constant 0 : index
    %3 = vector.load %arg2[%c0_3, %c0_4] : memref<1x128xf32, #tpu.memory_space<vmem>>, vector<1x128xf32>
    %4 = vector.shape_cast %3 : vector<1x128xf32> to vector<128xf32>
    %5 = vector.shape_cast %4 : vector<128xf32> to vector<1x1x128xf32>
    %6 = vector.broadcast %5 : vector<1x1x128xf32> to vector<16x16x128xf32>
    %7 = arith.mulf %2, %6 : vector<16x16x128xf32>
    %c0_5 = arith.constant 0 : index
    %c0_6 = arith.constant 0 : index
    %8 = vector.load %arg3[%c0_5, %c0_6] : memref<1x128xf32, #tpu.memory_space<vmem>>, vector<1x128xf32>
    %9 = vector.shape_cast %8 : vector<1x128xf32> to vector<128xf32>
    %10 = vector.shape_cast %9 : vector<128xf32> to vector<1x1x128xf32>
    %11 = vector.broadcast %10 : vector<1x1x128xf32> to vector<16x16x128xf32>
    %12 = arith.addf %7, %11 : vector<16x16x128xf32>
    %cst = arith.constant 0.000000e+00 : f32
    %13 = vector.broadcast %cst : f32 to vector<16x16x128xf32>
    %14 = arith.maximumf %12, %13 : vector<16x16x128xf32>
    %c0_7 = arith.constant 0 : index
    %c0_8 = arith.constant 0 : index
    %c0_9 = arith.constant 0 : index
    %15 = vector.load %arg9[%c0_7, %c0_8, %c0_9] : memref<16x16x128xf32, #tpu.memory_space<vmem>>, vector<16x16x128xf32>
    tpu.vector_store %arg9[%c0_7, %c0_8, %c0_9], %14 {strides = array<i32>} : memref<16x16x128xf32, #tpu.memory_space<vmem>>, vector<16x16x128xf32>,
    %c0_10 = arith.constant 0 : index
    %c0_11 = arith.constant 0 : index
    %c0_12 = arith.constant 0 : index
    %16 = tpu.strided_load %arg9[%c0_10, %c0_11, %c0_12] {strides = array<i32: 2, 2, 1>} : memref<16x16x128xf32, #tpu.memory_space<vmem>>, vector<8x8x128xf32>
    %17 = vector.shape_cast %16 : vector<8x8x128xf32> to vector<64x128xf32>
    %c0_13 = arith.constant 0 : index
    %c1 = arith.constant 1 : index
    %c0_14 = arith.constant 0 : index
    %18 = tpu.strided_load %arg9[%c0_13, %c1, %c0_14] {strides = array<i32: 2, 2, 1>} : memref<16x16x128xf32, #tpu.memory_space<vmem>>, vector<8x8x128xf32>
    %19 = vector.shape_cast %18 : vector<8x8x128xf32> to vector<64x128xf32>
    %c1_15 = arith.constant 1 : index
    %c0_16 = arith.constant 0 : index
    %c0_17 = arith.constant 0 : index
    %20 = tpu.strided_load %arg9[%c1_15, %c0_16, %c0_17] {strides = array<i32: 2, 2, 1>} : memref<16x16x128xf32, #tpu.memory_space<vmem>>, vector<8x8x128xf32>
    %21 = vector.shape_cast %20 : vector<8x8x128xf32> to vector<64x128xf32>
    %c1_18 = arith.constant 1 : index
    %c1_19 = arith.constant 1 : index
    %c0_20 = arith.constant 0 : index
    %22 = tpu.strided_load %arg9[%c1_18, %c1_19, %c0_20] {strides = array<i32: 2, 2, 1>} : memref<16x16x128xf32, #tpu.memory_space<vmem>>, vector<8x8x128xf32>
    %23 = vector.shape_cast %22 : vector<8x8x128xf32> to vector<64x128xf32>
    %24 = tpu.iota {dimensions = array<i32: 0>} : vector<64x1xi32>
    %c8_i32 = arith.constant 8 : i32
    %c0_i32 = arith.constant 0 : i32
    %25 = arith.cmpi eq, %c8_i32, %c0_i32 : i32
    %c1_i32 = arith.constant 1 : i32
    %26 = arith.select %25, %c1_i32, %c8_i32 : i32
    %27 = vector.broadcast %26 : i32 to vector<64x1xi32>
    %28 = arith.remsi %24, %27 : vector<64x1xi32>
    %c0_i32_21 = arith.constant 0 : i32
    %29 = vector.broadcast %c0_i32_21 : i32 to vector<64x1xi32>
    %30 = arith.cmpi ne, %28, %29 : vector<64x1xi32>
    %c0_i32_22 = arith.constant 0 : i32
    %31 = vector.broadcast %c0_i32_22 : i32 to vector<64x1xi32>
    %32 = arith.cmpi slt, %28, %31 : vector<64x1xi32>
    %c0_i32_23 = arith.constant 0 : i32
    %33 = arith.cmpi slt, %26, %c0_i32_23 : i32
    %34 = vector.broadcast %33 : i1 to vector<64x1xi1>
    %35 = vector.broadcast %34 : vector<64x1xi1> to vector<64x1xi1>
    %36 = arith.xori %32, %35 : vector<64x1xi1>
    %37 = arith.andi %36, %30 : vector<64x1xi1>
    %38 = vector.broadcast %26 : i32 to vector<64x1xi32>
    %39 = arith.addi %28, %38 : vector<64x1xi32>
    %40 = arith.select %37, %39, %28 : vector<64x1xi1>, vector<64x1xi32>
    %c8_i32_24 = arith.constant 8 : i32
    %41 = vector.broadcast %c8_i32_24 : i32 to vector<64x1xi32>
    %42 = arith.cmpi sge, %24, %41 : vector<64x1xi32>
    %c1_i32_25 = arith.constant 1 : i32
    %43 = vector.broadcast %c1_i32_25 : i32 to vector<64x1xi32>
    %44 = arith.cmpi sge, %40, %43 : vector<64x1xi32>
    %cst_26 = arith.constant 0.000000e+00 : f32
    %45 = vector.broadcast %cst_26 : f32 to vector<64x128xf32>
    %46 = arith.andi %42, %44 : vector<64x1xi1>
    %c9_i32 = arith.constant 9 : i32
    %47 = tpu.dynamic_rotate %23 by %c9_i32 dim 0 : vector<64x128xf32>, i32 -> vector<64x128xf32>
    %48 = arith.truncf %47 : vector<64x128xf32> to vector<64x128xbf16>
    %c0_i32_27 = arith.constant 0 : i32
    %49 = arith.sitofp %c0_i32_27 : i32 to bf16
    %50 = vector.shape_cast %46 : vector<64x1xi1> to vector<64x1xi1>
    %51 = vector.broadcast %50 : vector<64x1xi1> to vector<64x128xi1>
    %52 = vector.broadcast %49 : bf16 to vector<64x128xbf16>
    %53 = arith.select %51, %48, %52 : vector<64x128xi1>, vector<64x128xbf16>
    %c0_28 = arith.constant 0 : index
    %c0_29 = arith.constant 0 : index
    %c0_30 = arith.constant 0 : index
    %54 = vector.load %arg4[%c0_28, %c0_29, %c0_30] : memref<9x128x128xbf16, #tpu.memory_space<vmem>>, vector<1x128x128xbf16>
    %55 = vector.shape_cast %54 : vector<1x128x128xbf16> to vector<128x128xbf16>
    %cst_31 = arith.constant dense<0.000000e+00> : vector<64x128xf32>
    %56 = tpu.matmul %53, %55, %cst_31 {dimension_numbers = #tpu.dot_dimension_numbers<[1], [0], [0], [1], [0, 0, 1, 1], [], []>} : vector<64x128xbf16>, vector<128x128xbf16>, vector<64x128xf32> -> vector<64x128xf32>
    %57 = arith.addf %45, %56 : vector<64x128xf32>
    %c8_i32_32 = arith.constant 8 : i32
    %58 = tpu.dynamic_rotate %21 by %c8_i32_32 dim 0 : vector<64x128xf32>, i32 -> vector<64x128xf32>
    %59 = arith.truncf %58 : vector<64x128xf32> to vector<64x128xbf16>
    %c0_i32_33 = arith.constant 0 : i32
    %60 = arith.sitofp %c0_i32_33 : i32 to bf16
    %61 = vector.shape_cast %42 : vector<64x1xi1> to vector<64x1xi1>
    %62 = vector.broadcast %61 : vector<64x1xi1> to vector<64x128xi1>
    %63 = vector.broadcast %60 : bf16 to vector<64x128xbf16>
    %64 = arith.select %62, %59, %63 : vector<64x128xi1>, vector<64x128xbf16>
    %c1_34 = arith.constant 1 : index
    %c0_35 = arith.constant 0 : index
    %c0_36 = arith.constant 0 : index
    %65 = vector.load %arg4[%c1_34, %c0_35, %c0_36] : memref<9x128x128xbf16, #tpu.memory_space<vmem>>, vector<1x128x128xbf16>
    %66 = vector.shape_cast %65 : vector<1x128x128xbf16> to vector<128x128xbf16>
    %cst_37 = arith.constant dense<0.000000e+00> : vector<64x128xf32>
    %67 = tpu.matmul %64, %66, %cst_37 {dimension_numbers = #tpu.dot_dimension_numbers<[1], [0], [0], [1], [0, 0, 1, 1], [], []>} : vector<64x128xbf16>, vector<128x128xbf16>, vector<64x128xf32> -> vector<64x128xf32>
    %68 = arith.addf %57, %67 : vector<64x128xf32>
    %c8_i32_38 = arith.constant 8 : i32
    %69 = tpu.dynamic_rotate %23 by %c8_i32_38 dim 0 : vector<64x128xf32>, i32 -> vector<64x128xf32>
    %70 = arith.truncf %69 : vector<64x128xf32> to vector<64x128xbf16>
    %c0_i32_39 = arith.constant 0 : i32
    %71 = arith.sitofp %c0_i32_39 : i32 to bf16
    %72 = vector.shape_cast %42 : vector<64x1xi1> to vector<64x1xi1>
    %73 = vector.broadcast %72 : vector<64x1xi1> to vector<64x128xi1>
    %74 = vector.broadcast %71 : bf16 to vector<64x128xbf16>
    %75 = arith.select %73, %70, %74 : vector<64x128xi1>, vector<64x128xbf16>
    %c2 = arith.constant 2 : index
    %c0_40 = arith.constant 0 : index
    %c0_41 = arith.constant 0 : index
    %76 = vector.load %arg4[%c2, %c0_40, %c0_41] : memref<9x128x128xbf16, #tpu.memory_space<vmem>>, vector<1x128x128xbf16>
    %77 = vector.shape_cast %76 : vector<1x128x128xbf16> to vector<128x128xbf16>
    %cst_42 = arith.constant dense<0.000000e+00> : vector<64x128xf32>
    %78 = tpu.matmul %75, %77, %cst_42 {dimension_numbers = #tpu.dot_dimension_numbers<[1], [0], [0], [1], [0, 0, 1, 1], [], []>} : vector<64x128xbf16>, vector<128x128xbf16>, vector<64x128xf32> -> vector<64x128xf32>
    %79 = arith.addf %68, %78 : vector<64x128xf32>
    %c1_i32_43 = arith.constant 1 : i32
    %80 = tpu.dynamic_rotate %19 by %c1_i32_43 dim 0 : vector<64x128xf32>, i32 -> vector<64x128xf32>
    %81 = arith.truncf %80 : vector<64x128xf32> to vector<64x128xbf16>
    %c0_i32_44 = arith.constant 0 : i32
    %82 = arith.sitofp %c0_i32_44 : i32 to bf16
    %83 = vector.shape_cast %44 : vector<64x1xi1> to vector<64x1xi1>
    %84 = vector.broadcast %83 : vector<64x1xi1> to vector<64x128xi1>
    %85 = vector.broadcast %82 : bf16 to vector<64x128xbf16>
    %86 = arith.select %84, %81, %85 : vector<64x128xi1>, vector<64x128xbf16>
    %c3 = arith.constant 3 : index
    %c0_45 = arith.constant 0 : index
    %c0_46 = arith.constant 0 : index
    %87 = vector.load %arg4[%c3, %c0_45, %c0_46] : memref<9x128x128xbf16, #tpu.memory_space<vmem>>, vector<1x128x128xbf16>
    %88 = vector.shape_cast %87 : vector<1x128x128xbf16> to vector<128x128xbf16>
    %cst_47 = arith.constant dense<0.000000e+00> : vector<64x128xf32>
    %89 = tpu.matmul %86, %88, %cst_47 {dimension_numbers = #tpu.dot_dimension_numbers<[1], [0], [0], [1], [0, 0, 1, 1], [], []>} : vector<64x128xbf16>, vector<128x128xbf16>, vector<64x128xf32> -> vector<64x128xf32>
    %90 = arith.addf %79, %89 : vector<64x128xf32>
    %91 = arith.truncf %17 : vector<64x128xf32> to vector<64x128xbf16>
    %c4 = arith.constant 4 : index
    %c0_48 = arith.constant 0 : index
    %c0_49 = arith.constant 0 : index
    %92 = vector.load %arg4[%c4, %c0_48, %c0_49] : memref<9x128x128xbf16, #tpu.memory_space<vmem>>, vector<1x128x128xbf16>
    %93 = vector.shape_cast %92 : vector<1x128x128xbf16> to vector<128x128xbf16>
    %cst_50 = arith.constant dense<0.000000e+00> : vector<64x128xf32>
    %94 = tpu.matmul %91, %93, %cst_50 {dimension_numbers = #tpu.dot_dimension_numbers<[1], [0], [0], [1], [0, 0, 1, 1], [], []>} : vector<64x128xbf16>, vector<128x128xbf16>, vector<64x128xf32> -> vector<64x128xf32>
    %95 = arith.addf %90, %94 : vector<64x128xf32>
    %96 = arith.truncf %19 : vector<64x128xf32> to vector<64x128xbf16>
    %c5 = arith.constant 5 : index
    %c0_51 = arith.constant 0 : index
    %c0_52 = arith.constant 0 : index
    %97 = vector.load %arg4[%c5, %c0_51, %c0_52] : memref<9x128x128xbf16, #tpu.memory_space<vmem>>, vector<1x128x128xbf16>
    %98 = vector.shape_cast %97 : vector<1x128x128xbf16> to vector<128x128xbf16>
    %cst_53 = arith.constant dense<0.000000e+00> : vector<64x128xf32>
    %99 = tpu.matmul %96, %98, %cst_53 {dimension_numbers = #tpu.dot_dimension_numbers<[1], [0], [0], [1], [0, 0, 1, 1], [], []>} : vector<64x128xbf16>, vector<128x128xbf16>, vector<64x128xf32> -> vector<64x128xf32>
    %100 = arith.addf %95, %99 : vector<64x128xf32>
    %c1_i32_54 = arith.constant 1 : i32
    %101 = tpu.dynamic_rotate %23 by %c1_i32_54 dim 0 : vector<64x128xf32>, i32 -> vector<64x128xf32>
    %102 = arith.truncf %101 : vector<64x128xf32> to vector<64x128xbf16>
    %c0_i32_55 = arith.constant 0 : i32
    %103 = arith.sitofp %c0_i32_55 : i32 to bf16
    %104 = vector.shape_cast %44 : vector<64x1xi1> to vector<64x1xi1>
    %105 = vector.broadcast %104 : vector<64x1xi1> to vector<64x128xi1>
    %106 = vector.broadcast %103 : bf16 to vector<64x128xbf16>
    %107 = arith.select %105, %102, %106 : vector<64x128xi1>, vector<64x128xbf16>
    %c6 = arith.constant 6 : index
    %c0_56 = arith.constant 0 : index
    %c0_57 = arith.constant 0 : index
    %108 = vector.load %arg4[%c6, %c0_56, %c0_57] : memref<9x128x128xbf16, #tpu.memory_space<vmem>>, vector<1x128x128xbf16>
    %109 = vector.shape_cast %108 : vector<1x128x128xbf16> to vector<128x128xbf16>
    %cst_58 = arith.constant dense<0.000000e+00> : vector<64x128xf32>
    %110 = tpu.matmul %107, %109, %cst_58 {dimension_numbers = #tpu.dot_dimension_numbers<[1], [0], [0], [1], [0, 0, 1, 1], [], []>} : vector<64x128xbf16>, vector<128x128xbf16>, vector<64x128xf32> -> vector<64x128xf32>
    %111 = arith.addf %100, %110 : vector<64x128xf32>
    %112 = arith.truncf %21 : vector<64x128xf32> to vector<64x128xbf16>
    %c7 = arith.constant 7 : index
    %c0_59 = arith.constant 0 : index
    %c0_60 = arith.constant 0 : index
    %113 = vector.load %arg4[%c7, %c0_59, %c0_60] : memref<9x128x128xbf16, #tpu.memory_space<vmem>>, vector<1x128x128xbf16>
    %114 = vector.shape_cast %113 : vector<1x128x128xbf16> to vector<128x128xbf16>
    %cst_61 = arith.constant dense<0.000000e+00> : vector<64x128xf32>
    %115 = tpu.matmul %112, %114, %cst_61 {dimension_numbers = #tpu.dot_dimension_numbers<[1], [0], [0], [1], [0, 0, 1, 1], [], []>} : vector<64x128xbf16>, vector<128x128xbf16>, vector<64x128xf32> -> vector<64x128xf32>
    %116 = arith.addf %111, %115 : vector<64x128xf32>
    %117 = arith.truncf %23 : vector<64x128xf32> to vector<64x128xbf16>
    %c8 = arith.constant 8 : index
    %c0_62 = arith.constant 0 : index
    %c0_63 = arith.constant 0 : index
    %118 = vector.load %arg4[%c8, %c0_62, %c0_63] : memref<9x128x128xbf16, #tpu.memory_space<vmem>>, vector<1x128x128xbf16>
    %119 = vector.shape_cast %118 : vector<1x128x128xbf16> to vector<128x128xbf16>
    %cst_64 = arith.constant dense<0.000000e+00> : vector<64x128xf32>
    %120 = tpu.matmul %117, %119, %cst_64 {dimension_numbers = #tpu.dot_dimension_numbers<[1], [0], [0], [1], [0, 0, 1, 1], [], []>} : vector<64x128xbf16>, vector<128x128xbf16>, vector<64x128xf32> -> vector<64x128xf32>
    %121 = arith.addf %116, %120 : vector<64x128xf32>
    %c0_65 = arith.constant 0 : index
    %c0_66 = arith.constant 0 : index
    %122 = vector.load %arg5[%c0_65, %c0_66] : memref<1x128xf32, #tpu.memory_space<vmem>>, vector<1x128xf32>
    %123 = vector.shape_cast %122 : vector<1x128xf32> to vector<128xf32>
    %124 = vector.shape_cast %123 : vector<128xf32> to vector<1x128xf32>
    %125 = vector.broadcast %124 : vector<1x128xf32> to vector<64x128xf32>
    %126 = arith.addf %121, %125 : vector<64x128xf32>
    %cst_67 = arith.constant 0.000000e+00 : f32
    %127 = vector.broadcast %cst_67 : f32 to vector<64x128xf32>
    %128 = arith.maximumf %126, %127 : vector<64x128xf32>
    %129 = tpu.iota {dimensions = array<i32: 0>} : vector<64x1xi32>
    %c8_i32_68 = arith.constant 8 : i32
    %c0_i32_69 = arith.constant 0 : i32
    %130 = arith.cmpi eq, %c8_i32_68, %c0_i32_69 : i32
    %c1_i32_70 = arith.constant 1 : i32
    %131 = arith.select %130, %c1_i32_70, %c8_i32_68 : i32
    %132 = vector.broadcast %131 : i32 to vector<64x1xi32>
    %133 = arith.remsi %129, %132 : vector<64x1xi32>
    %c0_i32_71 = arith.constant 0 : i32
    %134 = vector.broadcast %c0_i32_71 : i32 to vector<64x1xi32>
    %135 = arith.cmpi ne, %133, %134 : vector<64x1xi32>
    %c0_i32_72 = arith.constant 0 : i32
    %136 = vector.broadcast %c0_i32_72 : i32 to vector<64x1xi32>
    %137 = arith.cmpi slt, %133, %136 : vector<64x1xi32>
    %c0_i32_73 = arith.constant 0 : i32
    %138 = arith.cmpi slt, %131, %c0_i32_73 : i32
    %139 = vector.broadcast %138 : i1 to vector<64x1xi1>
    %140 = vector.broadcast %139 : vector<64x1xi1> to vector<64x1xi1>
    %141 = arith.xori %137, %140 : vector<64x1xi1>
    %142 = arith.andi %141, %135 : vector<64x1xi1>
    %143 = vector.broadcast %131 : i32 to vector<64x1xi32>
    %144 = arith.addi %133, %143 : vector<64x1xi32>
    %145 = arith.select %142, %144, %133 : vector<64x1xi1>, vector<64x1xi32>
    %c8_i32_74 = arith.constant 8 : i32
    %146 = vector.broadcast %c8_i32_74 : i32 to vector<64x1xi32>
    %147 = arith.cmpi sge, %129, %146 : vector<64x1xi32>
    %c56_i32 = arith.constant 56 : i32
    %148 = vector.broadcast %c56_i32 : i32 to vector<64x1xi32>
    %149 = arith.cmpi slt, %129, %148 : vector<64x1xi32>
    %c1_i32_75 = arith.constant 1 : i32
    %150 = vector.broadcast %c1_i32_75 : i32 to vector<64x1xi32>
    %151 = arith.cmpi sge, %145, %150 : vector<64x1xi32>
    %c6_i32 = arith.constant 6 : i32
    %152 = vector.broadcast %c6_i32 : i32 to vector<64x1xi32>
    %153 = arith.cmpi sle, %145, %152 : vector<64x1xi32>
    %cst_76 = arith.constant 0.000000e+00 : f32
    %154 = vector.broadcast %cst_76 : f32 to vector<64x128xf32>
    %155 = arith.andi %147, %151 : vector<64x1xi1>
    %c9_i32_77 = arith.constant 9 : i32
    %156 = tpu.dynamic_rotate %128 by %c9_i32_77 dim 0 : vector<64x128xf32>, i32 -> vector<64x128xf32>
    %157 = arith.truncf %156 : vector<64x128xf32> to vector<64x128xbf16>
    %c0_i32_78 = arith.constant 0 : i32
    %158 = arith.sitofp %c0_i32_78 : i32 to bf16
    %159 = vector.shape_cast %155 : vector<64x1xi1> to vector<64x1xi1>
    %160 = vector.broadcast %159 : vector<64x1xi1> to vector<64x128xi1>
    %161 = vector.broadcast %158 : bf16 to vector<64x128xbf16>
    %162 = arith.select %160, %157, %161 : vector<64x128xi1>, vector<64x128xbf16>
    %c0_79 = arith.constant 0 : index
    %c0_80 = arith.constant 0 : index
    %c0_81 = arith.constant 0 : index
    %163 = vector.load %arg6[%c0_79, %c0_80, %c0_81] : memref<9x128x128xbf16, #tpu.memory_space<vmem>>, vector<1x128x128xbf16>
    %164 = vector.shape_cast %163 : vector<1x128x128xbf16> to vector<128x128xbf16>
    %cst_82 = arith.constant dense<0.000000e+00> : vector<64x128xf32>
    %165 = tpu.matmul %162, %164, %cst_82 {dimension_numbers = #tpu.dot_dimension_numbers<[1], [0], [0], [1], [0, 0, 1, 1], [], []>} : vector<64x128xbf16>, vector<128x128xbf16>, vector<64x128xf32> -> vector<64x128xf32>
    %166 = arith.addf %154, %165 : vector<64x128xf32>
    %c8_i32_83 = arith.constant 8 : i32
    %167 = tpu.dynamic_rotate %128 by %c8_i32_83 dim 0 : vector<64x128xf32>, i32 -> vector<64x128xf32>
    %168 = arith.truncf %167 : vector<64x128xf32> to vector<64x128xbf16>
    %c0_i32_84 = arith.constant 0 : i32
    %169 = arith.sitofp %c0_i32_84 : i32 to bf16
    %170 = vector.shape_cast %147 : vector<64x1xi1> to vector<64x1xi1>
    %171 = vector.broadcast %170 : vector<64x1xi1> to vector<64x128xi1>
    %172 = vector.broadcast %169 : bf16 to vector<64x128xbf16>
    %173 = arith.select %171, %168, %172 : vector<64x128xi1>, vector<64x128xbf16>
    %c1_85 = arith.constant 1 : index
    %c0_86 = arith.constant 0 : index
    %c0_87 = arith.constant 0 : index
    %174 = vector.load %arg6[%c1_85, %c0_86, %c0_87] : memref<9x128x128xbf16, #tpu.memory_space<vmem>>, vector<1x128x128xbf16>
    %175 = vector.shape_cast %174 : vector<1x128x128xbf16> to vector<128x128xbf16>
    %cst_88 = arith.constant dense<0.000000e+00> : vector<64x128xf32>
    %176 = tpu.matmul %173, %175, %cst_88 {dimension_numbers = #tpu.dot_dimension_numbers<[1], [0], [0], [1], [0, 0, 1, 1], [], []>} : vector<64x128xbf16>, vector<128x128xbf16>, vector<64x128xf32> -> vector<64x128xf32>
    %177 = arith.addf %166, %176 : vector<64x128xf32>
    %178 = arith.andi %147, %153 : vector<64x1xi1>
    %c7_i32 = arith.constant 7 : i32
    %179 = tpu.dynamic_rotate %128 by %c7_i32 dim 0 : vector<64x128xf32>, i32 -> vector<64x128xf32>
    %180 = arith.truncf %179 : vector<64x128xf32> to vector<64x128xbf16>
    %c0_i32_89 = arith.constant 0 : i32
    %181 = arith.sitofp %c0_i32_89 : i32 to bf16
    %182 = vector.shape_cast %178 : vector<64x1xi1> to vector<64x1xi1>
    %183 = vector.broadcast %182 : vector<64x1xi1> to vector<64x128xi1>
    %184 = vector.broadcast %181 : bf16 to vector<64x128xbf16>
    %185 = arith.select %183, %180, %184 : vector<64x128xi1>, vector<64x128xbf16>
    %c2_90 = arith.constant 2 : index
    %c0_91 = arith.constant 0 : index
    %c0_92 = arith.constant 0 : index
    %186 = vector.load %arg6[%c2_90, %c0_91, %c0_92] : memref<9x128x128xbf16, #tpu.memory_space<vmem>>, vector<1x128x128xbf16>
    %187 = vector.shape_cast %186 : vector<1x128x128xbf16> to vector<128x128xbf16>
    %cst_93 = arith.constant dense<0.000000e+00> : vector<64x128xf32>
    %188 = tpu.matmul %185, %187, %cst_93 {dimension_numbers = #tpu.dot_dimension_numbers<[1], [0], [0], [1], [0, 0, 1, 1], [], []>} : vector<64x128xbf16>, vector<128x128xbf16>, vector<64x128xf32> -> vector<64x128xf32>
    %189 = arith.addf %177, %188 : vector<64x128xf32>
    %c1_i32_94 = arith.constant 1 : i32
    %190 = tpu.dynamic_rotate %128 by %c1_i32_94 dim 0 : vector<64x128xf32>, i32 -> vector<64x128xf32>
    %191 = arith.truncf %190 : vector<64x128xf32> to vector<64x128xbf16>
    %c0_i32_95 = arith.constant 0 : i32
    %192 = arith.sitofp %c0_i32_95 : i32 to bf16
    %193 = vector.shape_cast %151 : vector<64x1xi1> to vector<64x1xi1>
    %194 = vector.broadcast %193 : vector<64x1xi1> to vector<64x128xi1>
    %195 = vector.broadcast %192 : bf16 to vector<64x128xbf16>
    %196 = arith.select %194, %191, %195 : vector<64x128xi1>, vector<64x128xbf16>
    %c3_96 = arith.constant 3 : index
    %c0_97 = arith.constant 0 : index
    %c0_98 = arith.constant 0 : index
    %197 = vector.load %arg6[%c3_96, %c0_97, %c0_98] : memref<9x128x128xbf16, #tpu.memory_space<vmem>>, vector<1x128x128xbf16>
    %198 = vector.shape_cast %197 : vector<1x128x128xbf16> to vector<128x128xbf16>
    %cst_99 = arith.constant dense<0.000000e+00> : vector<64x128xf32>
    %199 = tpu.matmul %196, %198, %cst_99 {dimension_numbers = #tpu.dot_dimension_numbers<[1], [0], [0], [1], [0, 0, 1, 1], [], []>} : vector<64x128xbf16>, vector<128x128xbf16>, vector<64x128xf32> -> vector<64x128xf32>
    %200 = arith.addf %189, %199 : vector<64x128xf32>
    %201 = arith.truncf %128 : vector<64x128xf32> to vector<64x128xbf16>
    %c4_100 = arith.constant 4 : index
    %c0_101 = arith.constant 0 : index
    %c0_102 = arith.constant 0 : index
    %202 = vector.load %arg6[%c4_100, %c0_101, %c0_102] : memref<9x128x128xbf16, #tpu.memory_space<vmem>>, vector<1x128x128xbf16>
    %203 = vector.shape_cast %202 : vector<1x128x128xbf16> to vector<128x128xbf16>
    %cst_103 = arith.constant dense<0.000000e+00> : vector<64x128xf32>
    %204 = tpu.matmul %201, %203, %cst_103 {dimension_numbers = #tpu.dot_dimension_numbers<[1], [0], [0], [1], [0, 0, 1, 1], [], []>} : vector<64x128xbf16>, vector<128x128xbf16>, vector<64x128xf32> -> vector<64x128xf32>
    %205 = arith.addf %200, %204 : vector<64x128xf32>
    %c63_i32 = arith.constant 63 : i32
    %206 = tpu.dynamic_rotate %128 by %c63_i32 dim 0 : vector<64x128xf32>, i32 -> vector<64x128xf32>
    %207 = arith.truncf %206 : vector<64x128xf32> to vector<64x128xbf16>
    %c0_i32_104 = arith.constant 0 : i32
    %208 = arith.sitofp %c0_i32_104 : i32 to bf16
    %209 = vector.shape_cast %153 : vector<64x1xi1> to vector<64x1xi1>
    %210 = vector.broadcast %209 : vector<64x1xi1> to vector<64x128xi1>
    %211 = vector.broadcast %208 : bf16 to vector<64x128xbf16>
    %212 = arith.select %210, %207, %211 : vector<64x128xi1>, vector<64x128xbf16>
    %c5_105 = arith.constant 5 : index
    %c0_106 = arith.constant 0 : index
    %c0_107 = arith.constant 0 : index
    %213 = vector.load %arg6[%c5_105, %c0_106, %c0_107] : memref<9x128x128xbf16, #tpu.memory_space<vmem>>, vector<1x128x128xbf16>
    %214 = vector.shape_cast %213 : vector<1x128x128xbf16> to vector<128x128xbf16>
    %cst_108 = arith.constant dense<0.000000e+00> : vector<64x128xf32>
    %215 = tpu.matmul %212, %214, %cst_108 {dimension_numbers = #tpu.dot_dimension_numbers<[1], [0], [0], [1], [0, 0, 1, 1], [], []>} : vector<64x128xbf16>, vector<128x128xbf16>, vector<64x128xf32> -> vector<64x128xf32>
    %216 = arith.addf %205, %215 : vector<64x128xf32>
    %217 = arith.andi %149, %151 : vector<64x1xi1>
    %c57_i32 = arith.constant 57 : i32
    %218 = tpu.dynamic_rotate %128 by %c57_i32 dim 0 : vector<64x128xf32>, i32 -> vector<64x128xf32>
    %219 = arith.truncf %218 : vector<64x128xf32> to vector<64x128xbf16>
    %c0_i32_109 = arith.constant 0 : i32
    %220 = arith.sitofp %c0_i32_109 : i32 to bf16
    %221 = vector.shape_cast %217 : vector<64x1xi1> to vector<64x1xi1>
    %222 = vector.broadcast %221 : vector<64x1xi1> to vector<64x128xi1>
    %223 = vector.broadcast %220 : bf16 to vector<64x128xbf16>
    %224 = arith.select %222, %219, %223 : vector<64x128xi1>, vector<64x128xbf16>
    %c6_110 = arith.constant 6 : index
    %c0_111 = arith.constant 0 : index
    %c0_112 = arith.constant 0 : index
    %225 = vector.load %arg6[%c6_110, %c0_111, %c0_112] : memref<9x128x128xbf16, #tpu.memory_space<vmem>>, vector<1x128x128xbf16>
    %226 = vector.shape_cast %225 : vector<1x128x128xbf16> to vector<128x128xbf16>
    %cst_113 = arith.constant dense<0.000000e+00> : vector<64x128xf32>
    %227 = tpu.matmul %224, %226, %cst_113 {dimension_numbers = #tpu.dot_dimension_numbers<[1], [0], [0], [1], [0, 0, 1, 1], [], []>} : vector<64x128xbf16>, vector<128x128xbf16>, vector<64x128xf32> -> vector<64x128xf32>
    %228 = arith.addf %216, %227 : vector<64x128xf32>
    %c56_i32_114 = arith.constant 56 : i32
    %229 = tpu.dynamic_rotate %128 by %c56_i32_114 dim 0 : vector<64x128xf32>, i32 -> vector<64x128xf32>
    %230 = arith.truncf %229 : vector<64x128xf32> to vector<64x128xbf16>
    %c0_i32_115 = arith.constant 0 : i32
    %231 = arith.sitofp %c0_i32_115 : i32 to bf16
    %232 = vector.shape_cast %149 : vector<64x1xi1> to vector<64x1xi1>
    %233 = vector.broadcast %232 : vector<64x1xi1> to vector<64x128xi1>
    %234 = vector.broadcast %231 : bf16 to vector<64x128xbf16>
    %235 = arith.select %233, %230, %234 : vector<64x128xi1>, vector<64x128xbf16>
    %c7_116 = arith.constant 7 : index
    %c0_117 = arith.constant 0 : index
    %c0_118 = arith.constant 0 : index
    %236 = vector.load %arg6[%c7_116, %c0_117, %c0_118] : memref<9x128x128xbf16, #tpu.memory_space<vmem>>, vector<1x128x128xbf16>
    %237 = vector.shape_cast %236 : vector<1x128x128xbf16> to vector<128x128xbf16>
    %cst_119 = arith.constant dense<0.000000e+00> : vector<64x128xf32>
    %238 = tpu.matmul %235, %237, %cst_119 {dimension_numbers = #tpu.dot_dimension_numbers<[1], [0], [0], [1], [0, 0, 1, 1], [], []>} : vector<64x128xbf16>, vector<128x128xbf16>, vector<64x128xf32> -> vector<64x128xf32>
    %239 = arith.addf %228, %238 : vector<64x128xf32>
    %240 = arith.andi %149, %153 : vector<64x1xi1>
    %c55_i32 = arith.constant 55 : i32
    %241 = tpu.dynamic_rotate %128 by %c55_i32 dim 0 : vector<64x128xf32>, i32 -> vector<64x128xf32>
    %242 = arith.truncf %241 : vector<64x128xf32> to vector<64x128xbf16>
    %c0_i32_120 = arith.constant 0 : i32
    %243 = arith.sitofp %c0_i32_120 : i32 to bf16
    %244 = vector.shape_cast %240 : vector<64x1xi1> to vector<64x1xi1>
    %245 = vector.broadcast %244 : vector<64x1xi1> to vector<64x128xi1>
    %246 = vector.broadcast %243 : bf16 to vector<64x128xbf16>
    %247 = arith.select %245, %242, %246 : vector<64x128xi1>, vector<64x128xbf16>
    %c8_121 = arith.constant 8 : index
    %c0_122 = arith.constant 0 : index
    %c0_123 = arith.constant 0 : index
    %248 = vector.load %arg6[%c8_121, %c0_122, %c0_123] : memref<9x128x128xbf16, #tpu.memory_space<vmem>>, vector<1x128x128xbf16>
    %249 = vector.shape_cast %248 : vector<1x128x128xbf16> to vector<128x128xbf16>
    %cst_124 = arith.constant dense<0.000000e+00> : vector<64x128xf32>
    %250 = tpu.matmul %247, %249, %cst_124 {dimension_numbers = #tpu.dot_dimension_numbers<[1], [0], [0], [1], [0, 0, 1, 1], [], []>} : vector<64x128xbf16>, vector<128x128xbf16>, vector<64x128xf32> -> vector<64x128xf32>
    %251 = arith.addf %239, %250 : vector<64x128xf32>
    %252 = arith.truncf %17 : vector<64x128xf32> to vector<64x128xbf16>
    %c0_125 = arith.constant 0 : index
    %c0_126 = arith.constant 0 : index
    %253 = vector.load %arg7[%c0_125, %c0_126] : memref<128x128xbf16, #tpu.memory_space<vmem>>, vector<128x128xbf16>
    %cst_127 = arith.constant dense<0.000000e+00> : vector<64x128xf32>
    %254 = tpu.matmul %252, %253, %cst_127 {dimension_numbers = #tpu.dot_dimension_numbers<[1], [0], [0], [1], [0, 0, 1, 1], [], []>} : vector<64x128xbf16>, vector<128x128xbf16>, vector<64x128xf32> -> vector<64x128xf32>
    %255 = arith.addf %251, %254 : vector<64x128xf32>
    %256 = vector.shape_cast %255 : vector<64x128xf32> to vector<1x8x8x128xf32>
    %257 = arith.truncf %256 : vector<1x8x8x128xf32> to vector<1x8x8x128xbf16>
    %c0_128 = arith.constant 0 : index
    %c0_129 = arith.constant 0 : index
    %c0_130 = arith.constant 0 : index
    %c0_131 = arith.constant 0 : index
    %258 = vector.load %arg8[%c0_128, %c0_129, %c0_130, %c0_131] : memref<1x8x8x128xbf16, #tpu.memory_space<vmem>>, vector<1x8x8x128xbf16>
    tpu.vector_store %arg8[%c0_128, %c0_129, %c0_130, %c0_131], %257 {strides = array<i32>} : memref<1x8x8x128xbf16, #tpu.memory_space<vmem>>, vector<1x8x8x128xbf16>,
    return
  }
  func.func @transform_0(%arg0: i32) -> (i32, i32, i32, i32) {
    %c0_i32 = arith.constant 0 : i32
    %c0_i32_0 = arith.constant 0 : i32
    %c0_i32_1 = arith.constant 0 : i32
    %c0_i32_2 = arith.constant 0 : i32
    return %arg0, %c0_i32, %c0_i32_0, %c0_i32_1 : i32, i32, i32, i32
  }
  func.func @transform_1(%arg0: i32) -> (i32, i32) {
    %c0_i32 = arith.constant 0 : i32
    %c0_i32_0 = arith.constant 0 : i32
    %c0_i32_1 = arith.constant 0 : i32
    return %c0_i32, %c0_i32_0 : i32, i32
  }
  func.func @transform_2(%arg0: i32) -> (i32, i32) {
    %c0_i32 = arith.constant 0 : i32
    %c0_i32_0 = arith.constant 0 : i32
    %c0_i32_1 = arith.constant 0 : i32
    return %c0_i32, %c0_i32_0 : i32, i32
  }
  func.func @transform_3(%arg0: i32) -> (i32, i32, i32) {
    %c0_i32 = arith.constant 0 : i32
    %c0_i32_0 = arith.constant 0 : i32
    %c0_i32_1 = arith.constant 0 : i32
    %c0_i32_2 = arith.constant 0 : i32
    return %c0_i32, %c0_i32_0, %c0_i32_1 : i32, i32, i32
  }
  func.func @transform_4(%arg0: i32) -> (i32, i32) {
    %c0_i32 = arith.constant 0 : i32
    %c0_i32_0 = arith.constant 0 : i32
    %c0_i32_1 = arith.constant 0 : i32
    return %c0_i32, %c0_i32_0 : i32, i32
  }
  func.func @transform_5(%arg0: i32) -> (i32, i32, i32) {
    %c0_i32 = arith.constant 0 : i32
    %c0_i32_0 = arith.constant 0 : i32
    %c0_i32_1 = arith.constant 0 : i32
    %c0_i32_2 = arith.constant 0 : i32
    return %c0_i32, %c0_i32_0, %c0_i32_1 : i32, i32, i32
  }
  func.func @transform_6(%arg0: i32) -> (i32, i32) {
    %c0_i32 = arith.constant 0 : i32
    %c0_i32_0 = arith.constant 0 : i32
    %c0_i32_1 = arith.constant 0 : i32
    return %c0_i32, %c0_i32_0 : i32, i32
  }
  func.func @transform_7(%arg0: i32) -> (i32, i32, i32, i32) {
    %c0_i32 = arith.constant 0 : i32
    %c0_i32_0 = arith.constant 0 : i32
    %c0_i32_1 = arith.constant 0 : i32
    %c0_i32_2 = arith.constant 0 : i32
    return %arg0, %c0_i32, %c0_i32_0, %c0_i32_1 : i32, i32, i32, i32
  }
}

</mosaic_0001>

<bundles_post_ra>
// kernel: tpu_custom_call.1
= control target key start
LH: loop header
LB: loop body
LE: loop exit
PB: predicated region body
PF: predicated region fallthrough
CT: control target
= control target key end

     0   :  { %s6272_s0 = inlined_call_operand.hbm [shape: bf16[2,16,16,128], index: 0, kind: input, shape index: {}]   ;;  %s6273_s1 = inlined_call_operand.hbm [shape: f32[1,128], index: 1, kind: input, shape index: {}]   ;;  %s6274_s2 = inlined_call_operand.vmem [shape: f32[1,128], index: 2, kind: input, shape index: {}]   ;;  %s6275_s3 = inlined_call_operand.hbm [shape: bf16[9,128,128], index: 3, kind: input, shape index: {}]   ;;  %s6276_s4 = inlined_call_operand.vmem [shape: f32[1,128], index: 4, kind: input, shape index: {}]   ;;  %s6277_s5 = inlined_call_operand.hbm [shape: bf16[9,128,128], index: 5, kind: input, shape index: {}]   ;;  %s6278_s6 = inlined_call_operand.hbm [shape: bf16[128,128], index: 6, kind: input, shape index: {}]   ;;  %s6279_s7 = inlined_call_operand.hbm [shape: bf16[2,8,8,128], index: 7, kind: output, shape index: {}]  }
   0x1   :  { %6327 = sst [smem:[#allocation35_spill]] %s6273_s1 }
   0x2   :  { %12 = vsyncpa [#allocation4], 0 }
   0x3   :  { %14 = vsyncpa [#allocation4 + $0x1], 0 }
   0x4   :  { %15 = vsyncpa [#allocation7], 0 }
   0x5   :  { %16 = vsyncpa [#allocation10], 0 }
   0x6   :  { %17 = vsyncpa [#allocation5], 0 }
   0x7   :  { %19 = vsyncpa [#allocation5 + $0x1], 0  ;;  %s4909_s24 = smov 0   ;;  %s4911_s25 = smov 0  }
   0x8   :  { %s4913_s26 = smov 0   ;;  %s4915_s27 = smov 0  }
   0x9 LB: > { %s4930_s28 = sadd.s32 4294967295, %s4857_s27   ;;  %s3627_s29 = sadd.s32 4294967294, %s4857_s27   ;;  %s4857_s27 = sphi %s4915_s27, %s6494_s27   ;;  %s4853_s26 = sphi %s4913_s26, %s6493_s26   ;;  %s4849_s25 = sphi %s4911_s25, %s6492_s25   ;;  %s4845_s24 = sphi %s4909_s24, %s6491_s24  }
   0xa   : > { %p45_p0 = scmp.ne.s32.totalorder %s4849_s25, %s4845_s24  ;;  %p46_p1 = scmp.eq.s32.totalorder %s4930_s28, 0 }
   0xb   : > { %p195_p2 = scmp.eq.s32.totalorder %s4930_s28, 1  ;;  %p201_p3 = scmp.eq.s32.totalorder %s3627_s29, 1 }
   0xc   : > { %p4939_p4 = por %p46_p1, %p45_p0  ;;  %p3628_p5 = scmp.ge.s32.totalorder %s4857_s27, 1 }
   0xd   : > { %p4944_p6 = por %p201_p3, %p45_p0  ;;  %p208_p7 = scmp.lt.s32.totalorder %s4857_s27, 3 }
   0xe   : > { %s6330_s1 = sld [smem:[#allocation35_spill]]  ;;  %s4859_s13 = smov [#allocation6]  }
   0xf   : > { %p4952_p8 = pnand %p3628_p5, %p208_p7  ;;  %s222_s14 = sshll.u32 %s4859_s13, 4  ;;  %s223_s14 = int_to_ptr.vmem [resolvable:$true] %s222_s14 }
  0x10   : > { %s251_s18 = sshll.u32 %s6277_s5, 4  ;;  %s4860_s19 = smov [#allocation9]   ;;  %s252_s18 = int_to_ptr.hbm [resolvable:$true] %s251_s18 }
  0x11   : > { %p4557_p10 = pneg %p4952_p8  ;;  %s253_s20 = sshll.u32 %s4860_s19, 4  ;;  %s254_s20 = int_to_ptr.vmem [resolvable:$true] %s253_s20 }
  0x12   : > { %s234_s23 = sshll.u32 %s6275_s3, 4  ;;  %s6280_s29 = smov 64   ;;  %s235_s23 = int_to_ptr.hbm [resolvable:$true] %s234_s23 }
  0x13   : > { %p4961_p11 = pnand %p4557_p10, %p46_p1  ;;  %s6281_s9 = smov 4  }
  0x14   : > { %s220_s11 = sshll.u32 %s6330_s1, 4  ;;  %s265_s13 = sshll.u32 %s6278_s6, 4  ;;  %s221_s11 = int_to_ptr.hbm [resolvable:$true] %s220_s11  ;;  %s266_s13 = int_to_ptr.hbm [resolvable:$true] %s265_s13 }
  0x15   : > { %4560 = dma.hbm_to_vmem [thread:$0]  (!%p4961_p11), %s221_s11, 16, %s223_s14, [#allocation7]  }
  0x16   : > { %4566 = dma.hbm_to_vmem [thread:$0]  (!%p4961_p11), %s252_s18, 9216, %s254_s20, [#allocation10], %s6280_s29, %s6280_s29, %s6281_s9  }
  0x17   : > { %s4863_s14 = smov [#allocation8]   ;;  %s4864_s17 = smov [#allocation11]  }
  0x18   : > { %s236_s16 = sshll.u32 %s4863_s14, 4  ;;  %s267_s18 = sshll.u32 %s4864_s17, 4  ;;  %s237_s16 = int_to_ptr.vmem [resolvable:$true] %s236_s16  ;;  %s268_s18 = int_to_ptr.vmem [resolvable:$true] %s267_s18 }
  0x19   : > { %4563 = dma.hbm_to_vmem [thread:$0]  (!%p4961_p11), %s235_s23, 9216, %s237_s16, [#allocation7], %s6280_s29, %s6280_s29, %s6281_s9  }
  0x1a   : > { %4569 = dma.hbm_to_vmem [thread:$0]  (!%p4961_p11), %s266_s13, 1024, %s268_s18, [#allocation10], %s6280_s29, %s6280_s29, %s6281_s9  }
  0x1b   : > { %s4992_s19 = sadd.s32 1, %s4857_s27   ;;  %s32_s20 = sadd.s32 1, %s4853_s26 }
  0x1c   : > { %s29_s21 = ssub.s32 %s4857_s27, %s4992_s19  ;;  %p39_p12 = scmp.ne.s32.totalorder %s4853_s26, %s4849_s25 }
  0x1d   : > { %p30_p13 = scmp.eq.s32.totalorder %s29_s21, 0  ;;  %p40_p0 = scmp.eq.s32.totalorder %s4857_s27, 0 }
  0x1e   : > { %p5002_p3 = por %p195_p2, %p39_p12  ;;  %p4582_p5 = scmp.lt.s32.totalorder %s4857_s27, 2 }
  0x1f   : > { %s5008_s23 = scalar_select %p30_p13, %s4853_s26, %s32_s20  }
  0x20   : > { %p41_p7 = por %p40_p0, %p39_p12  ;;  %s281_s15 = sand.u32 1, %s4853_s26  }
  0x21   : > { %s3634_s10 = sshll.u32 %s281_s15, 7  ;;  %s4257_s11 = sshll.u32 %s4857_s27, 7 }
  0x22   : > { %s290_s16 = scalar_lea.hbm %s6272_s0, %s4257_s11  ;;  %s285_s17 = scalar_lea.vmem [#allocation3], %s3634_s10 }
  0x23   : > { %s293_s18 = sshll.u32 %s285_s17, 4  ;;  %s291_s21 = sshll.u32 %s290_s16, 4  ;;  %s294_s18 = int_to_ptr.vmem [resolvable:$true] %s293_s18  ;;  %s292_s21 = int_to_ptr.hbm [resolvable:$true] %s291_s21 }
  0x24   : > { %p5015_p2 = pnand %p4582_p5, %p41_p7  ;;  %s282_s20 = scalar_lea.sflag [#allocation4], %s281_s15 }
  0x25   : > { %s4753_s9 = sshra.s32 %s292_s21, 4  ;;  %s4760_s13 = scalar_lea.hbm %s6272_s0, 256  ;;  %s4754_s9 = int_to_ptr.hbm [resolvable:$true] %s4753_s9 }
  0x26   : > { %s4755_s1 = scalar_lea.hbm %s4754_s9, 128  ;;  %p4757_p11 = pneg %p5015_p2 }
  0x27   : > { %p4756_p10 = scmp.ne.s32.totalorder %s4754_s9, %s4755_s1  ;;  %p4761_p0 = scmp.lt.s32.totalorder %s4754_s9, %s6272_s0 }
  0x28   : > { %p4762_p5 = scmp.lt.s32.totalorder %s4760_s13, %s4755_s1 }
  0x29   : > { %p4758_p12 = pnand %p4757_p11, %p4756_p10 }
  0x2a   : > { %p4763_p7 = por %p4762_p5, %p4761_p0 }
  0x2b   : > { %p4759_p13 = pneg %p4758_p12 }
  0x2d   : > { %p4764_p9 = pnand %p4763_p7, %p4759_p13 }
  0x2f   : > { %4767 = shalt.err (!%p4764_p9)
}
  0x30   : > { %s6335_s15 = smov 4   ;;  %s6336_s17 = smov 64  }
  0x31   : > { %4573 = dma.hbm_to_vmem [thread:$0]  (!%p5015_p2), %s292_s21, 2048, %s294_s18, %s282_s20, %s6336_s17, %s6336_s17, %s6335_s15  }
  0x32   : > { %305 = sbr.rel (%p4952_p8) target bundleno = 720 (0x2d0), region = 48 }
  0x37   : > { %s5035_s11 = sand.u32 1, %s4849_s25  }
  0x38   : > { %s3638_s9 = sshll.u32 %s5035_s11, 7  ;;  %s308_s1 = scalar_lea.sflag [#allocation4], %s5035_s11 }
  0x39   : > { %s5039_s10 = scalar_lea.vmem [#allocation3], %s3638_s9 }
  0x3a   : > { %4828 = dma.done.wait (%p4939_p4), %s308_s1, 2048  }
  0x3b   : > { %4830 = vsyncadd (%p4939_p4), %s308_s1, 4294965248 }
  0x3c   : > { %4832 = dma.done.wait (%p46_p1), [#allocation7], 9232  }
  0x3d   : > { %4834 = vsyncadd (%p46_p1), [#allocation7], 4294958064 }
  0x3e   : > { %4836 = dma.done.wait (%p46_p1), [#allocation10], 10240  }
  0x3f   : > { %4838 = vsyncadd (%p46_p1), [#allocation10], 4294957056  ;;  %v627_v0 = vlaneseq  ;;  %v4273_v1 = vld [vmem:[#allocation8 + $0x78] sm:$0xff]  ;;  %v4272_v4 = vld [vmem:[#allocation8 + $0x70] sm:$0xff]  ;;  %vm4865_vm2 = vmmov 1   ;;  %vm4866_vm4 = vmmov 0  }
  0x40   : > { %v4265_v2 = vld [vmem:[#allocation8 + $0x38] sm:$0xff]  ;;  %958 = vmatpush.bf16.msra.mxu0 %v4273_v1  ;;  %4513 = vmatpush.bf16.msra.mxu3 %v4273_v1  ;;  %v4264_v6 = vld [vmem:[#allocation8 + $0x30] sm:$0xff]  ;;  %v4271_v8 = vld [vmem:[#allocation8 + $0x68] sm:$0xff]  ;;  %s3643_s21 = sshll.u32 %s5035_s11, 5  ;;  %s4410_s13 = sshll.u32 %s4930_s28, 5 }
  0x41   : > { %v4281_v3 = vld [vmem:[#allocation8 + $0xb8] sm:$0xff]  ;;  %v5053_v5 = vshrl.u32 %v627_v0, 7  ;;  %1059 = vmatpush.bf16.msra.mxu1 %v4265_v2  ;;  %v4280_v7 = vld [vmem:[#allocation8 + $0xb0] sm:$0xff]  ;;  %v4263_v10 = vld [vmem:[#allocation8 + $0x28] sm:$0xff]  ;;  %s6227_s20 = scalar_lea.vmem [#allocation12], %s3643_s21  ;;  %s3497_s15 = scalar_lea.hbm %s6279_s7, %s4410_s13 }
  0x42   : > { %1193 = vmatpush.bf16.msra.mxu2 %v4281_v3  ;;  %v4279_v11 = vld [vmem:[#allocation8 + $0xa8] sm:$0xff]  ;;  %v4509_v13 = vld [vmem:[%s5039_s10 + $0x78] sm:$0xff]   ;;  %v5060_v18 = vld [vmem:[#allocation6] ss:$0 sm:$0xff]  ;;  %s3498_s17 = sshll.u32 %s6227_s20, 4  ;;  %s3500_s9 = sshll.u32 %s3497_s15, 4  ;;  %s3499_s17 = int_to_ptr.vmem [resolvable:$true] %s3498_s17  ;;  %s3501_s9 = int_to_ptr.hbm [resolvable:$true] %s3500_s9 }
  0x43   : > { %v5056_v9 = vadd.s32 8, %v5053_v5  ;;  %v4495_v12 = vld [vmem:[%s5039_s10 + $0x8] sm:$0xff]   ;;  %v4473_v16 = vunpack.c.l.bf16 %v4509_v13  ;;  %v4474_v17 = vunpack.c.h.bf16 %v4509_v13  ;;  %v5065_v19 = vld [vmem:[%s6274_s2] ss:$0 sm:$0xff]  ;;  %v4501_v21 = vld [vmem:[%s5039_s10 + $0x38] sm:$0xff]   ;;  %vm6315_vm1 = vcmp.lt.s32.totalorder %v5053_v5, 1 }
  0x44   : > { %959 = vmatpush.bf16.msra.mxu0 %v4272_v4  ;;  %4514 = vmatpush.bf16.msra.mxu3 %v4272_v4  ;;  %v4417_v14 = vunpack.c.l.bf16 %v4495_v12  ;;  %v4418_v15 = vunpack.c.h.bf16 %v4495_v12  ;;  %v4270_v20 = vld [vmem:[#allocation8 + $0x60] sm:$0xff]  ;;  %v4441_v29 = vunpack.c.l.bf16 %v4501_v21  ;;  %v4442_v32 = vunpack.c.h.bf16 %v4501_v21  ;;  %v4269_v39 = vld [vmem:[#allocation8 + $0x58] sm:$0xff]  ;;  %v4268_v61 = vld [vmem:[#allocation8 + $0x50] sm:$0xff]  ;;  %s3486_s28 = scalar_lea.sflag [#allocation5], %s5035_s11  ;;  %s4797_s1 = sshra.s32 %s3501_s9, 4  ;;  %s4798_s1 = int_to_ptr.hbm [resolvable:$true] %s4797_s1 }
  0x45   : > { %6337 = vst [vmem:[#allocation17_spill] sm:$0xff] %v5056_v9  ;;  %1060 = vmatpush.bf16.msra.mxu1 %v4264_v6  ;;  %v4503_v22 = vld [vmem:[%s5039_s10 + $0x48] sm:$0xff]   ;;  %v6286_v23 = vand.u32 7, %v5056_v9  ;;  %v462_v28 = vmul.f32 %v5060_v18, %v4473_v16  ;;  %v463_v31 = vmul.f32 %v5060_v18, %v4474_v17  ;;  %v4497_v44 = vld [vmem:[%s5039_s10 + $0x18] sm:$0xff]   ;;  %vm5116_vm3 = vmpackc.low %vm4865_vm2, %vm4865_vm2  ;;  %s4803_s29 = scalar_lea.hbm %s6279_s7, 64  ;;  %p4804_p9 = scmp.lt.s32.totalorder %s4798_s1, %s6279_s7 }
  0x46   : > { %1194 = vmatpush.bf16.msra.mxu2 %v4280_v7  ;;  %v4262_v24 = vld [vmem:[#allocation8 + $0x20] sm:$0xff]  ;;  %v434_v26 = vmul.f32 %v5060_v18, %v4417_v14  ;;  %v435_v27 = vmul.f32 %v5060_v18, %v4418_v15  ;;  %v4449_v33 = vunpack.c.l.bf16 %v4503_v22  ;;  %v4450_v34 = vunpack.c.h.bf16 %v4503_v22  ;;  %v4261_v45 = vld [vmem:[#allocation8 + $0x18] sm:$0xff]  ;;  %v4260_v2 = vld [vmem:[#allocation8 + $0x10] sm:$0xff] }
  0x47   : > { %v4278_v25 = vld [vmem:[#allocation8 + $0xa0] sm:$0xff]  ;;  %v498_v37 = vadd.f32 %v5065_v19, %v462_v28  ;;  %v446_v38 = vmul.f32 %v5060_v18, %v4441_v29  ;;  %v499_v40 = vadd.f32 %v5065_v19, %v463_v31  ;;  %v447_v41 = vmul.f32 %v5060_v18, %v4442_v32  ;;  %v4277_v46 = vld [vmem:[#allocation8 + $0x98] sm:$0xff]  ;;  %v4276_v3 = vld [vmem:[#allocation8 + $0x90] sm:$0xff] }
  0x48   : > { %960 = vmatpush.bf16.msra.mxu0 %v4271_v8  ;;  %4515 = vmatpush.bf16.msra.mxu3 %v4271_v8  ;;  %v4507_v30 = vld [vmem:[%s5039_s10 + $0x68] sm:$0xff]   ;;  %v470_v35 = vadd.f32 %v5065_v19, %v434_v26  ;;  %v471_v36 = vadd.f32 %v5065_v19, %v435_v27  ;;  %v450_v42 = vmul.f32 %v5060_v18, %v4449_v33  ;;  %v4425_v59 = vunpack.c.l.bf16 %v4497_v44  ;;  %v4505_v60 = vld [vmem:[%s5039_s10 + $0x58] sm:$0xff]   ;;  %vm5130_vm5 = vmpackc.low %vm4866_vm4, %vm4866_vm4 }
  0x49   : > { %1061 = vmatpush.bf16.msra.mxu1 %v4263_v10  ;;  %v4465_v43 = vunpack.c.l.bf16 %v4507_v30  ;;  %v530_v49 = vmax.f32 %v498_v37, 0.0  ;;  %v451_v50 = vmul.f32 %v5060_v18, %v4450_v34  ;;  %v531_v51 = vmax.f32 %v499_v40, 0.0  ;;  %v4499_v55 = vld [vmem:[%s5039_s10 + $0x28] sm:$0xff]   ;;  %v5173_v8 = vld [vmem:[%s5039_s10] sm:$0xff]  }
  0x4a   : > { %1195 = vmatpush.bf16.msra.mxu2 %v4279_v11  ;;  %v502_v47 = vmax.f32 %v470_v35, 0.0  ;;  %v503_v48 = vmax.f32 %v471_v36, 0.0  ;;  %v482_v52 = vadd.f32 %v5065_v19, %v446_v38  ;;  %v483_v53 = vadd.f32 %v5065_v19, %v447_v41  ;;  %v4267_v21 = vld [vmem:[#allocation8 + $0x48] sm:$0xff]  ;;  %v4266_v41 = vld [vmem:[#allocation8 + $0x40] sm:$0xff] }
  0x4b   : > { %v486_v54 = vadd.f32 %v5065_v19, %v450_v42  ;;  %v487_v56 = vadd.f32 %v5065_v19, %v451_v50  ;;  %v4466_v57 = vunpack.c.h.bf16 %v4507_v30  ;;  %v458_v58 = vmul.f32 %v5060_v18, %v4465_v43  ;;  %562 = vst [vmem:[#allocation2 + $0xf0] sm:$0xff] %v530_v49  ;;  %v4259_v26 = vld [vmem:[#allocation8 + $0x8] sm:$0xff]  ;;  %v4258_v42 = vld [vmem:[#allocation8] sm:$0xff] }
  0x4c   : > { %961 = vmatpush.bf16.msra.mxu0 %v4270_v20  ;;  %4516 = vmatpush.bf16.msra.mxu3 %v4270_v20  ;;  %534 = vst [vmem:[#allocation2 + $0x10] sm:$0xff] %v502_v47  ;;  %v514_v62 = vmax.f32 %v482_v52, 0.0  ;;  %v515_v63 = vmax.f32 %v483_v53, 0.0  ;;  %v4426_v1 = vunpack.c.h.bf16 %v4497_v44  ;;  %vm5095_vm0 = vcmp.ge.s32.totalorder %v6286_v23, 1  ;;  %v4275_v27 = vld [vmem:[#allocation8 + $0x88] sm:$0xff]  ;;  %v4274_v43 = vld [vmem:[#allocation8 + $0x80] sm:$0xff] }
  0x4d   : > { %1062 = vmatpush.bf16.msra.mxu1 %v4262_v24  ;;  %535 = vst [vmem:[#allocation2 + $0x18] sm:$0xff] %v503_v48  ;;  %v518_v0 = vmax.f32 %v486_v54, 0.0  ;;  %v519_v4 = vmax.f32 %v487_v56, 0.0  ;;  %v459_v6 = vmul.f32 %v5060_v18, %v4466_v57  ;;  %v494_v7 = vadd.f32 %v5065_v19, %v458_v58  ;;  %v4289_v57 = vld [vmem:[#allocation8 + $0xf8] sm:$0xff]  ;;  %vm5162_vm6 = vmpackc.low %vm5095_vm0, %vm5095_vm0 }
  0x4e   : > { %1196 = vmatpush.bf16.msra.mxu2 %v4278_v25  ;;  %v4433_v10 = vunpack.c.l.bf16 %v4499_v55  ;;  %563 = vst [vmem:[#allocation2 + $0xf8] sm:$0xff] %v531_v51  ;;  %v4434_v11 = vunpack.c.h.bf16 %v4499_v55  ;;  %v438_v12 = vmul.f32 %v5060_v18, %v4425_v59  ;;  %v439_v13 = vmul.f32 %v5060_v18, %v4426_v1  ;;  %v4297_v58 = vld [vmem:[#allocation8 + $0x138] sm:$0xff] }
  0x4f   : > { %v4457_v14 = vunpack.c.l.bf16 %v4505_v60  ;;  %546 = vst [vmem:[#allocation2 + $0x70] sm:$0xff] %v514_v62  ;;  %v495_v15 = vadd.f32 %v5065_v19, %v459_v6  ;;  %v526_v16 = vmax.f32 %v494_v7, 0.0  ;;  %v4458_v20 = vunpack.c.h.bf16 %v4505_v60 }
  0x50   : > { %962 = vmatpush.bf16.msra.mxu0 %v4269_v39  ;;  %4517 = vmatpush.bf16.msra.mxu3 %v4269_v39  ;;  %v442_v17 = vmul.f32 %v5060_v18, %v4433_v10  ;;  %547 = vst [vmem:[#allocation2 + $0x78] sm:$0xff] %v515_v63  ;;  %v443_v22 = vmul.f32 %v5060_v18, %v4434_v11  ;;  %v5110_v31 = vadd.s32 16, %v5053_v5  ;;  %v6344_v49 = vmov 0 }
  0x51   : > { %1063 = vmatpush.bf16.msra.mxu1 %v4261_v45  ;;  %v474_v24 = vadd.f32 %v5065_v19, %v438_v12  ;;  %v475_v25 = vadd.f32 %v5065_v19, %v439_v13  ;;  %550 = vst [vmem:[#allocation2 + $0x90] sm:$0xff] %v518_v0  ;;  %v527_v28 = vmax.f32 %v495_v15, 0.0  ;;  %v454_v30 = vmul.f32 %v5060_v18, %v4457_v14  ;;  %v4288_v15 = vld [vmem:[#allocation8 + $0xf0] sm:$0xff] }
  0x52   : > { %1197 = vmatpush.bf16.msra.mxu2 %v4277_v46  ;;  %v478_v29 = vadd.f32 %v5065_v19, %v442_v17  ;;  %6340 = vst [vmem:[#allocation18_spill] sm:$0xff] %v5110_v31  ;;  %v479_v32 = vadd.f32 %v5065_v19, %v443_v22  ;;  %v455_v35 = vmul.f32 %v5060_v18, %v4458_v20  ;;  %v6345_v49 = vsel %vm5130_vm5, 4294967295, %v6344_v49  ;;  %v4313_v20 = vld [vmem:[#allocation8 + $0x1b8] sm:$0xff] }
  0x53   : > { %551 = vst [vmem:[#allocation2 + $0x98] sm:$0xff] %v519_v4  ;;  %v506_v33 = vmax.f32 %v474_v24, 0.0  ;;  %v507_v34 = vmax.f32 %v475_v25, 0.0  ;;  %v490_v40 = vadd.f32 %v5065_v19, %v454_v30  ;;  %v5149_v63 = vadd.s32 24, %v5053_v5 }
  0x54   : > { %963 = vmatpush.bf16.msra.mxu0 %v4268_v61  ;;  %4518 = vmatpush.bf16.msra.mxu3 %v4268_v61  ;;  %v5114_v36 = vld [vmem:[#allocation2 + $0x10] ss:$2 sm:$0xff]  ;;  %558 = vst [vmem:[#allocation2 + $0xd0] sm:$0xff] %v526_v16  ;;  %v5120_v38 = vld [vmem:[#allocation2 + $0x11] ss:$2 sm:$0xff]  ;;  %v510_v39 = vmax.f32 %v478_v29, 0.0  ;;  %v491_v51 = vadd.f32 %v5065_v19, %v455_v35  ;;  %v4413_v30 = vunpack.c.l.bf16 %v5173_v8 }
  0x55   : > { %1064 = vmatpush.bf16.msra.mxu1 %v4260_v2  ;;  %v830_v44 = vpack.c.bf16 %v5114_v36, %v5114_v36  ;;  %559 = vst [vmem:[#allocation2 + $0xd8] sm:$0xff] %v527_v28  ;;  %v756_v45 = vrot.slane %v5120_v38, 7  ;;  %v1089_v46 = vpack.c.bf16 %v5120_v38, %v5120_v38  ;;  %v511_v47 = vmax.f32 %v479_v32, 0.0  ;;  %v5128_v48 = vld [vmem:[#allocation2 + $0xf0] ss:$2 sm:$0xff] }
  0x56   : > { %1198 = vmatpush.bf16.msra.mxu2 %v4276_v3  ;;  %6343 = vst [vmem:[#allocation19_spill] sm:$0xff] %v5128_v48  ;;  %v5134_v50 = vld [vmem:[#allocation2 + $0xf1] ss:$2 sm:$0xff]  ;;  %v522_v52 = vmax.f32 %v490_v40, 0.0  ;;  %v829_v53 = vpack.c.bf16 %v5128_v48, %v5128_v48  ;;  %v523_v62 = vmax.f32 %v491_v51, 0.0  ;;  %v6283_v17 = vand.u32 7, %v5110_v31 }
  0x57   : > { %6346 = vst [vmem:[#allocation20_spill] sm:$0xff] %v6345_v49  ;;  %v862_v54 = vsel %vm5116_vm3, %v830_v44, 0  ;;  %v763_v55 = vrot.slane %v5134_v50, 7  ;;  %v1088_v56 = vpack.c.bf16 %v5134_v50, %v5134_v50  ;;  %v5144_v60 = vld [vmem:[#allocation2 + $0x70] ss:$2 sm:$0xff]  ;;  %v1097_v61 = vsel %vm5116_vm3, %v1089_v46, 0 }
  0x58   : > { %964 = vmatpush.bf16.msra.mxu0 %v4267_v21  ;;  %4519 = vmatpush.bf16.msra.mxu3 %v4267_v21  ;;  %6347 = vst [vmem:[#allocation21_spill] sm:$0xff] %v5134_v50  ;;  %v895_v59 = vunpack.c.l.b16 %v862_v54  ;;  %v861_v0 = vsel %vm5130_vm5, %v829_v53, 0  ;;  %v833_v1 = vpack.c.bf16 %v5144_v60, %v5144_v60  ;;  %v1130_v12 = vunpack.c.l.b16 %v1097_v61  ;;  %v4296_v16 = vld [vmem:[#allocation8 + $0x130] sm:$0xff]  ;;  %v4295_v44 = vld [vmem:[#allocation8 + $0x128] sm:$0xff] }
  0x59   : > { %1065 = vmatpush.bf16.msra.mxu1 %v4259_v26  ;;  %538 = vst [vmem:[#allocation2 + $0x30] sm:$0xff] %v506_v33  ;;  %v772_v2 = vsel %vm6315_vm1, %v763_v55, %v756_v45  ;;  %v1096_v4 = vsel %vm5130_vm5, %v1088_v56, 0  ;;  %v894_v6 = vunpack.c.l.b16 %v861_v0  ;;  %v4414_v40 = vunpack.c.h.bf16 %v5173_v8  ;;  %v4327_v31 = vld [vmem:[#allocation8 + $0x228] sm:$0xff] }
  0x5a   : > { %1199 = vmatpush.bf16.msra.mxu2 %v4275_v27  ;;  %539 = vst [vmem:[#allocation2 + $0x38] sm:$0xff] %v507_v34  ;;  %v5168_v7 = vld [vmem:[#allocation2 + $0x90] ss:$2 sm:$0xff]  ;;  %v5170_v10 = vpack.c.bf16 %v772_v2, %v772_v2  ;;  %v1129_v11 = vunpack.c.l.b16 %v1096_v4  ;;  %v865_v14 = vsel %vm5116_vm3, %v833_v1, 0  ;;  %vm5214_vm7 = vcmp.ge.s32.totalorder %v6283_v17, 1 }
  0x5b   : > { %542 = vst [vmem:[#allocation2 + $0x50] sm:$0xff] %v510_v39  ;;  %v834_v13 = vpack.c.bf16 %v5168_v7, %v5168_v7  ;;  %v902_v21 = vpack.c.b16 %v895_v59, %v894_v6  ;;  %v898_v22 = vunpack.c.l.b16 %v865_v14  ;;  %v6282_v39 = vand.u32 7, %v5149_v63  ;;  %v5247_v4 = vld [vmem:[%s5039_s10 + $0x10] sm:$0xff]   ;;  %vm5267_vm9 = vmpackc.low %vm5214_vm7, %vm5214_vm7 }
  0x5c   : > { %6348 = vst [vmem:[#allocation22_spill] sm:$0xff] %v5149_v63  ;;  %965 = vmatpush.bf16.msra.mxu0 %v4266_v41  ;;  %4520 = vmatpush.bf16.msra.mxu3 %v4266_v41  ;;  %v5180_v24 = vld [vmem:[#allocation2 + $0xd1] ss:$2 sm:$0xff]  ;;  %v806_v25 = vsel %vm5162_vm6, %v5170_v10, 0  ;;  %v1137_v26 = vpack.c.b16 %v1130_v12, %v1129_v11  ;;  %v5185_v27 = vld [vmem:[#allocation2 + $0xd0] ss:$2 sm:$0xff] }
  0x5d   : > { %543 = vst [vmem:[#allocation2 + $0x58] sm:$0xff] %v511_v47  ;;  %1066 = vmatpush.bf16.msra.mxu1 %v4258_v42  ;;  %v866_v28 = vsel %vm5116_vm3, %v834_v13, 0  ;;  %v6288_v29 = vrot.slane %v5180_v24, 7  ;;  %v836_v34 = vpack.c.bf16 %v5185_v27, %v5185_v27  ;;  %v996_v42 = vunpack.c.l.b16 %v806_v25  ;;  %v4286_v11 = vld [vmem:[#allocation8 + $0xe0] sm:$0xff]  ;;  %v4319_v63 = vld [vmem:[#allocation8 + $0x1e8] sm:$0xff] }
  0x5e   : > { %1200 = vmatpush.bf16.msra.mxu2 %v4274_v43  ;;  %6351 = vst [vmem:[#allocation23_spill] sm:$0xff] %v5168_v7  ;;  %v899_v32 = vunpack.c.l.b16 %v866_v28  ;;  %v4287_v43 = vld [vmem:[#allocation8 + $0xe8] sm:$0xff]  ;;  %vm5240_vm8 = vcmp.ge.s32.totalorder %v6282_v39, 1  ;;  %v6367_v17 = vmov 0 }
  0x5f   : > { %554 = vst [vmem:[#allocation2 + $0xb0] sm:$0xff] %v522_v52  ;;  %966 = vmatmul.bf16.vlgmr.msra.gmra.mxu0 %v902_v21  ;;  %v765_v41 = vsel %vm6315_vm1, %v6288_v29, %v763_v55  ;;  %v5236_v1 = vsel %vm5116_vm3, %v836_v34, 0  ;;  %vm5283_vm10 = vmpackc.low %vm5240_vm8, %vm5240_vm8 }
  0x60   : > { %1375 = vmatpush.bf16.msrb.mxu3 %v4289_v57  ;;  %1481 = vmatpush.bf16.msrb.mxu0 %v4297_v58  ;;  %555 = vst [vmem:[#allocation2 + $0xb8] sm:$0xff] %v523_v62  ;;  %v904_v51 = vpack.c.b16 %v899_v32, %v898_v22  ;;  %v5206_v52 = vpack.c.bf16 %v765_v41, %v765_v41  ;;  %v6359_v32 = vmov 0  ;;  %v5273_v41 = vld [vmem:[#allocation2 + $0x71] ss:$2 sm:$0xff] }
  0x61   : > { %6352 = vst [vmem:[#allocation24_spill] sm:$0xff] %v5180_v24  ;;  %1201 = vmatmul.bf16.vlgmr.msra.gmra.mxu2 %v1137_v26  ;;  %v5191_v33 = vld [vmem:[#allocation2 + $0x30] ss:$2 sm:$0xff]  ;;  %v5195_v35 = vld [vmem:[#allocation2 + $0x31] ss:$2 sm:$0xff]  ;;  %v6360_v32 = vsel %vm5267_vm9, 4294967295, %v6359_v32 }
  0x62   : > { %6353 = vst [vmem:[#allocation25_spill] sm:$0xff] %v5185_v27  ;;  %1721 = vmatpush.bf16.msrb.mxu2 %v4313_v20  ;;  %v831_v46 = vpack.c.bf16 %v5191_v33, %v5191_v33  ;;  %v757_v47 = vrot.slane %v5195_v35, 7  ;;  %v1090_v56 = vpack.c.bf16 %v5195_v35, %v5195_v35  ;;  %976 = vmatmul.bf16.vlgmr.msra.gmra.mxu3 %v904_v51  ;;  %v805_v62 = vsel %vm5130_vm5, %v5206_v52, 0 }
  0x63   : > { %v995_v6 = vunpack.c.l.b16 %v805_v62  ;;  %v4422_v51 = vunpack.c.h.bf16 %v5247_v4  ;;  %v5294_v62 = vadd.s32 40, %v5053_v5 }
  0x64   : > { %1376 = vmatpush.bf16.msrb.mxu3 %v4288_v15  ;;  %1482 = vmatpush.bf16.msrb.mxu0 %v4296_v16  ;;  %v5208_v53 = vld [vmem:[#allocation2 + $0x50] ss:$2 sm:$0xff]  ;;  %v5210_v54 = vld [vmem:[#allocation2 + $0x51] ss:$2 sm:$0xff]  ;;  %v863_v58 = vsel %vm5116_vm3, %v831_v46, 0  ;;  %v771_v61 = vsel %vm6315_vm1, %v756_v45, %v757_v47  ;;  %v4294_v16 = vld [vmem:[#allocation8 + $0x120] sm:$0xff] }
  0x65   : > { %v832_v57 = vpack.c.bf16 %v5208_v53, %v5208_v53  ;;  %v758_v59 = vrot.slane %v5210_v54, 7  ;;  %v1091_v45 = vpack.c.bf16 %v5210_v54, %v5210_v54  ;;  %v5256_v15 = vld [vmem:[%s5039_s10 + $0x70] sm:$0xff]   ;;  %v896_v20 = vunpack.c.l.b16 %v863_v58  ;;  %v4285_v58 = vld [vmem:[#allocation8 + $0xd8] sm:$0xff]  ;;  %6364 = vst [vmem:[#allocation28_spill] sm:$0xff] %v5294_v62 }
  0x66   : > { %v5258_v22 = vpack.c.bf16 %v771_v61, %v771_v61  ;;  %v1098_v25 = vsel %vm5116_vm3, %v1090_v56, 0  ;;  %v1003_v26 = vpack.c.b16 %v996_v42, %v995_v6  ;;  %v4469_v55 = vunpack.c.l.bf16 %v5256_v15 }
  0x67   : > { %v5232_v0 = vld [vmem:[#allocation2 + $0xb0] ss:$2 sm:$0xff]  ;;  %v864_v12 = vsel %vm5116_vm3, %v832_v57, 0  ;;  %v770_v14 = vsel %vm6315_vm1, %v757_v47, %v758_v59  ;;  %v1099_v34 = vsel %vm5116_vm3, %v1091_v45, 0  ;;  %v1131_v47 = vunpack.c.l.b16 %v1098_v25 }
  0x68   : > { %6356 = vst [vmem:[#allocation26_spill] sm:$0xff] %v5232_v0  ;;  %1377 = vmatpush.bf16.msrb.mxu3 %v4287_v43  ;;  %1483 = vmatpush.bf16.msrb.mxu0 %v4295_v44  ;;  %v835_v13 = vpack.c.bf16 %v5232_v0, %v5232_v0  ;;  %v897_v21 = vunpack.c.l.b16 %v864_v12  ;;  %v5262_v28 = vpack.c.bf16 %v770_v14, %v770_v14  ;;  %v5275_v43 = vld [vmem:[#allocation2 + $0x91] ss:$2 sm:$0xff]  ;;  %v4421_v44 = vunpack.c.l.bf16 %v5247_v4 }
  0x69   : > { %1067 = vmatmul.bf16.vlgmr.msra.gmra.mxu1 %v1003_v26  ;;  %v901_v56 = vunpack.c.l.b16 %v5236_v1  ;;  %v1132_v57 = vunpack.c.l.b16 %v1099_v34  ;;  %v5291_v61 = vadd.s32 32, %v5053_v5  ;;  %v807_v45 = vsel %vm5267_vm9, %v5258_v22, 0  ;;  %v4293_v4 = vld [vmem:[#allocation8 + $0x118] sm:$0xff]  ;;  %v4312_v34 = vld [vmem:[#allocation8 + $0x1b0] sm:$0xff] }
  0x6a   : > { %v867_v42 = vsel %vm5116_vm3, %v835_v13, 0  ;;  %v903_v2 = vpack.c.b16 %v897_v21, %v896_v20  ;;  %v759_v6 = vrot.slane %v5273_v41, 7  ;;  %v808_v12 = vsel %vm5283_vm10, %v5262_v28, 0  ;;  %1722 = vmatpush.bf16.msrb.mxu2 %v4312_v34 }
  0x6b   : > { %6363 = vst [vmem:[#allocation27_spill] sm:$0xff] %v5291_v61  ;;  %v900_v1 = vunpack.c.l.b16 %v867_v42  ;;  %v6285_v13 = vand.u32 7, %v5291_v61  ;;  %v6284_v14 = vand.u32 7, %v5294_v62  ;;  %v1138_v20 = vpack.c.b16 %v1132_v57, %v1131_v47  ;;  %v4284_v42 = vld [vmem:[#allocation8 + $0xd0] sm:$0xff] }
  0x6c   : > { %1378 = vmatpush.bf16.msrb.mxu3 %v4286_v11  ;;  %1484 = vmatpush.bf16.msrb.mxu0 %v4294_v16  ;;  %v6287_v11 = vrot.slane %v5275_v43, 7  ;;  %v4305_v16 = vld [vmem:[#allocation8 + $0x178] sm:$0xff]  ;;  %v769_v25 = vsel %vm6315_vm1, %v758_v59, %v759_v6  ;;  %v1092_v26 = vpack.c.bf16 %v5273_v41, %v5273_v41  ;;  %v1093_v59 = vpack.c.bf16 %v5275_v43, %v5275_v43 }
  0x6d   : > { %vm744_vm11 = vcmp.ge.s32.totalorder %v6285_v13, 1  ;;  %vm5318_vm12 = vcmp.ge.s32.totalorder %v6284_v14, 1  ;;  %v5322_v57 = vpack.c.bf16 %v769_v25, %v769_v25  ;;  %1587 = vmatpush.bf16.msrb.mxu1 %v4305_v16  ;;  %v5326_v39 = vunpack.c.l.b16 %v807_v45  ;;  %v4311_v16 = vld [vmem:[#allocation8 + $0x1a8] sm:$0xff] }
  0x6e   : > { %v768_v21 = vsel %vm6315_vm1, %v759_v6, %v6287_v11  ;;  %v4304_v6 = vld [vmem:[#allocation8 + $0x170] sm:$0xff]  ;;  %vm5328_vm13 = vmpackc.low %vm744_vm11, %vm744_vm11  ;;  %v4470_v14 = vunpack.c.h.bf16 %v5256_v15  ;;  %v432_v25 = vmul.f32 %v5060_v18, %v4413_v30  ;;  %v5336_v13 = vunpack.c.l.b16 %v808_v12  ;;  %1723 = vmatpush.bf16.msrb.mxu2 %v4311_v16 }
  0x6f   : > { %v6368_v17 = vsel %vm5328_vm13, 4294967295, %v6367_v17  ;;  %v5338_v23 = vpack.c.bf16 %v768_v21, %v768_v21  ;;  %v433_v45 = vmul.f32 %v5060_v18, %v4414_v40  ;;  %971 = vmatmul.bf16.gmra.mxu0 %v903_v2  ;;  %v905_v11 = vpack.c.b16 %v901_v56, %v900_v1  ;;  %vm5347_vm14 = vmpackc.low %vm5318_vm12, %vm5318_vm12  ;;  %v5376_v16 = vld [vmem:[#allocation2 + $0xb1] ss:$2 sm:$0xff] }
  0x70   : > { %1379 = vmatpush.bf16.msrb.mxu3 %v4285_v58  ;;  %1485 = vmatpush.bf16.msrb.mxu0 %v4293_v4  ;;  %v4292_v58 = vld [vmem:[#allocation8 + $0x110] sm:$0xff]  ;;  %v436_v4 = vmul.f32 %v5060_v18, %v4421_v44  ;;  %v1100_v15 = vsel %vm5116_vm3, %v1092_v26, 0  ;;  %v437_v8 = vmul.f32 %v5060_v18, %v4422_v51  ;;  %v460_v40 = vmul.f32 %v5060_v18, %v4469_v55  ;;  %v4283_v44 = vld [vmem:[#allocation8 + $0xc8] sm:$0xff] }
  0x71   : > { %1206 = vmatmul.bf16.gmra.mxu2 %v1138_v20  ;;  %v809_v56 = vsel %vm5328_vm13, %v5322_v57, 0  ;;  %v1101_v2 = vsel %vm5116_vm3, %v1093_v59, 0  ;;  %v461_v1 = vmul.f32 %v5060_v18, %v4470_v14  ;;  %v468_v12 = vadd.f32 %v5065_v19, %v432_v25  ;;  %1588 = vmatpush.bf16.msrb.mxu1 %v4304_v6  ;;  %v4303_v20 = vld [vmem:[#allocation8 + $0x168] sm:$0xff]  ;;  %v4310_v59 = vld [vmem:[#allocation8 + $0x1a0] sm:$0xff]  ;;  %6371 = vst [vmem:[#allocation29_spill] sm:$0xff] %v5376_v16 }
  0x72   : > { %v4291_v51 = vld [vmem:[#allocation8 + $0x108] sm:$0xff]  ;;  %v469_v55 = vadd.f32 %v5065_v19, %v433_v45  ;;  %v472_v21 = vadd.f32 %v5065_v19, %v436_v4  ;;  %v473_v26 = vadd.f32 %v5065_v19, %v437_v8  ;;  %v496_v34 = vadd.f32 %v5065_v19, %v460_v40  ;;  %v4498_v6 = vld [vmem:[%s5039_s10 + $0x20] sm:$0xff]   ;;  %981 = vmatmul.bf16.gmra.mxu3 %v905_v11 }
  0x73   : > { %v497_v14 = vadd.f32 %v5065_v19, %v461_v1  ;;  %v500_v47 = vmax.f32 %v468_v12, 0.0  ;;  %v4500_v8 = vld [vmem:[%s5039_s10 + $0x30] sm:$0xff]   ;;  %v4282_v40 = vld [vmem:[#allocation8 + $0xc0] sm:$0xff]  ;;  %v5374_v29 = vunpack.c.l.b16 %v809_v56  ;;  %v1133_v49 = vunpack.c.l.b16 %v1100_v15  ;;  %v4321_v12 = vld [vmem:[#allocation8 + $0x1f8] sm:$0xff]  ;;  %1724 = vmatpush.bf16.msrb.mxu2 %v4310_v59 }
  0x74   : > { %1380 = vmatpush.bf16.msrb.mxu3 %v4284_v42  ;;  %1486 = vmatpush.bf16.msrb.mxu0 %v4292_v58  ;;  %v810_v42 = vsel %vm5347_vm14, %v5338_v23, 0  ;;  %v1004_v58 = vpack.c.b16 %v5336_v13, %v5326_v39  ;;  %v501_v25 = vmax.f32 %v469_v55, 0.0  ;;  %v504_v45 = vmax.f32 %v472_v21, 0.0  ;;  %v4290_v11 = vld [vmem:[#allocation8 + $0x100] sm:$0xff]  ;;  %v4329_v56 = vld [vmem:[#allocation8 + $0x238] sm:$0xff] }
  0x75   : > { %v505_v4 = vmax.f32 %v473_v26, 0.0  ;;  %v1134_v62 = vunpack.c.l.b16 %v1101_v2  ;;  %v528_v61 = vmax.f32 %v496_v34, 0.0  ;;  %532 = vst [vmem:[#allocation2] sm:$0xff] %v500_v47  ;;  %1589 = vmatpush.bf16.msrb.mxu1 %v4303_v20  ;;  %v5378_v1 = vunpack.c.l.b16 %v810_v42  ;;  %v4302_v55 = vld [vmem:[#allocation8 + $0x160] sm:$0xff]  ;;  %v4320_v47 = vld [vmem:[#allocation8 + $0x1f0] sm:$0xff] }
  0x76   : > { %v529_v39 = vmax.f32 %v497_v14, 0.0  ;;  %533 = vst [vmem:[#allocation2 + $0x8] sm:$0xff] %v501_v25  ;;  %v6293_v13 = vand.u32 7, %v5053_v5  ;;  %v5382_v15 = vadd.s32 48, %v5053_v5  ;;  %v4430_v2 = vunpack.c.h.bf16 %v4498_v6 }
  0x77   : > { %536 = vst [vmem:[#allocation2 + $0x20] sm:$0xff] %v504_v45  ;;  %v4437_v20 = vunpack.c.l.bf16 %v4500_v8  ;;  %v761_v21 = vrot.slane %v5376_v16, 7  ;;  %v1094_v26 = vpack.c.bf16 %v5376_v16, %v5376_v16  ;;  %v1139_v34 = vpack.c.b16 %v1134_v62, %v1133_v49  ;;  %v4301_v45 = vld [vmem:[#allocation8 + $0x158] sm:$0xff] }
  0x78   : > { %1381 = vmatpush.bf16.msrb.mxu3 %v4283_v44  ;;  %1487 = vmatpush.bf16.msrb.mxu0 %v4291_v51  ;;  %v4429_v44 = vunpack.c.l.bf16 %v4498_v6  ;;  %537 = vst [vmem:[#allocation2 + $0x28] sm:$0xff] %v505_v4  ;;  %v5385_v51 = vadd.s32 56, %v5053_v5  ;;  %vm5394_vm15 = vcmp.ge.s32.totalorder %v6293_v13, 1  ;;  %v4438_v59 = vunpack.c.h.bf16 %v4500_v8  ;;  %v4309_v4 = vld [vmem:[#allocation8 + $0x198] sm:$0xff] }
  0x79   : > { %1072 = vmatmul.bf16.gmra.mxu1 %v1004_v58  ;;  %560 = vst [vmem:[#allocation2 + $0xe0] sm:$0xff] %v528_v61  ;;  %v4502_v58 = vld [vmem:[%s5039_s10 + $0x40] sm:$0xff]   ;;  %v1095_v61 = vpack.c.bf16 %v5180_v24, %v5180_v24  ;;  %v441_v62 = vmul.f32 %v5060_v18, %v4430_v2  ;;  %v444_v25 = vmul.f32 %v5060_v18, %v4437_v20  ;;  %v6374_v8 = vrot.slane %v5180_v24, 7  ;;  %vm5462_vm0 = vmpackc.low %vm5394_vm15, %vm5394_vm15 }
  0x7a   : > { %561 = vst [vmem:[#allocation2 + $0xe8] sm:$0xff] %v529_v39  ;;  %v440_v6 = vmul.f32 %v5060_v18, %v4429_v44  ;;  %1590 = vmatpush.bf16.msrb.mxu1 %v4302_v55  ;;  %v445_v44 = vmul.f32 %v5060_v18, %v4438_v59  ;;  %1725 = vmatpush.bf16.msrb.mxu2 %v4309_v4  ;;  %v4300_v59 = vld [vmem:[#allocation8 + $0x150] sm:$0xff]  ;;  %v4446_v9 = vunpack.c.h.bf16 %v4502_v58  ;;  %vm6308_vm11 = vcmp.lt.s32.totalorder %v5053_v5, 7 }
  0x7b   : > { %v5411_v39 = vsel %vm6315_vm1, %v761_v21, %v6374_v8  ;;  %v477_v13 = vadd.f32 %v5065_v19, %v441_v62  ;;  %v480_v42 = vadd.f32 %v5065_v19, %v444_v25  ;;  %v4445_v8 = vunpack.c.l.bf16 %v4502_v58 }
  0x7c   : > { %1382 = vmatpush.bf16.msrb.mxu3 %v4282_v40  ;;  %1488 = vmatpush.bf16.msrb.mxu0 %v4290_v11  ;;  %v4504_v40 = vld [vmem:[%s5039_s10 + $0x50] sm:$0xff]   ;;  %v476_v20 = vadd.f32 %v5065_v19, %v440_v6  ;;  %v6375_v62 = vrot.slane %v5275_v43, 7  ;;  %v5440_v16 = vsel %vm5116_vm3, %v1095_v61, 0  ;;  %v4318_v61 = vld [vmem:[#allocation8 + $0x1e0] sm:$0xff] }
  0x7d   : > { %v5418_v55 = vld [vmem:[#allocation2 + $0x1] ss:$2 sm:$0xff]  ;;  %v564_v2 = vld [vmem:[#allocation2] ss:$2 sm:$0xff]  ;;  %v4308_v11 = vld [vmem:[#allocation8 + $0x190] sm:$0xff]  ;;  %v4453_v48 = vunpack.c.l.bf16 %v4504_v40  ;;  %v509_v50 = vmax.f32 %v477_v13, 0.0 }
  0x7e   : > { %v1230_v49 = vrot.slane %v5418_v55, 7  ;;  %v5431_v25 = vsel %vm6315_vm1, %v6375_v62, %v761_v21  ;;  %v508_v4 = vmax.f32 %v476_v20, 0.0  ;;  %1591 = vmatpush.bf16.msrb.mxu1 %v4301_v45  ;;  %v512_v24 = vmax.f32 %v480_v42, 0.0  ;;  %1726 = vmatpush.bf16.msrb.mxu2 %v4308_v11  ;;  %v4307_v13 = vld [vmem:[#allocation8 + $0x188] sm:$0xff]  ;;  %v4306_v62 = vld [vmem:[#allocation8 + $0x180] sm:$0xff] }
  0x7f   : > { %v5425_v27 = vld [vmem:[#allocation2 + $0x21] ss:$2 sm:$0xff]  ;;  %v566_v6 = vld [vmem:[#allocation2 + $0x20] ss:$2 sm:$0xff]  ;;  %v448_v21 = vmul.f32 %v5060_v18, %v4445_v8  ;;  %v449_v45 = vmul.f32 %v5060_v18, %v4446_v9  ;;  %541 = vst [vmem:[#allocation2 + $0x48] sm:$0xff] %v509_v50 }
  0x80   : > { %1827 = vmatpush.bf16.msra.mxu3 %v4321_v12  ;;  %1933 = vmatpush.bf16.msra.mxu0 %v4329_v56  ;;  %v5415_v12 = vsel %vm5116_vm3, %v1094_v26, 0  ;;  %v4328_v56 = vld [vmem:[#allocation8 + $0x230] sm:$0xff]  ;;  %v481_v26 = vadd.f32 %v5065_v19, %v445_v44  ;;  %v1231_v44 = vrot.slane %v5425_v27, 7  ;;  %v5434_v58 = vpack.c.bf16 %v566_v6, %v564_v2  ;;  %540 = vst [vmem:[#allocation2 + $0x40] sm:$0xff] %v508_v4  ;;  %v4299_v9 = vld [vmem:[#allocation8 + $0x148] sm:$0xff] }
  0x81   : > { %1211 = vmatmul.bf16.gmra.mxu2 %v1139_v34  ;;  %v5436_v7 = vld [vmem:[#allocation2 + $0xe1] ss:$2 sm:$0xff]  ;;  %v452_v34 = vmul.f32 %v5060_v18, %v4453_v48  ;;  %544 = vst [vmem:[#allocation2 + $0x60] sm:$0xff] %v512_v24  ;;  %v484_v48 = vadd.f32 %v5065_v19, %v448_v21  ;;  %v485_v8 = vadd.f32 %v5065_v19, %v449_v45 }
  0x82   : > { %6376 = vst [vmem:[#allocation30_spill] sm:$0xff] %v5434_v58  ;;  %v513_v0 = vmax.f32 %v481_v26, 0.0  ;;  %v1244_v42 = vsel %vm6315_vm1, %v1230_v49, %v1231_v44  ;;  %1489 = vmatmul.bf16.vlgmr.msrb.gmra.mxu0 %v5434_v58  ;;  %1592 = vmatpush.bf16.msrb.mxu1 %v4300_v59 }
  0x83   : > { %v1247_v20 = vpack.c.bf16 %v1244_v42, %v1244_v42  ;;  %1727 = vmatpush.bf16.msrb.mxu2 %v4307_v13  ;;  %v517_v4 = vmax.f32 %v485_v8, 0.0  ;;  %v6382_v13 = vand.u32 7, %v5385_v51 }
  0x84   : > { %1828 = vmatpush.bf16.msra.mxu3 %v4320_v47  ;;  %1934 = vmatpush.bf16.msra.mxu0 %v4328_v56  ;;  %v4454_v47 = vunpack.c.h.bf16 %v4504_v40  ;;  %v4506_v40 = vld [vmem:[%s5039_s10 + $0x60] sm:$0xff]   ;;  %v1237_v56 = vrot.slane %v5436_v7, 7  ;;  %545 = vst [vmem:[#allocation2 + $0x68] sm:$0xff] %v513_v0  ;;  %s4799_s10 = scalar_lea.hbm %s4798_s1, 32 }
  0x85   : > { %v4461_v2 = vunpack.c.l.bf16 %v4506_v40  ;;  %v4462_v24 = vunpack.c.h.bf16 %v4506_v40  ;;  %v1279_v6 = vsel %vm5162_vm6, %v1247_v20, 0  ;;  %vm5481_vm4 = vcmp.ge.s32.totalorder %v6382_v13, 1  ;;  %549 = vst [vmem:[#allocation2 + $0x88] sm:$0xff] %v517_v4  ;;  %v4317_v4 = vld [vmem:[#allocation8 + $0x1d8] sm:$0xff]  ;;  %p4800_p1 = scmp.ne.s32.totalorder %s4798_s1, %s4799_s10  ;;  %p4805_p2 = scmp.lt.s32.totalorder %s4803_s29, %s4799_s10 }
  0x86   : > { %v453_v11 = vmul.f32 %v5060_v18, %v4454_v47  ;;  %v1245_v26 = vsel %vm6315_vm1, %v1237_v56, %v1230_v49  ;;  %v516_v49 = vmax.f32 %v484_v48, 0.0  ;;  %v1312_v14 = vunpack.c.l.b16 %v1279_v6  ;;  %1593 = vmatpush.bf16.msrb.mxu1 %v4299_v9  ;;  %vm5514_vm8 = vmpackc.low %vm5481_vm4, %vm5481_vm4  ;;  %v4325_v13 = vld [vmem:[#allocation8 + $0x218] sm:$0xff] }
  0x87   : > { %v1246_v59 = vpack.c.bf16 %v1245_v26, %v1245_v26  ;;  %v456_v45 = vmul.f32 %v5060_v18, %v4461_v2  ;;  %v1135_v20 = vunpack.c.l.b16 %v5415_v12  ;;  %v1136_v48 = vunpack.c.l.b16 %v5440_v16  ;;  %1728 = vmatpush.bf16.msrb.mxu2 %v4306_v62  ;;  %v568_v12 = vld [vmem:[#allocation2 + $0x40] ss:$2 sm:$0xff]  ;;  %p4801_p4 = pnand %p4800_p1, %p5002_p3  ;;  %p4806_p10 = por %p4805_p2, %p4804_p9 }
  0x88   : > { %1829 = vmatpush.bf16.msra.mxu3 %v4319_v63  ;;  %1935 = vmatpush.bf16.msra.mxu0 %v4327_v31  ;;  %v488_v31 = vadd.f32 %v5065_v19, %v452_v34  ;;  %v489_v63 = vadd.f32 %v5065_v19, %v453_v11  ;;  %v6379_v34 = vand.u32 7, %v5382_v15  ;;  %548 = vst [vmem:[#allocation2 + $0x80] sm:$0xff] %v516_v49 }
  0x89   : > { %v1278_v0 = vsel %vm5462_vm0, %v1246_v59, 0  ;;  %v457_v11 = vmul.f32 %v5060_v18, %v4462_v24  ;;  %v492_v8 = vadd.f32 %v5065_v19, %v456_v45  ;;  %v6385_v26 = vpack.c.b16 %v5378_v1, %v5374_v29  ;;  %v4398_v29 = vld [vmem:[#allocation9 + $0x220] sm:$0xff]  ;;  %p4802_p8 = pneg %p4801_p4 }
  0x8a   : > { %v520_v47 = vmax.f32 %v488_v31, 0.0  ;;  %v521_v21 = vmax.f32 %v489_v63, 0.0  ;;  %vm5475_vm2 = vcmp.ge.s32.totalorder %v6379_v34, 1  ;;  %v1311_v2 = vunpack.c.l.b16 %v1278_v0  ;;  %v5492_v31 = vld [vmem:[#allocation2 + $0x41] ss:$2 sm:$0xff] }
  0x8b   : > { %1077 = vmatmul.bf16.gmra.mxu1 %v6385_v26  ;;  %v493_v9 = vadd.f32 %v5065_v19, %v457_v11  ;;  %v5497_v18 = vpack.c.bf16 %v5431_v25, %v5431_v25  ;;  %v5501_v16 = vpack.c.bf16 %v5411_v39, %v5411_v39  ;;  %vm5506_vm7 = vmpackc.low %vm5475_vm2, %vm5475_vm2  ;;  %v1232_v1 = vrot.slane %v5492_v31, 7  ;;  %v5518_v39 = vld [vmem:[#allocation2 + $0x61] ss:$2 sm:$0xff]  ;;  %v570_v25 = vld [vmem:[#allocation2 + $0x60] ss:$2 sm:$0xff]  ;;  %p4807_p11 = pnand %p4806_p10, %p4802_p8 }
  0x8c   : > { %1830 = vmatpush.bf16.msra.mxu3 %v4318_v61  ;;  %v4298_v61 = vld [vmem:[#allocation8 + $0x140] sm:$0xff]  ;;  %552 = vst [vmem:[#allocation2 + $0xa0] sm:$0xff] %v520_v47  ;;  %v1319_v63 = vpack.c.b16 %v1312_v14, %v1311_v2  ;;  %v6388_v19 = vmov 0  ;;  %v524_v24 = vmax.f32 %v492_v8, 0.0  ;;  %v1140_v6 = vpack.c.b16 %v1136_v48, %v1135_v20 }
  0x8d   : > { %553 = vst [vmem:[#allocation2 + $0xa8] sm:$0xff] %v521_v21  ;;  %v6389_v19 = vsel %vm5514_vm8, 4294967295, %v6388_v19  ;;  %1594 = vmatpush.bf16.msrb.mxu1 %v4298_v61  ;;  %v525_v59 = vmax.f32 %v493_v9, 0.0  ;;  %v1233_v62 = vrot.slane %v5518_v39, 7  ;;  %v1243_v49 = vsel %vm6315_vm1, %v1231_v44, %v1232_v1  ;;  %v4326_v14 = vld [vmem:[#allocation8 + $0x220] sm:$0xff]  ;;  %v4316_v44 = vld [vmem:[#allocation8 + $0x1d0] sm:$0xff] }
  0x8e   : > { %1383 = vmatmul.bf16.vlgmr.msrb.gmra.mxu3 %v1319_v63  ;;  %v1248_v47 = vpack.c.bf16 %v1243_v49, %v1243_v49  ;;  %556 = vst [vmem:[#allocation2 + $0xc0] sm:$0xff] %v524_v24  ;;  %v811_v21 = vsel %vm5506_vm7, %v5497_v18, 0  ;;  %v812_v45 = vsel %vm5514_vm8, %v5501_v16, 0  ;;  %v5533_v34 = vpack.c.bf16 %v570_v25, %v568_v12  ;;  %1936 = vmatpush.bf16.msra.mxu0 %v4326_v14 }
  0x8f   : > { %v1242_v0 = vsel %vm6315_vm1, %v1232_v1, %v1233_v62  ;;  %557 = vst [vmem:[#allocation2 + $0xc8] sm:$0xff] %v525_v59  ;;  %v1001_v42 = vunpack.c.l.b16 %v811_v21  ;;  %v1002_v61 = vunpack.c.l.b16 %v812_v45  ;;  %v5540_v20 = vld [vmem:[#allocation2 + $0x81] ss:$2 sm:$0xff]  ;;  %v1624_v63 = vsel %vm5462_vm0, %v5170_v10, 0  ;;  %v572_v14 = vld [vmem:[#allocation2 + $0x80] ss:$2 sm:$0xff] }
  0x90   : > { %6390 = vst [vmem:[#allocation31_spill] sm:$0xff] %v5533_v34  ;;  %1831 = vmatpush.bf16.msra.mxu3 %v4317_v4  ;;  %v1249_v40 = vpack.c.bf16 %v1242_v0, %v1242_v0  ;;  %v1280_v11 = vsel %vm5267_vm9, %v1248_v47, 0  ;;  %v1625_v1 = vsel %vm5162_vm6, %v5258_v22, 0  ;;  %v1234_v12 = vrot.slane %v5540_v20, 7  ;;  %v4315_v21 = vld [vmem:[#allocation8 + $0x1c8] sm:$0xff]  ;;  %v4324_v22 = vld [vmem:[#allocation8 + $0x210] sm:$0xff] }
  0x91   : > { %1216 = vmatmul.bf16.gmra.mxu2 %v1140_v6  ;;  %v1313_v8 = vunpack.c.l.b16 %v1280_v11  ;;  %v1006_v9 = vpack.c.b16 %v1002_v61, %v1001_v42  ;;  %v1657_v59 = vunpack.c.l.b16 %v1624_v63  ;;  %v1658_v6 = vunpack.c.l.b16 %v1625_v1  ;;  %v4322_v11 = vld [vmem:[#allocation8 + $0x200] sm:$0xff] }
  0x92   : > { %v1281_v2 = vsel %vm5283_vm10, %v1249_v40, 0  ;;  %1494 = vmatmul.bf16.gmra.mxu0 %v5533_v34  ;;  %v1241_v4 = vsel %vm6315_vm1, %v1233_v62, %v1234_v12  ;;  %v4314_v40 = vld [vmem:[#allocation8 + $0x1c0] sm:$0xff]  ;;  %v1627_v63 = vsel %vm5283_vm10, %v5322_v57, 0 }
  0x93   : > { %1937 = vmatpush.bf16.msra.mxu0 %v4325_v13  ;;  %v1314_v26 = vunpack.c.l.b16 %v1281_v2  ;;  %v1665_v47 = vpack.c.b16 %v1658_v6, %v1657_v59  ;;  %v1250_v45 = vpack.c.bf16 %v1241_v4, %v1241_v4  ;;  %v4323_v13 = vld [vmem:[#allocation8 + $0x208] sm:$0xff]  ;;  %v1660_v59 = vunpack.c.l.b16 %v1627_v63 }
  0x94   : > { %1832 = vmatpush.bf16.msra.mxu3 %v4316_v44  ;;  %v5542_v48 = vld [vmem:[#allocation2 + $0xa1] ss:$2 sm:$0xff]  ;;  %v574_v10 = vld [vmem:[#allocation2 + $0xa0] ss:$2 sm:$0xff] }
  0x95   : > { %v1235_v25 = vrot.slane %v5542_v48, 7  ;;  %v1320_v24 = vpack.c.b16 %v1314_v26, %v1313_v8  ;;  %v5556_v44 = vpack.c.bf16 %v574_v10, %v572_v14  ;;  %v1282_v42 = vsel %vm5328_vm13, %v1250_v45, 0  ;;  %v6395_v63 = vld [vmem:[#allocation26_spill] sm:$0xff] }
  0x96   : > { %v592_v61 = vld [vmem:[#allocation2 + $0xc1] ss:$2 sm:$0xff]  ;;  %v1315_v2 = vunpack.c.l.b16 %v1282_v42  ;;  %v1518_v26 = vpack.c.bf16 %v5425_v27, %v5418_v55  ;;  %v576_v55 = vld [vmem:[#allocation2 + $0xc0] ss:$2 sm:$0xff]  ;;  %v1629_v45 = vsel %vm5347_vm14, %v5497_v18, 0  ;;  %v1631_v18 = vsel %vm5514_vm8, %v5206_v52, 0 }
  0x97   : > { %v1240_v49 = vsel %vm6315_vm1, %v1234_v12, %v1235_v25  ;;  %6391 = vst [vmem:[#allocation32_spill] sm:$0xff] %v5556_v44  ;;  %1938 = vmatpush.bf16.msra.mxu0 %v4324_v22  ;;  %v1236_v1 = vrot.slane %v592_v61, 7  ;;  %v1628_v22 = vsel %vm5328_vm13, %v5338_v23, 0  ;;  %v1630_v23 = vsel %vm5506_vm7, %v5501_v16, 0 }
  0x98   : > { %v1251_v0 = vpack.c.bf16 %v1240_v49, %v1240_v49  ;;  %1833 = vmatpush.bf16.msra.mxu3 %v4315_v21  ;;  %v1759_v16 = vpack.c.bf16 %v5144_v60, %v5208_v53 }
  0x99   : > { %v1238_v6 = vsel %vm6315_vm1, %v1236_v1, %v1237_v56  ;;  %v1239_v27 = vsel %vm6315_vm1, %v1235_v25, %v1236_v1  ;;  %v1519_v25 = vpack.c.bf16 %v5518_v39, %v5492_v31  ;;  %v1520_v31 = vpack.c.bf16 %v5542_v48, %v5540_v20 }
  0x9a   : > { %v1283_v62 = vsel %vm5347_vm14, %v1251_v0, 0  ;;  %v1252_v4 = vpack.c.bf16 %v1239_v27, %v1239_v27  ;;  %v1253_v57 = vpack.c.bf16 %v1238_v6, %v1238_v6  ;;  %v1758_v39 = vpack.c.bf16 %v5191_v33, %v5114_v36  ;;  %v6393_v36 = vld [vmem:[#allocation29_spill] sm:$0xff] }
  0x9b   : > { %1082 = vmatmul.bf16.gmra.mxu1 %v1006_v9  ;;  %1939 = vmatpush.bf16.msra.mxu0 %v4323_v13  ;;  %v1316_v8 = vunpack.c.l.b16 %v1283_v62  ;;  %v1626_v9 = vsel %vm5267_vm9, %v5262_v28, 0  ;;  %v578_v28 = vld [vmem:[#allocation2 + $0xe0] ss:$2 sm:$0xff]  ;;  %v1662_v13 = vunpack.c.l.b16 %v1629_v45  ;;  %v1864_v62 = vpack.c.bf16 %v5195_v35, %v5120_v38 }
  0x9c   : > { %1834 = vmatpush.bf16.msra.mxu3 %v4314_v40  ;;  %v5577_v14 = vpack.c.bf16 %v578_v28, %v576_v55  ;;  %v1284_v10 = vsel %vm5506_vm7, %v1252_v4, 0  ;;  %v1661_v40 = vunpack.c.l.b16 %v1628_v22  ;;  %v1865_v35 = vpack.c.bf16 %v5273_v41, %v5210_v54  ;;  %v6394_v41 = vld [vmem:[#allocation23_spill] sm:$0xff] }
  0x9d   : > { %v1321_v12 = vpack.c.b16 %v1316_v8, %v1315_v2  ;;  %v1317_v56 = vunpack.c.l.b16 %v1284_v10  ;;  %v1664_v2 = vunpack.c.l.b16 %v1631_v18  ;;  %v1521_v20 = vpack.c.bf16 %v5436_v7, %v592_v61  ;;  %v6399_v4 = vld [vmem:[#allocation19_spill] sm:$0xff] }
  0x9e   : > { %1388 = vmatmul.bf16.gmra.mxu3 %v1320_v24  ;;  %v1659_v24 = vunpack.c.l.b16 %v1626_v9  ;;  %6392 = vst [vmem:[#allocation33_spill] sm:$0xff] %v5577_v14  ;;  %v1667_v42 = vpack.c.b16 %v1662_v13, %v1661_v40  ;;  %v1866_v33 = vpack.c.bf16 %v6393_v36, %v5275_v43  ;;  %v1760_v1 = vpack.c.bf16 %v6395_v63, %v6394_v41 }
  0x9f   : > { %1940 = vmatpush.bf16.msra.mxu0 %v4322_v11  ;;  %v1663_v11 = vunpack.c.l.b16 %v1630_v23 }
  0xa0   : > { %v1666_v49 = vpack.c.b16 %v1660_v59, %v1659_v24  ;;  %v6397_v24 = vld [vmem:[#allocation21_spill] sm:$0xff] }
  0xa1   : > { %1729 = vmatmul.bf16.vlgmr.msrb.gmra.mxu2 %v1665_v47  ;;  %v1285_v47 = vsel %vm5514_vm8, %v1253_v57, 0  ;;  %v1668_v38 = vpack.c.b16 %v1664_v2, %v1663_v11 }
  0xa2   : > { %1499 = vmatmul.bf16.gmra.mxu0 %v5556_v44  ;;  %v1318_v21 = vunpack.c.l.b16 %v1285_v47 }
  0xa4   : > { %v1322_v0 = vpack.c.b16 %v1318_v21, %v1317_v56 }
  0xab   : > { %1595 = vmatmul.bf16.vlgmr.msrb.gmra.mxu1 %v1518_v26 }
  0xae   : > { %1393 = vmatmul.bf16.gmra.mxu3 %v1321_v12  ;;  %v6396_v12 = vld [vmem:[#allocation24_spill] sm:$0xff] }
  0xaf   : > { %v1867_v43 = vpack.c.bf16 %v6397_v24, %v6396_v12 }
  0xb1   : > { %1734 = vmatmul.bf16.gmra.mxu2 %v1666_v49  ;;  %v6398_v49 = vld [vmem:[#allocation25_spill] sm:$0xff] }
  0xb2   : > { %1504 = vmatmul.bf16.gmra.mxu0 %v5577_v14  ;;  %v1761_v57 = vpack.c.bf16 %v6399_v4, %v6398_v49  ;;  %v4337_v4 = vld [vmem:[#allocation9 + $0x38] sm:$0xff] }
  0xb3   : > { %2260 = vmatpush.bf16.msra.mxu2 %v4337_v4 }
  0xbb   : > { %1600 = vmatmul.bf16.gmra.mxu1 %v1519_v25 }
  0xbe   : > { %1398 = vmatmul.bf16.gmra.mxu3 %v1322_v0 }
  0xc1   : > { %1739 = vmatmul.bf16.gmra.mxu2 %v1667_v42 }
  0xc2   : > { %1941 = vmatmul.bf16.vlgmr.msra.gmra.mxu0 %v1864_v62 }
  0xcb   : > { %1605 = vmatmul.bf16.gmra.mxu1 %v1520_v31 }
  0xce   : > { %1835 = vmatmul.bf16.vlgmr.msra.gmra.mxu3 %v1758_v39 }
  0xd1   : > { %1744 = vmatmul.bf16.gmra.mxu2 %v1668_v38 }
  0xd2   : > { %1946 = vmatmul.bf16.gmra.mxu0 %v1865_v35 }
  0xdb   : > { %1610 = vmatmul.bf16.gmra.mxu1 %v1521_v20 }
  0xdc   : > { %v967_v52 = vpop.f32.mrf.mxu0 }
  0xde   : > { %1840 = vmatmul.bf16.gmra.mxu3 %v1759_v16 }
  0xe2   : > { %1951 = vmatmul.bf16.gmra.mxu0 %v1866_v33 }
  0xe4   : > { %v1202_v48 = vpop.f32.mrf.mxu2  ;;  %v5611_v8 = vpop.f32.mrf.mxu0 }
  0xe5   : > { %v977_v54 = vpop.f32.mrf.mxu3 }
  0xe6   : > { %v1068_v26 = vpop.f32.mrf.mxu1 }
  0xe7   : > { %v1069_v9 = vadd.f32 %v1068_v26, %v967_v52 }
  0xe9   : > { %v1222_v7 = vadd.f32 %v1202_v48, %v1069_v9 }
  0xec   : > { %v5615_v61 = vpop.f32.mrf.mxu2  ;;  %v972_v60 = vpop.f32.mrf.mxu0 }
  0xed   : > { %v5621_v59 = vpop.f32.mrf.mxu3 }
  0xee   : > { %1845 = vmatmul.bf16.gmra.mxu3 %v1760_v1  ;;  %v5617_v53 = vpop.f32.mrf.mxu1 }
  0xf2   : > { %1956 = vmatmul.bf16.gmra.mxu0 %v1867_v43 }
  0xf4   : > { %v1207_v6 = vpop.f32.mrf.mxu2  ;;  %v5623_v27 = vpop.f32.mrf.mxu0 }
  0xf5   : > { %v982_v47 = vpop.f32.mrf.mxu3 }
  0xf6   : > { %v1073_v55 = vpop.f32.mrf.mxu1 }
  0xf7   : > { %v1074_v28 = vadd.f32 %v1073_v55, %v972_v60 }
  0xf9   : > { %v1224_v10 = vadd.f32 %v1207_v6, %v1074_v28 }
  0xfc   : > { %v5627_v56 = vpop.f32.mrf.mxu2 }
  0xfd   : > { %v5631_v45 = vpop.f32.mrf.mxu3 }
  0xfe   : > { %1850 = vmatmul.bf16.gmra.mxu3 %v1761_v57  ;;  %v5629_v21 = vpop.f32.mrf.mxu1  ;;  %v4345_v57 = vld [vmem:[#allocation9 + $0x78] sm:$0xff] }
  0xff   : > { %v1490_v25 = vpop.f32.mrf.mxu0  ;;  %2159 = vmatpush.bf16.msra.mxu1 %v4345_v57 }
 0x104   : > { %v1212_v22 = vpop.f32.mrf.mxu2 }
 0x107   : > { %v1492_v13 = vpop.f32.mrf.mxu0 }
 0x108   : > { %v1078_v0 = vpop.f32.mrf.mxu1 }
 0x109   : > { %v1079_v40 = vadd.f32 %v1078_v0, %v977_v54  ;;  %v4344_v0 = vld [vmem:[#allocation9 + $0x70] sm:$0xff] }
 0x10a   : > { %2160 = vmatpush.bf16.msra.mxu1 %v4344_v0 }
 0x10b   : > { %v1226_v42 = vadd.f32 %v1212_v22, %v1079_v40  ;;  %v4336_v22 = vld [vmem:[#allocation9 + $0x30] sm:$0xff] }
 0x10c   : > { %v5633_v62 = vpop.f32.mrf.mxu2  ;;  %2261 = vmatpush.bf16.msra.mxu2 %v4336_v22  ;;  %v4361_v22 = vld [vmem:[#allocation9 + $0xf8] sm:$0xff] }
 0x10d   : > { %2577 = vmatpush.bf16.msrb.mxu0 %v4361_v22  ;;  %v4350_v22 = vld [vmem:[#allocation9 + $0xa0] sm:$0xff] }
 0x10f   : > { %v1495_v18 = vpop.f32.mrf.mxu0 }
 0x110   : > { %v5635_v31 = vpop.f32.mrf.mxu1 }
 0x111   : > { %v1384_v23 = vpop.f32.mrf.mxu3 }
 0x112   : > { %v1404_v39 = vadd.f32 %v1384_v23, %v1222_v7  ;;  %v1071_v23 = vadd.f32 %v5617_v53, %v5611_v8  ;;  %v5665_v8 = vld [vmem:[%s6276_s4] ss:$0 sm:$0xff] }
 0x114   : > { %v1510_v11 = vadd.f32 %v1490_v25, %v1404_v39  ;;  %v1217_v38 = vpop.f32.mrf.mxu2 }
 0x117   : > { %v5637_v16 = vpop.f32.mrf.mxu0 }
 0x118   : > { %v1083_v2 = vpop.f32.mrf.mxu1 }
 0x119   : > { %v1386_v35 = vpop.f32.mrf.mxu3  ;;  %v1084_v20 = vadd.f32 %v1083_v2, %v982_v47 }
 0x11b   : > { %v1228_v52 = vadd.f32 %v1217_v38, %v1084_v20  ;;  %v4335_v20 = vld [vmem:[#allocation9 + $0x28] sm:$0xff] }
 0x11c   : > { %v5649_v12 = vpop.f32.mrf.mxu2  ;;  %2262 = vmatpush.bf16.msra.mxu2 %v4335_v20 }
 0x11f   : > { %v1500_v33 = vpop.f32.mrf.mxu0 }
 0x120   : > { %v5645_v7 = vpop.f32.mrf.mxu1 }
 0x121   : > { %v1389_v36 = vpop.f32.mrf.mxu3 }
 0x122   : > { %v1406_v48 = vadd.f32 %v1389_v36, %v1224_v10 }
 0x124   : > { %v5639_v26 = vadd.f32 %v1495_v18, %v1406_v48  ;;  %v1730_v55 = vpop.f32.mrf.mxu2  ;;  %v1223_v18 = vadd.f32 %v5615_v61, %v1071_v23 }
 0x126   : > { %v1405_v2 = vadd.f32 %v1386_v35, %v1223_v18  ;;  %v4334_v35 = vld [vmem:[#allocation9 + $0x20] sm:$0xff] }
 0x127   : > { %v5643_v54 = vpop.f32.mrf.mxu0  ;;  %2263 = vmatpush.bf16.msra.mxu2 %v4334_v35 }
 0x128   : > { %v1596_v6 = vpop.f32.mrf.mxu1 }
 0x129   : > { %v5641_v9 = vpop.f32.mrf.mxu3  ;;  %v1616_v38 = vadd.f32 %v1596_v6, %v1510_v11  ;;  %v4342_v6 = vld [vmem:[#allocation9 + $0x60] sm:$0xff] }
 0x12b   : > { %v1750_v48 = vadd.f32 %v1730_v55, %v1616_v38  ;;  %v4353_v55 = vld [vmem:[#allocation9 + $0xb8] sm:$0xff]  ;;  %v4360_v38 = vld [vmem:[#allocation9 + $0xf0] sm:$0xff] }
 0x12c   : > { %v1732_v40 = vpop.f32.mrf.mxu2  ;;  %2443 = vmatpush.bf16.msrb.mxu3 %v4353_v55  ;;  %2578 = vmatpush.bf16.msrb.mxu0 %v4360_v38 }
 0x12f   : > { %v1505_v63 = vpop.f32.mrf.mxu0 }
 0x130   : > { %v1598_v25 = vpop.f32.mrf.mxu1 }
 0x131   : > { %v1394_v41 = vpop.f32.mrf.mxu3 }
 0x132   : > { %v1408_v1 = vadd.f32 %v1394_v41, %v1226_v42 }
 0x134   : > { %v5647_v60 = vadd.f32 %v1500_v33, %v1408_v1  ;;  %v1735_v41 = vpop.f32.mrf.mxu2 }
 0x137   : > { %v5653_v43 = vpop.f32.mrf.mxu0 }
 0x138   : > { %v1601_v36 = vpop.f32.mrf.mxu1 }
 0x139   : > { %v5651_v24 = vpop.f32.mrf.mxu3  ;;  %v1618_v23 = vadd.f32 %v1601_v36, %v5639_v26 }
 0x13f   : > { %v1942_v47 = vpop.f32.mrf.mxu0 }
 0x140   : > { %v1603_v57 = vpop.f32.mrf.mxu1 }
 0x141   : > { %v1399_v28 = vpop.f32.mrf.mxu3 }
 0x142   : > { %v1410_v49 = vadd.f32 %v1399_v28, %v1228_v52  ;;  %v4343_v52 = vld [vmem:[#allocation9 + $0x68] sm:$0xff] }
 0x143   : > { %2161 = vmatpush.bf16.msra.mxu1 %v4343_v52  ;;  %v1752_v52 = vadd.f32 %v1735_v41, %v1618_v23  ;;  %v1081_v23 = vadd.f32 %v5635_v31, %v5621_v59  ;;  %v6403_v31 = vld [vmem:[#allocation17_spill] sm:$0xff] }
 0x144   : > { %v5655_v10 = vadd.f32 %v1505_v63, %v1410_v49  ;;  %v1511_v63 = vadd.f32 %v1492_v13, %v1405_v2  ;;  %v1076_v13 = vadd.f32 %v5629_v21, %v5623_v27  ;;  %v4352_v2 = vld [vmem:[#allocation9 + $0xb0] sm:$0xff] }
 0x145   : > { %2444 = vmatpush.bf16.msrb.mxu3 %v4352_v2 }
 0x146   : > { %v1617_v28 = vadd.f32 %v1598_v25, %v1511_v63  ;;  %v4341_v63 = vld [vmem:[#allocation9 + $0x58] sm:$0xff] }
 0x147   : > { %v1944_v39 = vpop.f32.mrf.mxu0  ;;  %2162 = vmatpush.bf16.msra.mxu1 %v4342_v6 }
 0x148   : > { %v1751_v49 = vadd.f32 %v1732_v40, %v1617_v28  ;;  %v1225_v40 = vadd.f32 %v5627_v56, %v1076_v13  ;;  %v4333_v56 = vld [vmem:[#allocation9 + $0x18] sm:$0xff]  ;;  %v4359_v28 = vld [vmem:[#allocation9 + $0xe8] sm:$0xff] }
 0x149   : > { %v5657_v42 = vpop.f32.mrf.mxu3  ;;  %2264 = vmatpush.bf16.msra.mxu2 %v4333_v56  ;;  %2579 = vmatpush.bf16.msrb.mxu0 %v4359_v28  ;;  %v1227_v56 = vadd.f32 %v5633_v62, %v1081_v23  ;;  %v6404_v28 = vand.u32 7, %v6403_v31 }
 0x14a   : > { %v1407_v20 = vadd.f32 %v5641_v9, %v1225_v40  ;;  %v6411_v40 = vld [vmem:[#allocation18_spill] sm:$0xff] }
 0x14b   : > { %2163 = vmatpush.bf16.msra.mxu1 %v4341_v63  ;;  %v4349_v63 = vld [vmem:[#allocation9 + $0x98] sm:$0xff]  ;;  %vm5717_vm2 = vcmp.le.s32.totalorder %v6404_v28, 6  ;;  %v6412_v9 = vand.u32 7, %v6411_v40 }
 0x14c   : > { %v1513_v41 = vadd.f32 %v5637_v16, %v1407_v20  ;;  %v4332_v20 = vld [vmem:[#allocation9 + $0x10] sm:$0xff]  ;;  %vm5757_vm4 = vmpackc.low %vm5717_vm2, %vm5717_vm2 }
 0x14d   : > { %2265 = vmatpush.bf16.msra.mxu2 %v4332_v20  ;;  %v4339_v20 = vld [vmem:[#allocation9 + $0x48] sm:$0xff] }
 0x14e   : > { %v1619_v35 = vadd.f32 %v1603_v57, %v1513_v41  ;;  %v6400_v57 = vand.u32 7, %v5053_v5 }
 0x14f   : > { %v1947_v53 = vpop.f32.mrf.mxu0 }
 0x150   : > { %vm5699_vm12 = vcmp.le.s32.totalorder %v6400_v57, 6  ;;  %v4356_v57 = vld [vmem:[#allocation9 + $0xd0] sm:$0xff] }
 0x151   : > { %v1836_v33 = vpop.f32.mrf.mxu3  ;;  %vm2736_vm15 = vmpackc.low %vm5699_vm12, %vm5699_vm12  ;;  %vm2000_vm12 = vcmp.le.s32.totalorder %v6412_v9, 6 }
 0x152   : > { %v1856_v1 = vadd.f32 %v1836_v33, %v1750_v48 }
 0x154   : > { %v1962_v4 = vadd.f32 %v1942_v47, %v1856_v1  ;;  %v1737_v47 = vpop.f32.mrf.mxu2  ;;  %v4351_v1 = vld [vmem:[#allocation9 + $0xa8] sm:$0xff] }
 0x155   : > { %2445 = vmatpush.bf16.msrb.mxu3 %v4351_v1  ;;  %v4357_v1 = vld [vmem:[#allocation9 + $0xd8] sm:$0xff] }
 0x156   : > { %v1974_v25 = vadd.f32 %v5665_v8, %v1962_v4 }
 0x157   : > { %v1949_v36 = vpop.f32.mrf.mxu0 }
 0x158   : > { %v5674_v27 = vmax.f32 %v1974_v25, 0.0  ;;  %v1753_v25 = vadd.f32 %v1737_v47, %v1619_v35 }
 0x159   : > { %v1838_v61 = vpop.f32.mrf.mxu3  ;;  %2446 = vmatpush.bf16.msrb.mxu3 %v4350_v22 }
 0x15a   : > { %v1857_v11 = vadd.f32 %v1838_v61, %v1751_v49  ;;  %v6305_v49 = vrot.slane %v5674_v27, 7  ;;  %v1606_v61 = vpop.f32.mrf.mxu1 }
 0x15b   : > { %v1620_v35 = vadd.f32 %v1606_v61, %v5647_v60 }
 0x15c   : > { %v1963_v0 = vadd.f32 %v1944_v39, %v1857_v11  ;;  %v6304_v11 = vrot.slane %v5674_v27, 1  ;;  %v1740_v55 = vpop.f32.mrf.mxu2 }
 0x15d   : > { %2447 = vmatpush.bf16.msrb.mxu3 %v4349_v63  ;;  %v1754_v61 = vadd.f32 %v1740_v55, %v1620_v35  ;;  %v4347_v35 = vld [vmem:[#allocation9 + $0x88] sm:$0xff] }
 0x15e   : > { %v1975_v18 = vadd.f32 %v5665_v8, %v1963_v0 }
 0x160   : > { %v5676_v21 = vmax.f32 %v1975_v18, 0.0 }
 0x161   : > { %v1841_v39 = vpop.f32.mrf.mxu3 }
 0x162   : > { %v2007_v33 = vrot.slane %v5676_v21, 7  ;;  %v1858_v48 = vadd.f32 %v1841_v39, %v1752_v52  ;;  %v2298_v26 = vrot.slane %v5676_v21, 1  ;;  %v4340_v52 = vld [vmem:[#allocation9 + $0x50] sm:$0xff] }
 0x163   : > { %2164 = vmatpush.bf16.msra.mxu1 %v4340_v52 }
 0x164   : > { %v1964_v4 = vadd.f32 %v1947_v53, %v1858_v48  ;;  %v2020_v16 = vsel %vm6315_vm1, %v6305_v49, %v2007_v33  ;;  %v4358_v53 = vld [vmem:[#allocation9 + $0xe0] sm:$0xff]  ;;  %v2312_v13 = vsel %vm6308_vm11, %v6304_v11, %v2298_v26  ;;  %v1742_v63 = vpop.f32.mrf.mxu2  ;;  %v6416_v11 = vld [vmem:[#allocation22_spill] sm:$0xff] }
 0x165   : > { %2580 = vmatpush.bf16.msrb.mxu0 %v4358_v53  ;;  %v5705_v2 = vpack.c.bf16 %v2020_v16, %v2020_v16  ;;  %v5707_v47 = vpack.c.bf16 %v2312_v13, %v2312_v13  ;;  %v1608_v13 = vpop.f32.mrf.mxu1  ;;  %v6417_v49 = vand.u32 7, %v6416_v11 }
 0x166   : > { %v1976_v6 = vadd.f32 %v5665_v8, %v1964_v4 }
 0x167   : > { %v2032_v16 = vsel %vm5267_vm9, %v5705_v2, 0  ;;  %v2744_v60 = vsel %vm2736_vm15, %v5707_v47, 0  ;;  %2165 = vmatpush.bf16.msra.mxu1 %v4339_v20  ;;  %vm2001_vm2 = vcmp.le.s32.totalorder %v6417_v49, 6 }
 0x168   : > { %v5695_v0 = vmax.f32 %v1976_v6, 0.0  ;;  %v1952_v6 = vpop.f32.mrf.mxu0  ;;  %v5761_v55 = vunpack.c.l.b16 %v2032_v16  ;;  %v2777_v28 = vunpack.c.l.b16 %v2744_v60 }
 0x169   : > { %v1843_v18 = vpop.f32.mrf.mxu3  ;;  %2581 = vmatpush.bf16.msrb.mxu0 %v4357_v1 }
 0x16a   : > { %v1859_v38 = vadd.f32 %v1843_v18, %v1753_v25  ;;  %v2008_v39 = vrot.slane %v5695_v0, 7  ;;  %v2299_v48 = vrot.slane %v5695_v0, 1  ;;  %v4348_v25 = vld [vmem:[#allocation9 + $0x90] sm:$0xff] }
 0x16b   : > { %2448 = vmatpush.bf16.msrb.mxu3 %v4348_v25 }
 0x16c   : > { %v1965_v59 = vadd.f32 %v1949_v36, %v1859_v38  ;;  %v2019_v62 = vsel %vm6315_vm1, %v2007_v33, %v2008_v39  ;;  %v2311_v4 = vsel %vm6308_vm11, %v2298_v26, %v2299_v48  ;;  %v2910_v33 = vsel %vm5462_vm0, %v5705_v2, 0  ;;  %v1745_v16 = vpop.f32.mrf.mxu2 }
 0x16d   : > { %v5728_v36 = vpack.c.bf16 %v2019_v62, %v2019_v62  ;;  %v5733_v22 = vpack.c.bf16 %v2311_v4, %v2311_v4  ;;  %v1409_v26 = vadd.f32 %v5651_v24, %v1227_v56  ;;  %2582 = vmatpush.bf16.msrb.mxu0 %v4356_v57  ;;  %v5776_v41 = vunpack.c.l.b16 %v2910_v33  ;;  %v4331_v4 = vld [vmem:[#allocation9 + $0x8] sm:$0xff] }
 0x16e   : > { %v1977_v53 = vadd.f32 %v5665_v8, %v1965_v59  ;;  %2266 = vmatpush.bf16.msra.mxu2 %v4331_v4  ;;  %v4354_v4 = vld [vmem:[#allocation9 + $0xc0] sm:$0xff] }
 0x16f   : > { %v2033_v23 = vsel %vm5283_vm10, %v5728_v36, 0  ;;  %v2911_v18 = vsel %vm5162_vm6, %v5728_v36, 0  ;;  %v2745_v59 = vsel %vm5757_vm4, %v5733_v22, 0  ;;  %v3234_v31 = vsel %vm2736_vm15, %v5733_v22, 0  ;;  %6410 = vst [vmem:[#allocation23_spill] sm:$0xff] %v5776_v41  ;;  %2449 = vmatpush.bf16.msrb.mxu3 %v4347_v35  ;;  %vm5796_vm15 = vmpackc.low %vm2000_vm12, %vm2000_vm12 }
 0x170   : > { %v5752_v38 = vmax.f32 %v1977_v53, 0.0  ;;  %v5763_v52 = vunpack.c.l.b16 %v2033_v23  ;;  %v5765_v56 = vunpack.c.l.b16 %v2911_v18  ;;  %v2778_v25 = vunpack.c.l.b16 %v2745_v59  ;;  %v4355_v23 = vld [vmem:[#allocation9 + $0xc8] sm:$0xff]  ;;  %v4338_v18 = vld [vmem:[#allocation9 + $0x40] sm:$0xff]  ;;  %vm5831_vm12 = vmpackc.low %vm2001_vm2, %vm2001_vm2 }
 0x171   : > { %v1846_v1 = vpop.f32.mrf.mxu3  ;;  %v1515_v57 = vadd.f32 %v5643_v54, %v1409_v26  ;;  %2583 = vmatpush.bf16.msrb.mxu0 %v4355_v23  ;;  %2166 = vmatpush.bf16.msra.mxu1 %v4338_v18  ;;  %v1611_v18 = vpop.f32.mrf.mxu1 }
 0x172   : > { %6409 = vst [vmem:[#allocation29_spill] sm:$0xff] %v5765_v56  ;;  %v1860_v62 = vadd.f32 %v1846_v1, %v1754_v61  ;;  %v2300_v53 = vrot.slane %v5752_v38, 1  ;;  %v2009_v60 = vrot.slane %v5752_v38, 7  ;;  %v4330_v61 = vld [vmem:[#allocation9] sm:$0xff]  ;;  %v5787_v1 = vpack.c.b16 %v2778_v25, %v2777_v28 }
 0x173   : > { %v1621_v26 = vadd.f32 %v1608_v13, %v1515_v57  ;;  %v4346_v28 = vld [vmem:[#allocation9 + $0x80] sm:$0xff]  ;;  %2267 = vmatpush.bf16.msra.mxu2 %v4330_v61 }
 0x174   : > { %v1966_v33 = vadd.f32 %v1952_v6, %v1860_v62  ;;  %v2310_v20 = vsel %vm6308_vm11, %v2299_v48, %v2300_v53  ;;  %6413 = vst [vmem:[#allocation26_spill] sm:$0xff] %v5787_v1  ;;  %v1954_v48 = vpop.f32.mrf.mxu0  ;;  %v2018_v25 = vsel %vm6315_vm1, %v2008_v39, %v2009_v60  ;;  %2450 = vmatpush.bf16.msrb.mxu3 %v4346_v28  ;;  %v4381_v62 = vld [vmem:[#allocation9 + $0x198] sm:$0xff] }
 0x175   : > { %v5791_v54 = vpack.c.bf16 %v2310_v20, %v2310_v20  ;;  %v1755_v57 = vadd.f32 %v1742_v63, %v1621_v26  ;;  %2584 = vmatpush.bf16.msrb.mxu0 %v4354_v4  ;;  %v1086_v20 = vadd.f32 %v5645_v7, %v5631_v45  ;;  %v5815_v39 = vpack.c.bf16 %v2018_v25, %v2018_v25  ;;  %v4377_v7 = vld [vmem:[#allocation9 + $0x178] sm:$0xff] }
 0x176   : > { %v1978_v6 = vadd.f32 %v5665_v8, %v1966_v33  ;;  %v3267_v63 = vunpack.c.l.b16 %v3234_v31  ;;  %v1622_v45 = vadd.f32 %v1611_v18, %v5655_v10  ;;  %v4369_v4 = vld [vmem:[#allocation9 + $0x138] sm:$0xff] }
 0x177   : > { %v3235_v35 = vsel %vm5757_vm4, %v5791_v54, 0  ;;  %v2746_v13 = vsel %vm5796_vm15, %v5791_v54, 0  ;;  %v1229_v26 = vadd.f32 %v5649_v12, %v1086_v20  ;;  %v2034_v10 = vsel %vm5328_vm13, %v5815_v39, 0  ;;  %2841 = vmatpush.bf16.msrb.mxu2 %v4377_v7  ;;  %2683 = vmatpush.bf16.msrb.mxu1 %v4369_v4 }
 0x178   : > { %v5810_v23 = vmax.f32 %v1978_v6, 0.0  ;;  %v3268_v33 = vunpack.c.l.b16 %v3235_v35 }
 0x179   : > { %v1848_v40 = vpop.f32.mrf.mxu3 }
 0x17a   : > { %v2301_v9 = vrot.slane %v5810_v23, 1  ;;  %v1861_v59 = vadd.f32 %v1848_v40, %v1755_v57  ;;  %v2010_v61 = vrot.slane %v5810_v23, 7  ;;  %v5828_v11 = vpack.c.b16 %v3268_v33, %v3267_v63 }
 0x17c   : > { %v1967_v6 = vadd.f32 %v1954_v48, %v1861_v59  ;;  %v2309_v28 = vsel %vm6308_vm11, %v2300_v53, %v2301_v9  ;;  %v2017_v25 = vsel %vm6315_vm1, %v2009_v60, %v2010_v61  ;;  %6418 = vst [vmem:[#allocation24_spill] sm:$0xff] %v5828_v11  ;;  %v1411_v53 = vadd.f32 %v5657_v42, %v1229_v26  ;;  %v4376_v60 = vld [vmem:[#allocation9 + $0x170] sm:$0xff]  ;;  %v1957_v20 = vpop.f32.mrf.mxu0 }
 0x17d   : > { %v5824_v35 = vpack.c.bf16 %v2309_v28, %v2309_v28  ;;  %v5835_v12 = vpack.c.bf16 %v2017_v25, %v2017_v25  ;;  %v1756_v59 = vadd.f32 %v1745_v16, %v1622_v45  ;;  %v4368_v48 = vld [vmem:[#allocation9 + $0x130] sm:$0xff]  ;;  %v5852_v42 = vunpack.c.l.b16 %v2746_v13  ;;  %v1613_v25 = vpop.f32.mrf.mxu1  ;;  %2842 = vmatpush.bf16.msrb.mxu2 %v4376_v60  ;;  %v1747_v60 = vpop.f32.mrf.mxu2 }
 0x17e   : > { %v1979_v49 = vadd.f32 %v5665_v8, %v1967_v6  ;;  %v2912_v16 = vsel %vm5267_vm9, %v5815_v39, 0  ;;  %v5857_v26 = vunpack.c.l.b16 %v2034_v10  ;;  %2684 = vmatpush.bf16.msrb.mxu1 %v4368_v48  ;;  %v1517_v44 = vadd.f32 %v5653_v43, %v1411_v53 }
 0x17f   : > { %v3236_v57 = vsel %vm5796_vm15, %v5824_v35, 0  ;;  %v2747_v18 = vsel %vm5831_vm12, %v5824_v35, 0  ;;  %v2035_v33 = vsel %vm5347_vm14, %v5835_v12, 0  ;;  %6421 = vst [vmem:[#allocation21_spill] sm:$0xff] %v5852_v42  ;;  %v2913_v45 = vsel %vm5283_vm10, %v5835_v12, 0 }
 0x180   : > { %v5847_v40 = vmax.f32 %v1979_v49, 0.0  ;;  %v5859_v6 = vunpack.c.l.b16 %v2035_v33  ;;  %v5861_v28 = vunpack.c.l.b16 %v2747_v18  ;;  %v5872_v18 = vunpack.c.l.b16 %v2912_v16 }
 0x181   : > { %v1851_v63 = vpop.f32.mrf.mxu3  ;;  %v5874_v33 = vunpack.c.l.b16 %v2913_v45  ;;  %v1623_v45 = vadd.f32 %v1613_v25, %v1517_v44  ;;  %vm6434_vm9 = vcmp.lt.s32.totalorder %v5053_v5, 7  ;;  %v4386_v44 = vld [vmem:[#allocation9 + $0x1c0] sm:$0xff] }
 0x182   : > { %6422 = vst [vmem:[#allocation25_spill] sm:$0xff] %v5861_v28  ;;  %v2011_v7 = vrot.slane %v5847_v40, 7  ;;  %v2302_v13 = vrot.slane %v5847_v40, 1  ;;  %v1862_v4 = vadd.f32 %v1851_v63, %v1756_v59  ;;  %v6425_v63 = vld [vmem:[#allocation27_spill] sm:$0xff]  ;;  %v6431_v59 = vld [vmem:[#allocation28_spill] sm:$0xff] }
 0x183   : > { %6423 = vst [vmem:[#allocation19_spill] sm:$0xff] %v5872_v18  ;;  %v6426_v49 = vand.u32 7, %v6425_v63  ;;  %v1757_v53 = vadd.f32 %v1747_v60, %v1623_v45  ;;  %v6432_v16 = vand.u32 7, %v6431_v59 }
 0x184   : > { %6424 = vst [vmem:[#allocation17_spill] sm:$0xff] %v5874_v33  ;;  %v1968_v34 = vadd.f32 %v1957_v20, %v1862_v4  ;;  %v2308_v11 = vsel %vm6308_vm11, %v2301_v9, %v2302_v13  ;;  %v2016_v43 = vsel %vm6315_vm1, %v2010_v61, %v2011_v7  ;;  %v2055_v9 = vpack.c.bf16 %v5674_v27, %v5674_v27  ;;  %v1959_v45 = vpop.f32.mrf.mxu0  ;;  %v4367_v33 = vld [vmem:[#allocation9 + $0x128] sm:$0xff] }
 0x185   : > { %v5881_v48 = vpack.c.bf16 %v2308_v11, %v2308_v11  ;;  %vm2002_vm2 = vcmp.le.s32.totalorder %v6426_v49, 6  ;;  %v5897_v4 = vunpack.c.l.b16 %v3236_v57  ;;  %v5905_v61 = vpack.c.bf16 %v2016_v43, %v2016_v43  ;;  %2685 = vmatpush.bf16.msrb.mxu1 %v4367_v33 }
 0x186   : > { %v1980_v10 = vadd.f32 %v5665_v8, %v1968_v34  ;;  %vm5901_vm11 = vmpackc.low %vm2002_vm2, %vm2002_vm2  ;;  %vm2003_vm2 = vcmp.le.s32.totalorder %v6432_v16, 6  ;;  %v3075_v14 = vsel %vm5130_vm5, %v2055_v9, 0 }
 0x187   : > { %v3237_v11 = vsel %vm5831_vm12, %v5881_v48, 0  ;;  %6427 = vst [vmem:[#allocation18_spill] sm:$0xff] %v5897_v4  ;;  %v2748_v25 = vsel %vm5901_vm11, %v5881_v48, 0  ;;  %v2036_v4 = vsel %vm5506_vm7, %v5905_v61, 0 }
 0x188   : > { %v5895_v20 = vmax.f32 %v1980_v10, 0.0  ;;  %v5899_v49 = vunpack.c.l.b16 %v3237_v11  ;;  %v2063_v11 = vsel %vm5116_vm3, %v2055_v9, 0 }
 0x189   : > { %v1853_v34 = vpop.f32.mrf.mxu3  ;;  %v2096_v9 = vunpack.c.l.b16 %v2063_v11 }
 0x18a   : > { %6428 = vst [vmem:[#allocation22_spill] sm:$0xff] %v5899_v49  ;;  %v2012_v63 = vrot.slane %v5895_v20, 7  ;;  %v2303_v10 = vrot.slane %v5895_v20, 1  ;;  %v1863_v60 = vadd.f32 %v1853_v34, %v1757_v53  ;;  %v4375_v34 = vld [vmem:[#allocation9 + $0x168] sm:$0xff]  ;;  %v5965_v49 = vunpack.c.l.b16 %v2748_v25 }
 0x18b   : > { %2843 = vmatpush.bf16.msrb.mxu2 %v4375_v34  ;;  %v2914_v34 = vsel %vm5328_vm13, %v5905_v61, 0  ;;  %v6445_v25 = vrot.slane %v5674_v27, 7 }
 0x18c   : > { %v1969_v58 = vadd.f32 %v1959_v45, %v1863_v60  ;;  %v2015_v18 = vsel %vm6315_vm1, %v2011_v7, %v2012_v63  ;;  %v2307_v53 = vsel %vm6434_vm9, %v2302_v13, %v2303_v10  ;;  %v2347_v7 = vsel %vm5757_vm4, %v5707_v47, 0  ;;  %vm5935_vm1 = vmpackc.low %vm2003_vm2, %vm2003_vm2  ;;  %v4374_v45 = vld [vmem:[#allocation9 + $0x160] sm:$0xff]  ;;  %6442 = vst [vmem:[#allocation20_spill] sm:$0xff] %v5965_v49 }
 0x18d   : > { %v5924_v57 = vpack.c.bf16 %v2015_v18, %v2015_v18  ;;  %v5929_v59 = vpack.c.bf16 %v2307_v53, %v2307_v53  ;;  %v5939_v13 = vunpack.c.l.b16 %v3075_v14  ;;  %v2481_v18 = vsel %vm5162_vm6, %v5705_v2, 0  ;;  %v4366_v53 = vld [vmem:[#allocation9 + $0x120] sm:$0xff] }
 0x18e   : > { %v1981_v16 = vadd.f32 %v5665_v8, %v1969_v58  ;;  %v6438_v8 = vand.u32 7, %v5385_v51  ;;  %v5958_v2 = vunpack.c.l.b16 %v2036_v4  ;;  %2686 = vmatpush.bf16.msrb.mxu1 %v4366_v53  ;;  %v5983_v28 = vunpack.c.l.b16 %v2914_v34 }
 0x18f   : > { %6435 = vst [vmem:[#allocation27_spill] sm:$0xff] %v5924_v57  ;;  %v2037_v58 = vsel %vm5514_vm8, %v5924_v57, 0  ;;  %v2749_v14 = vsel %vm5935_vm1, %v5929_v59, 0  ;;  %2844 = vmatpush.bf16.msrb.mxu2 %v4374_v45  ;;  %vm6444_vm4 = vcmp.lt.s32.totalorder %v5053_v5, 1  ;;  %v6447_v53 = vrot.slane %v5674_v27, 1 }
 0x190   : > { %vm5949_vm9 = vcmp.le.s32.totalorder %v6438_v8, 6  ;;  %v5956_v11 = vmax.f32 %v1981_v16, 0.0  ;;  %v5960_v33 = vunpack.c.l.b16 %v2037_v58  ;;  %v5967_v51 = vunpack.c.l.b16 %v2749_v14  ;;  %vm6446_vm2 = vmmov %vm6444_vm4 }
 0x191   : > { %v2915_v8 = vsel %vm5347_vm14, %v5924_v57, 0  ;;  %v3238_v16 = vsel %vm5901_vm11, %v5929_v59, 0  ;;  %vm6448_vm8 = vcmp.lt.s32.totalorder %v5053_v5, 7  ;;  %v2380_v49 = vunpack.c.l.b16 %v2347_v7 }
 0x192   : > { %6441 = vst [vmem:[#allocation28_spill] sm:$0xff] %v5956_v11  ;;  %v2013_v4 = vrot.slane %v5956_v11, 7  ;;  %v2304_v58 = vrot.slane %v5956_v11, 1  ;;  %v2054_v42 = vpack.c.bf16 %v5956_v11, %v5956_v11  ;;  %v5985_v41 = vunpack.c.l.b16 %v2915_v8 }
 0x193   : > { %6443 = vst [vmem:[#allocation34_spill] sm:$0xff] %v5967_v51  ;;  %v6449_v51 = vand.u32 7, %v5382_v15 }
 0x194   : > { %v2062_v1 = vsel %vm5130_vm5, %v2054_v42, 0  ;;  %v2014_v57 = vsel %vm6444_vm4, %v2012_v63, %v2013_v4  ;;  %v2021_v45 = vsel %vm6446_vm2, %v2013_v4, %v6445_v25  ;;  %v2313_v34 = vsel %vm6448_vm8, %v2304_v58, %v6447_v53  ;;  %vm6452_vm4 = vmmov %vm6448_vm8 }
 0x195   : > { %v2095_v8 = vunpack.c.l.b16 %v2062_v1  ;;  %v6001_v14 = vpack.c.bf16 %v2014_v57, %v2014_v57  ;;  %v2023_v56 = vpack.c.bf16 %v2021_v45, %v2021_v45  ;;  %v2314_v11 = vpack.c.bf16 %v2313_v34, %v2313_v34  ;;  %vm2345_vm2 = vmpackc.low %vm5949_vm9, %vm5949_vm9 }
 0x196   : > { %vm6005_vm13 = vcmp.le.s32.totalorder %v6449_v51, 6  ;;  %v2306_v4 = vsel %vm6452_vm4, %v2303_v10, %v2304_v58  ;;  %v2514_v53 = vunpack.c.l.b16 %v2481_v18  ;;  %v3074_v18 = vsel %vm5116_vm3, %v2054_v42, 0 }
 0x197   : > { %v2103_v57 = vpack.c.b16 %v2096_v9, %v2095_v8  ;;  %v2030_v7 = vsel %vm5130_vm5, %v6001_v14, 0  ;;  %v2031_v15 = vsel %vm5162_vm6, %v2023_v56, 0  ;;  %v2346_v51 = vsel %vm5130_vm5, %v2314_v11, 0  ;;  %vm6035_vm6 = vmpackc.low %vm6005_vm13, %vm6005_vm13 }
 0x198   : > { %v2196_v5 = vunpack.c.l.b16 %v2030_v7  ;;  %v2197_v10 = vunpack.c.l.b16 %v2031_v15  ;;  %v2379_v58 = vunpack.c.l.b16 %v2346_v51  ;;  %v2480_v25 = vsel %vm5462_vm0, %v2023_v56, 0  ;;  %v4407_v7 = vld [vmem:[#allocation11 + $0x28] sm:$0xff] }
 0x199   : > { %2167 = vmatmul.bf16.vlgmr.msra.gmra.mxu1 %v2103_v57  ;;  %v2513_v45 = vunpack.c.l.b16 %v2480_v25  ;;  %v6025_v9 = vpack.c.bf16 %v2306_v4, %v2306_v4  ;;  %v2751_v3 = vsel %vm2345_vm2, %v2314_v11, 0  ;;  %v2056_v57 = vpack.c.bf16 %v5676_v21, %v5676_v21  ;;  %v4393_v25 = vld [vmem:[#allocation9 + $0x1f8] sm:$0xff] }
 0x19a   : > { %v2204_v34 = vpack.c.b16 %v2197_v10, %v2196_v5  ;;  %v2387_v8 = vpack.c.b16 %v2380_v49, %v2379_v58  ;;  %v2784_v50 = vunpack.c.l.b16 %v2751_v3  ;;  %v2916_v49 = vsel %vm5506_vm7, %v6001_v14, 0  ;;  %v4373_v10 = vld [vmem:[#allocation9 + $0x158] sm:$0xff]  ;;  %3165 = vmatpush.bf16.msra.mxu0 %v4393_v25 }
 0x19b   : > { %v2521_v4 = vpack.c.b16 %v2514_v53, %v2513_v45  ;;  %v2750_v15 = vsel %vm6035_vm6, %v6025_v9, 0  ;;  %v2057_v63 = vpack.c.bf16 %v5695_v0, %v5695_v0  ;;  %v2917_v42 = vsel %vm5130_vm5, %v2023_v56, 0  ;;  %v4385_v58 = vld [vmem:[#allocation9 + $0x1b8] sm:$0xff]  ;;  %2845 = vmatpush.bf16.msrb.mxu2 %v4373_v10 }
 0x19c   : > { %2268 = vmatmul.bf16.vlgmr.msra.gmra.mxu2 %v2204_v34  ;;  %2451 = vmatmul.bf16.vlgmr.msrb.gmra.mxu3 %v2387_v8  ;;  %v2783_v51 = vunpack.c.l.b16 %v2750_v15  ;;  %v3241_v5 = vsel %vm5130_vm5, %v5707_v47, 0  ;;  %v6056_v45 = vunpack.c.l.b16 %v2916_v49  ;;  %v6058_v53 = vunpack.c.l.b16 %v2917_v42  ;;  %v4365_v8 = vld [vmem:[#allocation9 + $0x118] sm:$0xff]  ;;  %v4372_v49 = vld [vmem:[#allocation9 + $0x150] sm:$0xff] }
 0x19d   : > { %2585 = vmatmul.bf16.vlgmr.msrb.gmra.mxu0 %v2521_v4  ;;  %v6060_v3 = vunpack.c.l.b16 %v3074_v18  ;;  %v3239_v34 = vsel %vm5935_vm1, %v6025_v9, 0  ;;  %v6067_v15 = vunpack.c.l.b16 %v3238_v16  ;;  %v3240_v43 = vsel %vm6035_vm6, %v2314_v11, 0  ;;  %3007 = vmatpush.bf16.msra.mxu3 %v4385_v58  ;;  %v4384_v4 = vld [vmem:[#allocation9 + $0x1b0] sm:$0xff] }
 0x19e   : > { %v6065_v56 = vpack.c.b16 %v2784_v50, %v2783_v51  ;;  %v6069_v47 = vunpack.c.l.b16 %v3239_v34  ;;  %v2954_v18 = vpack.c.b16 %v6058_v53, %v6056_v45  ;;  %v6077_v1 = vunpack.c.l.b16 %v3240_v43  ;;  %2687 = vmatpush.bf16.msrb.mxu1 %v4365_v8  ;;  %v4392_v11 = vld [vmem:[#allocation9 + $0x1f0] sm:$0xff]  ;;  %v4391_v8 = vld [vmem:[#allocation9 + $0x1e8] sm:$0xff] }
 0x19f   : > { %v3112_v42 = vpack.c.b16 %v5939_v13, %v6060_v3  ;;  %v6079_v50 = vunpack.c.l.b16 %v3241_v5  ;;  %v2065_v16 = vsel %vm5116_vm3, %v2057_v63, 0  ;;  %v4364_v51 = vld [vmem:[#allocation9 + $0x110] sm:$0xff]  ;;  %v2064_v34 = vsel %vm5116_vm3, %v2056_v57, 0  ;;  %2846 = vmatpush.bf16.msrb.mxu2 %v4372_v49  ;;  %v4383_v63 = vld [vmem:[#allocation9 + $0x1a8] sm:$0xff]  ;;  %3166 = vmatpush.bf16.msra.mxu0 %v4392_v11 }
 0x1a0   : > { %v2098_v43 = vunpack.c.l.b16 %v2065_v16  ;;  %v2349_v5 = vsel %vm5831_vm12, %v5791_v54, 0  ;;  %v2483_v25 = vsel %vm5283_vm10, %v5815_v39, 0  ;;  %v2097_v10 = vunpack.c.l.b16 %v2064_v34  ;;  %v4382_v39 = vld [vmem:[#allocation9 + $0x1a0] sm:$0xff] }
 0x1a1   : > { %v3278_v58 = vpack.c.b16 %v6079_v50, %v6077_v1  ;;  %3008 = vmatpush.bf16.msra.mxu3 %v4384_v4  ;;  %v2348_v57 = vsel %vm5796_vm15, %v5733_v22, 0  ;;  %v2382_v16 = vunpack.c.l.b16 %v2349_v5  ;;  %vm6455_vm5 = vnez %v6360_v32  ;;  %v4363_v5 = vld [vmem:[#allocation9 + $0x108] sm:$0xff] }
 0x1a2   : > { %2688 = vmatpush.bf16.msrb.mxu1 %v4364_v51  ;;  %v2482_v54 = vsel %vm6455_vm5, %v5728_v36, 0  ;;  %v6101_v31 = vpack.c.b16 %v2098_v43, %v2097_v10  ;;  %v2516_v4 = vunpack.c.l.b16 %v2483_v25  ;;  %v2381_v49 = vunpack.c.l.b16 %v2348_v57  ;;  %v4390_v51 = vld [vmem:[#allocation9 + $0x1e0] sm:$0xff]  ;;  %v4371_v36 = vld [vmem:[#allocation9 + $0x148] sm:$0xff]  ;;  %v4389_v43 = vld [vmem:[#allocation9 + $0x1d8] sm:$0xff] }
 0x1a3   : > { %3167 = vmatpush.bf16.msra.mxu0 %v4391_v8  ;;  %v2515_v46 = vunpack.c.l.b16 %v2482_v54  ;;  %v6456_v22 = vpack.c.b16 %v5763_v52, %v5761_v55  ;;  %v2059_v32 = vpack.c.bf16 %v5810_v23, %v5810_v23  ;;  %v2058_v10 = vpack.c.bf16 %v5752_v38, %v5752_v38  ;;  %2847 = vmatpush.bf16.msrb.mxu2 %v4371_v36  ;;  %v4370_v25 = vld [vmem:[#allocation9 + $0x140] sm:$0xff]  ;;  %v4388_v57 = vld [vmem:[#allocation9 + $0x1d0] sm:$0xff]  ;;  %v4409_v36 = vld [vmem:[#allocation11 + $0x38] sm:$0xff] }
 0x1a4   : > { %v2388_v11 = vpack.c.b16 %v2382_v16, %v2381_v49  ;;  %v4362_v52 = vld [vmem:[#allocation9 + $0x100] sm:$0xff]  ;;  %v2351_v54 = vsel %vm5935_vm1, %v5881_v48, 0  ;;  %v2485_v49 = vsel %vm5347_vm14, %v5905_v61, 0  ;;  %vm6457_vm10 = vnez %v6368_v17  ;;  %v4387_v48 = vld [vmem:[#allocation9 + $0x1c8] sm:$0xff] }
 0x1a5   : > { %3009 = vmatpush.bf16.msra.mxu3 %v4383_v63  ;;  %v2522_v34 = vpack.c.b16 %v2516_v4, %v2515_v46  ;;  %v4380_v63 = vld [vmem:[#allocation9 + $0x190] sm:$0xff]  ;;  %v2067_v55 = vsel %vm5116_vm3, %v2059_v32, 0  ;;  %v2066_v8 = vsel %vm5116_vm3, %v2058_v10, 0  ;;  %v4379_v4 = vld [vmem:[#allocation9 + $0x188] sm:$0xff]  ;;  %v4378_v61 = vld [vmem:[#allocation9 + $0x180] sm:$0xff]  ;;  %v6458_v17 = vpack.c.b16 %v5859_v6, %v5857_v26 }
 0x1a6   : > { %2689 = vmatpush.bf16.msrb.mxu1 %v4363_v5  ;;  %v2100_v16 = vunpack.c.l.b16 %v2067_v55  ;;  %v2099_v46 = vunpack.c.l.b16 %v2066_v8  ;;  %v2060_v10 = vpack.c.bf16 %v5847_v40, %v5847_v40  ;;  %v4400_v5 = vld [vmem:[#allocation9 + $0x230] sm:$0xff]  ;;  %vm6459_vm1 = vnez %v6389_v19 }
 0x1a7   : > { %3168 = vmatpush.bf16.msra.mxu0 %v4390_v51  ;;  %2848 = vmatpush.bf16.msrb.mxu2 %v4370_v25  ;;  %v2484_v51 = vsel %vm6457_vm10, %v5835_v12, 0  ;;  %v2061_v12 = vpack.c.bf16 %v5895_v20, %v5895_v20  ;;  %v2353_v25 = vsel %vm2345_vm2, %v6025_v9, 0  ;;  %v2487_v55 = vsel %vm6459_vm1, %v6001_v14, 0 }
 0x1a8   : > { %v6127_v60 = vpack.c.b16 %v2100_v16, %v2099_v46  ;;  %v2517_v30 = vunpack.c.l.b16 %v2484_v51  ;;  %v2068_v26 = vsel %vm5116_vm3, %v2060_v10, 0  ;;  %v2352_v37 = vsel %vm6035_vm6, %v5929_v59, 0  ;;  %v4399_v59 = vld [vmem:[#allocation9 + $0x228] sm:$0xff]  ;;  %v4406_v46 = vld [vmem:[#allocation11 + $0x20] sm:$0xff]  ;;  %v6476_v10 = vld [vmem:[#allocation20_spill] sm:$0xff] }
 0x1a9   : > { %2172 = vmatmul.bf16.gmra.mxu1 %v6101_v31  ;;  %3010 = vmatpush.bf16.msra.mxu3 %v4382_v39  ;;  %v2350_v39 = vsel %vm5901_vm11, %v5824_v35, 0  ;;  %v2386_v8 = vunpack.c.l.b16 %v2353_v25  ;;  %v2520_v9 = vunpack.c.l.b16 %v2487_v55  ;;  %v6461_v14 = vpack.c.b16 %v5960_v33, %v5958_v2  ;;  %v6463_v2 = vld [vmem:[#allocation26_spill] sm:$0xff]  ;;  %v6464_v33 = vld [vmem:[#allocation29_spill] sm:$0xff]  ;;  %v6486_v25 = vld [vmem:[#allocation24_spill] sm:$0xff] }
 0x1aa   : > { %2690 = vmatpush.bf16.msrb.mxu1 %v4362_v52  ;;  %v2101_v52 = vunpack.c.l.b16 %v2068_v26  ;;  %v6482_v26 = vld [vmem:[#allocation18_spill] sm:$0xff] }
 0x1ab   : > { %3169 = vmatpush.bf16.msra.mxu0 %v4389_v43  ;;  %3432 = vmatpush.bf16.msra.mxu2 %v4409_v36  ;;  %v4408_v43 = vld [vmem:[#allocation11 + $0x30] sm:$0xff] }
 0x1ac   : > { %2273 = vmatmul.bf16.gmra.mxu2 %v6456_v22  ;;  %2456 = vmatmul.bf16.gmra.mxu3 %v2388_v11  ;;  %v2384_v11 = vunpack.c.l.b16 %v2351_v54  ;;  %v2383_v22 = vunpack.c.l.b16 %v2350_v39  ;;  %v2385_v54 = vunpack.c.l.b16 %v2352_v37  ;;  %v6462_v39 = vpack.c.bf16 %v5676_v21, %v5674_v27  ;;  %v6468_v21 = vld [vmem:[#allocation25_spill] sm:$0xff] }
 0x1ad   : > { %2590 = vmatmul.bf16.gmra.mxu0 %v2522_v34  ;;  %3011 = vmatpush.bf16.msra.mxu3 %v4381_v62  ;;  %v2518_v34 = vunpack.c.l.b16 %v2485_v49  ;;  %v4401_v62 = vld [vmem:[#allocation9 + $0x238] sm:$0xff]  ;;  %v6467_v27 = vpack.c.bf16 %v5752_v38, %v5695_v0  ;;  %v4394_v0 = vld [vmem:[#allocation9 + $0x200] sm:$0xff]  ;;  %v6474_v38 = vpack.c.bf16 %v5847_v40, %v5810_v23  ;;  %v6481_v40 = vld [vmem:[#allocation22_spill] sm:$0xff] }
 0x1ae   : > { %v2389_v32 = vpack.c.b16 %v2384_v11, %v2383_v22  ;;  %4521 = vmatpush.bf16.msra.mxu1 %v4401_v62  ;;  %v2390_v49 = vpack.c.b16 %v2386_v8, %v2385_v54  ;;  %v6465_v11 = vld [vmem:[#allocation23_spill] sm:$0xff] }
 0x1af   : > { %3170 = vmatpush.bf16.msra.mxu0 %v4388_v57  ;;  %v2523_v35 = vpack.c.b16 %v2518_v34, %v2517_v30  ;;  %3433 = vmatpush.bf16.msra.mxu2 %v4408_v43  ;;  %v6460_v57 = vld [vmem:[#allocation27_spill] sm:$0xff]  ;;  %v6466_v51 = vpack.c.b16 %v6464_v33, %v6465_v11  ;;  %v4397_v34 = vld [vmem:[#allocation9 + $0x218] sm:$0xff] }
 0x1b0   : > { %v2486_v24 = vsel %vm5506_vm7, %v6460_v57, 0  ;;  %v4404_v22 = vld [vmem:[#allocation11 + $0x10] sm:$0xff]  ;;  %v6487_v57 = vpack.c.b16 %v6069_v47, %v6067_v15  ;;  %v6489_v11 = vld [vmem:[#allocation32_spill] sm:$0xff] }
 0x1b1   : > { %3012 = vmatpush.bf16.msra.mxu3 %v4380_v63  ;;  %v2069_v63 = vsel %vm5116_vm3, %v2061_v12, 0  ;;  %v4396_v30 = vld [vmem:[#allocation9 + $0x210] sm:$0xff]  ;;  %v4395_v12 = vld [vmem:[#allocation9 + $0x208] sm:$0xff] }
 0x1b2   : > { %v2102_v6 = vunpack.c.l.b16 %v2069_v63  ;;  %4522 = vmatpush.bf16.msra.mxu1 %v4400_v5 }
 0x1b3   : > { %3171 = vmatpush.bf16.msra.mxu0 %v4387_v48  ;;  %3434 = vmatpush.bf16.msra.mxu2 %v4407_v7  ;;  %v4405_v48 = vld [vmem:[#allocation11 + $0x18] sm:$0xff] }
 0x1b4   : > { %v2106_v16 = vpack.c.b16 %v2102_v6, %v2101_v52  ;;  %v6484_v6 = vld [vmem:[#allocation30_spill] sm:$0xff] }
 0x1b5   : > { %3013 = vmatpush.bf16.msra.mxu3 %v4379_v4  ;;  %v2519_v4 = vunpack.c.l.b16 %v2486_v24 }
 0x1b6   : > { %4523 = vmatpush.bf16.msra.mxu1 %v4399_v59 }
 0x1b7   : > { %3172 = vmatpush.bf16.msra.mxu0 %v4386_v44  ;;  %v2524_v19 = vpack.c.b16 %v2520_v9, %v2519_v4  ;;  %3435 = vmatpush.bf16.msra.mxu2 %v4406_v46  ;;  %v6472_v44 = vld [vmem:[#allocation19_spill] sm:$0xff] }
 0x1b8   : > { %v6488_v9 = vld [vmem:[#allocation31_spill] sm:$0xff] }
 0x1b9   : > { %2177 = vmatmul.bf16.gmra.mxu1 %v6127_v60  ;;  %3014 = vmatpush.bf16.msra.mxu3 %v4378_v61  ;;  %v6469_v61 = vld [vmem:[#allocation21_spill] sm:$0xff] }
 0x1ba   : > { %4524 = vmatpush.bf16.msra.mxu1 %v4398_v29 }
 0x1bb   : > { %3331 = vmatpush.bf16.msrb.mxu0 %v4401_v62  ;;  %3436 = vmatpush.bf16.msra.mxu2 %v4405_v48  ;;  %v6475_v62 = vld [vmem:[#allocation34_spill] sm:$0xff] }
 0x1bc   : > { %2278 = vmatmul.bf16.gmra.mxu2 %v6458_v17  ;;  %2461 = vmatmul.bf16.gmra.mxu3 %v2389_v32  ;;  %v6470_v32 = vpack.c.b16 %v6468_v21, %v6469_v61  ;;  %v4403_v17 = vld [vmem:[#allocation11 + $0x8] sm:$0xff] }
 0x1bd   : > { %2595 = vmatmul.bf16.gmra.mxu0 %v2523_v35  ;;  %4529 = vmatpush.bf16.msrb.mxu3 %v4409_v36  ;;  %v4402_v36 = vld [vmem:[#allocation11] sm:$0xff] }
 0x1be   : > { %4525 = vmatpush.bf16.msra.mxu1 %v4397_v34 }
 0x1bf   : > { %3332 = vmatpush.bf16.msrb.mxu0 %v4400_v5  ;;  %3437 = vmatpush.bf16.msra.mxu2 %v4404_v22  ;;  %v6479_v5 = vld [vmem:[#allocation28_spill] sm:$0xff] }
 0x1c0   : > { %v6480_v63 = vpack.c.bf16 %v6479_v5, %v5895_v20  ;;  %v6485_v20 = vld [vmem:[#allocation33_spill] sm:$0xff] }
 0x1c1   : > { %4530 = vmatpush.bf16.msrb.mxu3 %v4408_v43  ;;  %v6477_v43 = vpack.c.b16 %v6475_v62, %v6476_v10 }
 0x1c2   : > { %4526 = vmatpush.bf16.msra.mxu1 %v4396_v30 }
 0x1c3   : > { %3333 = vmatpush.bf16.msrb.mxu0 %v4399_v59  ;;  %3438 = vmatpush.bf16.msra.mxu2 %v4403_v17 }
 0x1c5   : > { %4531 = vmatpush.bf16.msrb.mxu3 %v4407_v7 }
 0x1c6   : > { %4527 = vmatpush.bf16.msra.mxu1 %v4395_v12 }
 0x1c7   : > { %3334 = vmatpush.bf16.msrb.mxu0 %v4398_v29  ;;  %3439 = vmatpush.bf16.msra.mxu2 %v4402_v36 }
 0x1c9   : > { %2182 = vmatmul.bf16.gmra.mxu1 %v2106_v16  ;;  %4532 = vmatpush.bf16.msrb.mxu3 %v4406_v46 }
 0x1ca   : > { %4528 = vmatpush.bf16.msra.mxu1 %v4394_v0 }
 0x1cb   : > { %3335 = vmatpush.bf16.msrb.mxu0 %v4397_v34 }
 0x1cc   : > { %2283 = vmatmul.bf16.gmra.mxu2 %v6461_v14  ;;  %2466 = vmatmul.bf16.gmra.mxu3 %v2390_v49 }
 0x1cd   : > { %2600 = vmatmul.bf16.gmra.mxu0 %v2524_v19  ;;  %4533 = vmatpush.bf16.msrb.mxu3 %v4405_v48 }
 0x1cf   : > { %3336 = vmatpush.bf16.msrb.mxu0 %v4396_v30 }
 0x1d1   : > { %4534 = vmatpush.bf16.msrb.mxu3 %v4404_v22 }
 0x1d3   : > { %3337 = vmatpush.bf16.msrb.mxu0 %v4395_v12 }
 0x1d5   : > { %4535 = vmatpush.bf16.msrb.mxu3 %v4403_v17 }
 0x1d7   : > { %3338 = vmatpush.bf16.msrb.mxu0 %v4394_v0 }
 0x1d9   : > { %2691 = vmatmul.bf16.vlgmr.msrb.gmra.mxu1 %v6462_v39  ;;  %4536 = vmatpush.bf16.msrb.mxu3 %v4402_v36 }
 0x1dc   : > { %2849 = vmatmul.bf16.vlgmr.msrb.gmra.mxu2 %v6463_v2  ;;  %3015 = vmatmul.bf16.vlgmr.msra.gmra.mxu3 %v6466_v51 }
 0x1dd   : > { %3173 = vmatmul.bf16.vlgmr.msra.gmra.mxu0 %v6101_v31  ;;  %v6471_v31 = vld [vmem:[#allocation17_spill] sm:$0xff] }
 0x1de   : > { %v6473_v35 = vpack.c.b16 %v6471_v31, %v6472_v44 }
 0x1e9   : > { %2696 = vmatmul.bf16.gmra.mxu1 %v6467_v27 }
 0x1ec   : > { %2854 = vmatmul.bf16.gmra.mxu2 %v6470_v32  ;;  %3020 = vmatmul.bf16.gmra.mxu3 %v6473_v35 }
 0x1ed   : > { %3178 = vmatmul.bf16.gmra.mxu0 %v6127_v60  ;;  %v6478_v60 = vpack.c.b16 %v5985_v41, %v5983_v28  ;;  %v6483_v41 = vpack.c.b16 %v6481_v40, %v6482_v26 }
 0x1f9   : > { %2701 = vmatmul.bf16.gmra.mxu1 %v6474_v38 }
 0x1fc   : > { %2859 = vmatmul.bf16.gmra.mxu2 %v6477_v43  ;;  %3025 = vmatmul.bf16.gmra.mxu3 %v6478_v60 }
 0x1fd   : > { %3183 = vmatmul.bf16.gmra.mxu0 %v2106_v16 }
 0x209   : > { %2706 = vmatmul.bf16.gmra.mxu1 %v6480_v63 }
 0x20c   : > { %2864 = vmatmul.bf16.gmra.mxu2 %v6065_v56  ;;  %3030 = vmatmul.bf16.gmra.mxu3 %v2954_v18 }
 0x20d   : > { %3188 = vmatmul.bf16.gmra.mxu0 %v3112_v42 }
 0x216   : > { %v2168_v23 = vpop.f32.mrf.mxu1 }
 0x219   : > { %3344 = vmatmul.bf16.vlgmr.msra.gmra.mxu1 %v6483_v41 }
 0x21a   : > { %v2586_v28 = vpop.f32.mrf.mxu0 }
 0x21c   : > { %3440 = vmatmul.bf16.vlgmr.msra.gmra.mxu2 %v6484_v6  ;;  %3455 = vmatmul.bf16.vlgmr.msrb.gmra.mxu3 %v6485_v20 }
 0x21d   : > { %3339 = vmatmul.bf16.vlgmr.msrb.gmra.mxu0 %v6486_v25 }
 0x21e   : > { %v2170_v56 = vpop.f32.mrf.mxu1 }
 0x21f   : > { %v2269_v55 = vpop.f32.mrf.mxu2  ;;  %v2452_v45 = vpop.f32.mrf.mxu3 }
 0x220   : > { %v2270_v53 = vadd.f32 %v2269_v55, %v2168_v23 }
 0x222   : > { %v2472_v18 = vadd.f32 %v2452_v45, %v2270_v53  ;;  %v2588_v52 = vpop.f32.mrf.mxu0 }
 0x224   : > { %v2606_v13 = vadd.f32 %v2586_v28, %v2472_v18 }
 0x226   : > { %v2173_v3 = vpop.f32.mrf.mxu1 }
 0x227   : > { %v2271_v42 = vpop.f32.mrf.mxu2  ;;  %v2454_v37 = vpop.f32.mrf.mxu3 }
 0x228   : > { %v2272_v8 = vadd.f32 %v2271_v42, %v2170_v56 }
 0x229   : > { %3349 = vmatmul.bf16.gmra.mxu1 %v6487_v57 }
 0x22a   : > { %v2473_v24 = vadd.f32 %v2454_v37, %v2272_v8  ;;  %v2591_v16 = vpop.f32.mrf.mxu0 }
 0x22c   : > { %3445 = vmatmul.bf16.gmra.mxu2 %v6488_v9  ;;  %v6206_v54 = vadd.f32 %v2588_v52, %v2473_v24 }
 0x22e   : > { %v2175_v4 = vpop.f32.mrf.mxu1 }
 0x22f   : > { %v2274_v49 = vpop.f32.mrf.mxu2  ;;  %v2457_v19 = vpop.f32.mrf.mxu3 }
 0x230   : > { %v2275_v14 = vadd.f32 %v2274_v49, %v2173_v3 }
 0x232   : > { %v2474_v7 = vadd.f32 %v2457_v19, %v2275_v14  ;;  %v2593_v59 = vpop.f32.mrf.mxu0 }
 0x234   : > { %v2608_v46 = vadd.f32 %v2591_v16, %v2474_v7 }
 0x236   : > { %v2178_v29 = vpop.f32.mrf.mxu1 }
 0x237   : > { %v2276_v39 = vpop.f32.mrf.mxu2  ;;  %v2459_v2 = vpop.f32.mrf.mxu3 }
 0x238   : > { %v2277_v33 = vadd.f32 %v2276_v39, %v2175_v4 }
 0x239   : > { %3354 = vmatmul.bf16.gmra.mxu1 %v3278_v58 }
 0x23a   : > { %v2475_v15 = vadd.f32 %v2459_v2, %v2277_v33  ;;  %v2596_v47 = vpop.f32.mrf.mxu0 }
 0x23c   : > { %3450 = vmatmul.bf16.gmra.mxu2 %v6489_v11  ;;  %v6212_v51 = vadd.f32 %v2593_v59, %v2475_v15 }
 0x23e   : > { %v2180_v48 = vpop.f32.mrf.mxu1 }
 0x23f   : > { %v2279_v34 = vpop.f32.mrf.mxu2  ;;  %v2462_v22 = vpop.f32.mrf.mxu3 }
 0x240   : > { %v2280_v30 = vadd.f32 %v2279_v34, %v2178_v29 }
 0x242   : > { %v2476_v27 = vadd.f32 %v2462_v22, %v2280_v30  ;;  %v2598_v21 = vpop.f32.mrf.mxu0 }
 0x244   : > { %v2610_v61 = vadd.f32 %v2596_v47, %v2476_v27 }
 0x246   : > { %v2183_v32 = vpop.f32.mrf.mxu1 }
 0x247   : > { %v2281_v31 = vpop.f32.mrf.mxu2  ;;  %v2464_v44 = vpop.f32.mrf.mxu3 }
 0x248   : > { %v2282_v35 = vadd.f32 %v2281_v31, %v2180_v48 }
 0x24a   : > { %v2477_v17 = vadd.f32 %v2464_v44, %v2282_v35  ;;  %v2601_v1 = vpop.f32.mrf.mxu0 }
 0x24c   : > { %v6214_v50 = vadd.f32 %v2598_v21, %v2477_v17 }
 0x24e   : > { %v2185_v58 = vpop.f32.mrf.mxu1 }
 0x24f   : > { %v2284_v12 = vpop.f32.mrf.mxu2  ;;  %v2467_v36 = vpop.f32.mrf.mxu3 }
 0x250   : > { %v2285_v0 = vadd.f32 %v2284_v12, %v2183_v32 }
 0x252   : > { %v2478_v38 = vadd.f32 %v2467_v36, %v2285_v0  ;;  %v2603_v62 = vpop.f32.mrf.mxu0 }
 0x254   : > { %v6216_v10 = vadd.f32 %v2601_v1, %v2478_v38 }
 0x256   : > { %v2692_v43 = vpop.f32.mrf.mxu1 }
 0x257   : > { %v2712_v60 = vadd.f32 %v2692_v43, %v2606_v13  ;;  %v2286_v5 = vpop.f32.mrf.mxu2  ;;  %v2469_v63 = vpop.f32.mrf.mxu3 }
 0x258   : > { %v2287_v23 = vadd.f32 %v2286_v5, %v2185_v58 }
 0x25a   : > { %v2479_v40 = vadd.f32 %v2469_v63, %v2287_v23  ;;  %v3174_v26 = vpop.f32.mrf.mxu0 }
 0x25c   : > { %v6218_v41 = vadd.f32 %v2603_v62, %v2479_v40 }
 0x25e   : > { %v2694_v28 = vpop.f32.mrf.mxu1 }
 0x25f   : > { %v2850_v6 = vpop.f32.mrf.mxu2  ;;  %v3016_v20 = vpop.f32.mrf.mxu3  ;;  %v2713_v32 = vadd.f32 %v2694_v28, %v6206_v54 }
 0x260   : > { %v2870_v25 = vadd.f32 %v2850_v6, %v2712_v60 }
 0x262   : > { %v3036_v56 = vadd.f32 %v3016_v20, %v2870_v25  ;;  %v3176_v55 = vpop.f32.mrf.mxu0 }
 0x264   : > { %v3194_v45 = vadd.f32 %v3174_v26, %v3036_v56 }
 0x266   : > { %v2697_v53 = vpop.f32.mrf.mxu1 }
 0x267   : > { %v2714_v18 = vadd.f32 %v2697_v53, %v2608_v46  ;;  %v2852_v52 = vpop.f32.mrf.mxu2  ;;  %v3018_v3 = vpop.f32.mrf.mxu3 }
 0x268   : > { %v2871_v44 = vadd.f32 %v2852_v52, %v2713_v32 }
 0x26a   : > { %v3179_v42 = vpop.f32.mrf.mxu0  ;;  %v3037_v1 = vadd.f32 %v3018_v3, %v2871_v44 }
 0x26c   : > { %v3195_v36 = vadd.f32 %v3176_v55, %v3037_v1 }
 0x26e   : > { %v2699_v13 = vpop.f32.mrf.mxu1 }
 0x26f   : > { %v2855_v37 = vpop.f32.mrf.mxu2  ;;  %v3021_v8 = vpop.f32.mrf.mxu3  ;;  %v2715_v63 = vadd.f32 %v2699_v13, %v6212_v51 }
 0x270   : > { %v2872_v57 = vadd.f32 %v2855_v37, %v2714_v18 }
 0x272   : > { %v3038_v24 = vadd.f32 %v3021_v8, %v2872_v57  ;;  %v3181_v16 = vpop.f32.mrf.mxu0 }
 0x274   : > { %v3196_v9 = vadd.f32 %v3179_v42, %v3038_v24 }
 0x276   : > { %v2702_v4 = vpop.f32.mrf.mxu1 }
 0x277   : > { %v2716_v49 = vadd.f32 %v2702_v4, %v2610_v61  ;;  %v2857_v19 = vpop.f32.mrf.mxu2  ;;  %v3023_v14 = vpop.f32.mrf.mxu3 }
 0x278   : > { %v2873_v40 = vadd.f32 %v2857_v19, %v2715_v63 }
 0x27a   : > { %v3184_v7 = vpop.f32.mrf.mxu0  ;;  %v3039_v6 = vadd.f32 %v3023_v14, %v2873_v40 }
 0x27c   : > { %v3197_v55 = vadd.f32 %v3181_v16, %v3039_v6 }
 0x27e   : > { %v2704_v59 = vpop.f32.mrf.mxu1 }
 0x27f   : > { %v2860_v29 = vpop.f32.mrf.mxu2  ;;  %v3026_v2 = vpop.f32.mrf.mxu3  ;;  %v2717_v57 = vadd.f32 %v2704_v59, %v6214_v50 }
 0x280   : > { %v2874_v39 = vadd.f32 %v2860_v29, %v2716_v49 }
 0x282   : > { %v3040_v46 = vadd.f32 %v3026_v2, %v2874_v39  ;;  %v6220_v33 = vpop.f32.mrf.mxu0 }
 0x284   : > { %v6222_v15 = vadd.f32 %v3184_v7, %v3040_v46 }
 0x286   : > { %v2707_v47 = vpop.f32.mrf.mxu1 }
 0x287   : > { %v2862_v11 = vpop.f32.mrf.mxu2  ;;  %v3028_v61 = vpop.f32.mrf.mxu3  ;;  %v2718_v20 = vadd.f32 %v2707_v47, %v6216_v10 }
 0x28a   : > { %v3189_v48 = vpop.f32.mrf.mxu0 }
 0x28e   : > { %v2709_v34 = vpop.f32.mrf.mxu1 }
 0x28f   : > { %v2865_v22 = vpop.f32.mrf.mxu2  ;;  %v3031_v58 = vpop.f32.mrf.mxu3  ;;  %v2719_v25 = vadd.f32 %v2709_v34, %v6218_v41  ;;  %v2875_v41 = vadd.f32 %v2862_v11, %v2717_v57 }
 0x290   : > { %v2876_v56 = vadd.f32 %v2865_v22, %v2718_v20 }
 0x291   : > { %v3041_v7 = vadd.f32 %v3028_v61, %v2875_v41 }
 0x292   : > { %v3191_v30 = vpop.f32.mrf.mxu0  ;;  %v3042_v3 = vadd.f32 %v3031_v58, %v2876_v56 }
 0x293   : > { %v3199_v50 = vadd.f32 %v6220_v33, %v3041_v7 }
 0x294   : > { %v3200_v10 = vadd.f32 %v3189_v48, %v3042_v3 }
 0x296   : > { %v3345_v27 = vpop.f32.mrf.mxu1 }
 0x297   : > { %v2867_v21 = vpop.f32.mrf.mxu2  ;;  %v3033_v54 = vpop.f32.mrf.mxu3  ;;  %v3362_v51 = vadd.f32 %v3345_v27, %v3196_v9 }
 0x298   : > { %v2877_v53 = vadd.f32 %v2867_v21, %v2719_v25 }
 0x29a   : > { %v3340_v31 = vpop.f32.mrf.mxu0  ;;  %v3043_v8 = vadd.f32 %v3033_v54, %v2877_v53 }
 0x29b   : > { %v3360_v0 = vadd.f32 %v3340_v31, %v3194_v45 }
 0x29c   : > { %v3201_v4 = vadd.f32 %v3191_v30, %v3043_v8 }
 0x29e   : > { %v3347_v35 = vpop.f32.mrf.mxu1 }
 0x29f   : > { %v3441_v17 = vpop.f32.mrf.mxu2  ;;  %v3456_v45 = vpop.f32.mrf.mxu3  ;;  %v3363_v18 = vadd.f32 %v3347_v35, %v3197_v55 }
 0x2a0   : > { %v3461_v60 = vadd.f32 %v3441_v17, %v3360_v0 }
 0x2a2   : > { %v3342_v12 = vpop.f32.mrf.mxu0 }
 0x2a3   : > { %v3361_v38 = vadd.f32 %v3342_v12, %v3195_v36 }
 0x2a6   : > { %v3350_v62 = vpop.f32.mrf.mxu1 }
 0x2a7   : > { %v3443_v43 = vpop.f32.mrf.mxu2  ;;  %v3458_v9 = vpop.f32.mrf.mxu3  ;;  %v3364_v59 = vadd.f32 %v3350_v62, %v6222_v15 }
 0x2a8   : > { %v3462_v5 = vadd.f32 %v3443_v43, %v3361_v38 }
 0x2aa   : > { %v4478_v23 = vpack.c.bf16 %v3462_v5, %v3461_v60 }
 0x2ac   : > { %4479 = vst [vmem:[%s6227_s20] sm:$0xff] %v4478_v23  }
 0x2ae   : > { %v3352_v26 = vpop.f32.mrf.mxu1 }
 0x2af   : > { %v3446_v28 = vpop.f32.mrf.mxu2  ;;  %v3365_v46 = vadd.f32 %v3352_v26, %v3199_v50 }
 0x2b0   : > { %v3463_v13 = vadd.f32 %v3446_v28, %v3362_v51 }
 0x2b6   : > { %v3355_v52 = vpop.f32.mrf.mxu1 }
 0x2b7   : > { %v3448_v42 = vpop.f32.mrf.mxu2  ;;  %v3366_v16 = vadd.f32 %v3355_v52, %v3200_v10 }
 0x2b8   : > { %v3464_v37 = vadd.f32 %v3448_v42, %v3363_v18 }
 0x2b9   : > { %v3467_v29 = vadd.f32 %v3456_v45, %v3366_v16 }
 0x2ba   : > { %v4483_v24 = vpack.c.bf16 %v3464_v37, %v3463_v13 }
 0x2bc   : > { %4510 = vst [vmem:[%s6227_s20 + $0x8] sm:$0xff] %v4483_v24  }
 0x2be   : > { %v3357_v49 = vpop.f32.mrf.mxu1 }
 0x2bf   : > { %v3367_v19 = vadd.f32 %v3357_v49, %v3201_v4  ;;  %v3451_v14 = vpop.f32.mrf.mxu2 }
 0x2c0   : > { %v3465_v11 = vadd.f32 %v3451_v14, %v3364_v59 }
 0x2c1   : > { %v3468_v39 = vadd.f32 %v3458_v9, %v3367_v19 }
 0x2c3   : > { %v4493_v2 = vpack.c.bf16 %v3468_v39, %v3467_v29 }
 0x2c5   : > { %4512 = vst [vmem:[%s6227_s20 + $0x18] sm:$0xff] %v4493_v2  }
 0x2c7   : > { %v3453_v47 = vpop.f32.mrf.mxu2 }
 0x2c8   : > { %v3466_v48 = vadd.f32 %v3453_v47, %v3365_v46 }
 0x2ca   : > { %v4488_v34 = vpack.c.bf16 %v3466_v48, %v3465_v11 }
 0x2cc   : > { %4511 = vst [vmem:[%s6227_s20 + $0x10] sm:$0xff] %v4488_v34  }
 0x2cd   : > { %4810 = shalt.err (!%p4807_p11)
}
 0x2ce   : > { %s4867_s11 = smov 64   ;;  %s4868_s20 = smov 4  }
 0x2cf   : > { %4555 = dma.vmem_to_hbm [thread:$0]  (%p5002_p3), %s3499_s17, 512, %s3501_s9, %s3486_s28, %s4867_s11, %s4867_s11, %s4868_s20  }
 0x2d0 PF: > { %s3515_s13 = sand.u32 1, %s4845_s24   ;;  %p6490_p12 = scmp.ge.s32.totalorder %s4857_s27, 2 }
 0x2d1   : > { %s3516_s14 = scalar_lea.sflag [#allocation5], %s3515_s13 }
 0x2d2   : > { %p4575_p13 = pnand %p6490_p12, %p4944_p6 }
 0x2d4   : > { %p4576_p0 = pneg %p4575_p13 }
 0x2d6   : > { %4840 = dma.done.wait (%p4576_p0), %s3516_s14, 512  }
 0x2d7   : > { %4842 = vsyncadd (%p4576_p0), %s3516_s14, 4294966784  ;;  %p22_p5 = scmp.ge.s32.totalorder %s4992_s19, 4   ;;  %s6491_s24 = smov %s4849_s25 }
 0x2d8   : > { %s6492_s25 = smov %s4853_s26  ;;  %s6493_s26 = smov %s5008_s23 }
 0x2d9   : > { %s6494_s27 = smov %s4992_s19  ;;  %24 = sbr.rel (!%p22_p5) target bundleno = 9 (0x9), region = 156 }
 0x2de   :  { %3522 = vsyncpa [#allocation4], 1 }
 0x2df   :  { %3524 = vsyncpa [#allocation4 + $0x1], 1 }
 0x2e0   :  { %3525 = vsyncpa [#allocation7], 1 }
 0x2e1   :  { %3526 = vsyncpa [#allocation10], 1 }
 0x2e2   :  { %3527 = vsyncpa [#allocation5], 1 }
 0x2e3   :  { %3529 = vsyncpa [#allocation5 + $0x1], 1 }

</bundles_post_ra>
